<compile_context>
chip_gen: v6e
topology: v6e:2x2x1
jax: 0.10.0
libtpu: 0.0.40
codegen_flags: <defaults>
</compile_context>

<pallas_src>
import functools

import jax
import jax.numpy as jnp
from jax.experimental import pallas as pl
from jax.experimental.pallas import tpu as pltpu


def _round_up(n, m):
    return (n + m - 1) // m * m


# ----------------------------- fused kernel --------------------------------

def _make_fused_kernel(num_layers, tt, Hp):
    """Build the fused LSTM + FC-head kernel for a fixed layer count / chunk."""
    has_seq = num_layers > 1

    def kernel(*refs):
        x_ref = refs[0]                                   # (tt, Bp, Dp)
        layer_refs = refs[1:1 + 3 * num_layers]           # (w_ih, w_hh, b) * L
        fc1_w, fc1_b, fc2_w, fc2_b = refs[1 + 3 * num_layers:5 + 3 * num_layers]
        out_ref = refs[5 + 3 * num_layers]                # (Bp, Op)
        scratch = refs[6 + 3 * num_layers:]
        if has_seq:
            xp_scr, seq_scr, h_scr, c_scr = scratch
        else:
            xp_scr, h_scr, c_scr = scratch
            seq_scr = None

        g = pl.program_id(0)
        n_chunks = pl.num_programs(0)

        @pl.when(g == 0)
        def _init():
            h_scr[...] = jnp.zeros_like(h_scr)
            c_scr[...] = jnp.zeros_like(c_scr)

        Bp = x_ref.shape[1]
        cur = x_ref[...]                                  # layer-0 input chunk

        h = None
        for l in range(num_layers):
            w_ih = layer_refs[3 * l]
            w_hh = layer_refs[3 * l + 1]
            b = layer_refs[3 * l + 2]
            d_in = cur.shape[-1]

            # Hoisted input projection + bias for the whole chunk: one big GEMM
            # on the MXU, staged to VMEM scratch (bounded vreg pressure).
            xp = jnp.dot(cur.reshape(tt * Bp, d_in), w_ih[...],
                         preferred_element_type=jnp.float32) + b[...]
            xp_scr[...] = xp.reshape(tt, Bp, 4 * Hp)

            h = h_scr[l]                                  # (Bp, Hp) carried state
            c = c_scr[l]
            w_hh_v = w_hh[...]                            # hoisted weight load

            # Static (fully unrolled) loop over the chunk's timesteps.
            for t in range(tt):
                gates = xp_scr[t] + jnp.dot(h, w_hh_v,
                                            preferred_element_type=jnp.float32)
                i_g = jax.nn.sigmoid(gates[:, 0 * Hp:1 * Hp])
                f_g = jax.nn.sigmoid(gates[:, 1 * Hp:2 * Hp])
                g_g = jnp.tanh(gates[:, 2 * Hp:3 * Hp])
                o_g = jax.nn.sigmoid(gates[:, 3 * Hp:4 * Hp])
                c = f_g * c + i_g * g_g
                h = o_g * jnp.tanh(c)
                if l < num_layers - 1:                    # last layer: only final h needed
                    seq_scr[t] = h

            h_scr[l] = h
            c_scr[l] = c
            if l < num_layers - 1:
                cur = seq_scr[...]                        # next layer's input chunk

        # FC head (fc1 -> fc2, no activation) fused into the epilogue of the
        # last time chunk.
        @pl.when(g == n_chunks - 1)
        def _head():
            z = jnp.dot(h, fc1_w[...],
                        preferred_element_type=jnp.float32) + fc1_b[...]
            out_ref[...] = jnp.dot(z, fc2_w[...],
                                   preferred_element_type=jnp.float32) + fc2_b[...]

    return kernel


# ------------------------------ wrapper -------------------------------------

@functools.partial(jax.jit, static_argnames=("time_chunk",))
def lstm_net_forward(x, params, *, time_chunk=None):
    """x: (B, T, input_size) batch-first, params in raw PyTorch layout.

    Returns (B, out_size), matching LSTMNet.forward.
    """
    B, T, D = x.shape
    H = params["lstm"][0]["w_hh"].shape[1]
    out_size = params["fc2_w"].shape[0]
    L = len(params["lstm"])
    FC1 = params["fc1_w"].shape[0]                        # 256 (already lane-aligned)

    Bp = _round_up(B, 8)
    Dp = _round_up(D, 128)
    Hp = _round_up(H, 128)
    Op = _round_up(out_size, 128)

    tt = T if time_chunk is None else time_chunk
    assert T % tt == 0, "seq_length must be divisible by time_chunk"
    n_chunks = T // tt

    # --- pad + lay out input: time-major (T, Bp, Dp), padded with zeros ---
    x_tm = jnp.zeros((T, Bp, Dp), jnp.float32)
    x_tm = x_tm.at[:, :B, :D].set(jnp.transpose(x, (1, 0, 2)).astype(jnp.float32))

    # --- per-gate padded, transposed weights (zeros in padded rows/cols) ---
    def pad_gate_weight(w, d_in, d_in_p):                 # (4H, d_in) -> (d_in_p, 4Hp)
        w4 = w.reshape(4, H, d_in)
        wp = jnp.zeros((4, Hp, d_in_p), jnp.float32).at[:, :H, :d_in].set(w4)
        return wp.reshape(4 * Hp, d_in_p).T

    def pad_gate_bias(b_ih, b_hh):                        # -> (1, 4Hp)
        b = (b_ih + b_hh).reshape(4, H)
        bp = jnp.zeros((4, Hp), jnp.float32).at[:, :H].set(b)
        return bp.reshape(1, 4 * Hp)

    layer_args = []
    for l, lp in enumerate(params["lstm"]):
        d_in = D if l == 0 else H
        d_in_p = Dp if l == 0 else Hp
        layer_args += [
            pad_gate_weight(lp["w_ih"], d_in, d_in_p),
            pad_gate_weight(lp["w_hh"], H, Hp),
            pad_gate_bias(lp["b_ih"], lp["b_hh"]),
        ]

    fc1_w = jnp.zeros((Hp, FC1), jnp.float32).at[:H, :].set(params["fc1_w"].T)
    fc1_b = params["fc1_b"].reshape(1, FC1).astype(jnp.float32)
    fc2_w = jnp.zeros((FC1, Op), jnp.float32).at[:, :out_size].set(params["fc2_w"].T)
    fc2_b = jnp.zeros((1, Op), jnp.float32).at[0, :out_size].set(params["fc2_b"])

    # --- block specs ---
    in_specs = [pl.BlockSpec((tt, Bp, Dp), lambda g: (g, 0, 0))]
    for l in range(L):
        d_in_p = Dp if l == 0 else Hp
        in_specs += [
            pl.BlockSpec((d_in_p, 4 * Hp), lambda g: (0, 0)),
            pl.BlockSpec((Hp, 4 * Hp), lambda g: (0, 0)),
            pl.BlockSpec((1, 4 * Hp), lambda g: (0, 0)),
        ]
    in_specs += [
        pl.BlockSpec((Hp, FC1), lambda g: (0, 0)),
        pl.BlockSpec((1, FC1), lambda g: (0, 0)),
        pl.BlockSpec((FC1, Op), lambda g: (0, 0)),
        pl.BlockSpec((1, Op), lambda g: (0, 0)),
    ]
    out_spec = pl.BlockSpec((Bp, Op), lambda g: (0, 0))

    scratch_shapes = [pltpu.VMEM((tt, Bp, 4 * Hp), jnp.float32)]  # chunk input projection
    if L > 1:
        scratch_shapes.append(pltpu.VMEM((tt, Bp, Hp), jnp.float32))  # chunk hidden seq
    scratch_shapes += [
        pltpu.VMEM((L, Bp, Hp), jnp.float32),             # per-layer h (carried)
        pltpu.VMEM((L, Bp, Hp), jnp.float32),             # per-layer c (carried)
    ]

    kernel = _make_fused_kernel(L, tt, Hp)

    out_padded = pl.pallas_call(
        kernel,
        out_shape=jax.ShapeDtypeStruct((Bp, Op), jnp.float32),
        grid=(n_chunks,),
        in_specs=in_specs,
        out_specs=out_spec,
        scratch_shapes=scratch_shapes,
        compiler_params=pltpu.CompilerParams(
            dimension_semantics=("arbitrary",)),
    )(x_tm, *layer_args, fc1_w, fc1_b, fc2_w, fc2_b)

    return out_padded[:B, :out_size]


# --------------------------- parameter init ---------------------------------

def init_params(key, input_size, hidden_size, num_layers, out_size, fc1_size=256):
    """Raw PyTorch-shaped parameters (uniform init like nn.LSTM / nn.Linear)."""
    keys = jax.random.split(key, 4 * num_layers + 4)
    k = iter(keys)
    scale = 1.0 / jnp.sqrt(hidden_size)
    lstm_layers = []
    for l in range(num_layers):
        d_in = input_size if l == 0 else hidden_size
        lstm_layers.append({
            "w_ih": jax.random.uniform(next(k), (4 * hidden_size, d_in),
                                       jnp.float32, -scale, scale),
            "w_hh": jax.random.uniform(next(k), (4 * hidden_size, hidden_size),
                                       jnp.float32, -scale, scale),
            "b_ih": jax.random.uniform(next(k), (4 * hidden_size,),
                                       jnp.float32, -scale, scale),
            "b_hh": jax.random.uniform(next(k), (4 * hidden_size,),
                                       jnp.float32, -scale, scale),
        })
    s1 = 1.0 / jnp.sqrt(hidden_size)
    fc1_w = jax.random.uniform(next(k), (fc1_size, hidden_size), jnp.float32, -s1, s1)
    fc1_b = jax.random.uniform(next(k), (fc1_size,), jnp.float32, -s1, s1)
    s2 = 1.0 / jnp.sqrt(fc1_size)
    fc2_w = jax.random.uniform(next(k), (out_size, fc1_size), jnp.float32, -s2, s2)
    fc2_b = jax.random.uniform(next(k), (out_size,), jnp.float32, -s2, s2)
    return {"lstm": lstm_layers, "fc1_w": fc1_w, "fc1_b": fc1_b,
            "fc2_w": fc2_w, "fc2_b": fc2_b}


# -------------------------- pure-JAX reference -------------------------------

def lstm_net_reference(x, params):
    B, T, _ = x.shape
    H = params["lstm"][0]["w_hh"].shape[1]
    seq = x
    for lp in params["lstm"]:
        b = lp["b_ih"] + lp["b_hh"]
        h = jnp.zeros((B, H), jnp.float32)
        c = jnp.zeros((B, H), jnp.float32)
        outs = []
        for t in range(T):
            g = seq[:, t, :] @ lp["w_ih"].T + h @ lp["w_hh"].T + b
            i_g = jax.nn.sigmoid(g[:, 0 * H:1 * H])
            f_g = jax.nn.sigmoid(g[:, 1 * H:2 * H])
            g_g = jnp.tanh(g[:, 2 * H:3 * H])
            o_g = jax.nn.sigmoid(g[:, 3 * H:4 * H])
            c = f_g * c + i_g * g_g
            h = o_g * jnp.tanh(c)
            outs.append(h)
        seq = jnp.stack(outs, axis=1)
    last = seq[:, -1, :]
    z = last @ params["fc1_w"].T + params["fc1_b"]
    return z @ params["fc2_w"].T + params["fc2_b"]


# --------------------------------- main --------------------------------------

if __name__ == "__main__":
    B, T, INPUT, HIDDEN, LAYERS, OUT = 2, 8, 16, 32, 2, 10

    key = jax.random.PRNGKey(0)
    k_x, k_p = jax.random.split(key)
    x = jax.random.normal(k_x, (B, T, INPUT), jnp.float32)
    params = init_params(k_p, INPUT, HIDDEN, LAYERS, OUT)

    # time_chunk=4 -> grid=(2,): exercises the streamed-chunk / carried-state path.
    out = lstm_net_forward(x, params, time_chunk=4)
    out = jax.block_until_ready(out)

    # Also exercise the single-chunk (grid=(1,)) path for coverage.
    out_full = jax.block_until_ready(lstm_net_forward(x, params))

    ref = lstm_net_reference(x, params)
    assert out.shape == (B, OUT), out.shape
    assert jnp.allclose(out, ref, atol=1e-4, rtol=1e-4), (
        f"max abs err {jnp.max(jnp.abs(out - ref))}"
    )
    assert jnp.allclose(out_full, ref, atol=1e-4, rtol=1e-4), (
        f"max abs err (full-chunk) {jnp.max(jnp.abs(out_full - ref))}"
    )
    print("KERNEL_OK")
</pallas_src>

<mosaic_0001>
module attributes {stable_mosaic.version = 11 : i64} {
  func.func @kernel(%arg0: i32, %arg1: memref<4x8x128xf32, #tpu.memory_space<vmem>>, %arg2: memref<128x512xf32, #tpu.memory_space<vmem>>, %arg3: memref<128x512xf32, #tpu.memory_space<vmem>>, %arg4: memref<1x512xf32, #tpu.memory_space<vmem>>, %arg5: memref<128x512xf32, #tpu.memory_space<vmem>>, %arg6: memref<128x512xf32, #tpu.memory_space<vmem>>, %arg7: memref<1x512xf32, #tpu.memory_space<vmem>>, %arg8: memref<128x256xf32, #tpu.memory_space<vmem>>, %arg9: memref<1x256xf32, #tpu.memory_space<vmem>>, %arg10: memref<256x128xf32, #tpu.memory_space<vmem>>, %arg11: memref<1x128xf32, #tpu.memory_space<vmem>>, %arg12: memref<8x128xf32, #tpu.memory_space<vmem>>, %arg13: memref<4x8x512xf32, #tpu.memory_space<vmem>>, %arg14: memref<4x8x128xf32, #tpu.memory_space<vmem>>, %arg15: memref<2x8x128xf32, #tpu.memory_space<vmem>>, %arg16: memref<2x8x128xf32, #tpu.memory_space<vmem>>) attributes {dimension_semantics = [#tpu.dimension_semantics<arbitrary>], iteration_bounds = array<i64: 2>, scalar_prefetch = 0 : i64, scratch_operands = 4 : i64, tpu.core_type = #tpu.core_type<tc>, window_params = [{transform_indices = @transform_0, window_bounds = array<i64: 4, 8, 128>}, {pipeline_mode = #tpu.pipeline_mode<synchronous>, transform_indices = @transform_1, window_bounds = array<i64: 128, 512>}, {pipeline_mode = #tpu.pipeline_mode<synchronous>, transform_indices = @transform_2, window_bounds = array<i64: 128, 512>}, {pipeline_mode = #tpu.pipeline_mode<synchronous>, transform_indices = @transform_3, window_bounds = array<i64: 1, 512>}, {pipeline_mode = #tpu.pipeline_mode<synchronous>, transform_indices = @transform_4, window_bounds = array<i64: 128, 512>}, {pipeline_mode = #tpu.pipeline_mode<synchronous>, transform_indices = @transform_5, window_bounds = array<i64: 128, 512>}, {pipeline_mode = #tpu.pipeline_mode<synchronous>, transform_indices = @transform_6, window_bounds = array<i64: 1, 512>}, {pipeline_mode = #tpu.pipeline_mode<synchronous>, transform_indices = @transform_7, window_bounds = array<i64: 128, 256>}, {pipeline_mode = #tpu.pipeline_mode<synchronous>, transform_indices = @transform_8, window_bounds = array<i64: 1, 256>}, {pipeline_mode = #tpu.pipeline_mode<synchronous>, transform_indices = @transform_9, window_bounds = array<i64: 256, 128>}, {pipeline_mode = #tpu.pipeline_mode<synchronous>, transform_indices = @transform_10, window_bounds = array<i64: 1, 128>}, {pipeline_mode = #tpu.pipeline_mode<synchronous>, transform_indices = @transform_11, window_bounds = array<i64: 8, 128>}]} {
    %c0_i32 = arith.constant 0 : i32
    %0 = arith.cmpi eq, %arg0, %c0_i32 : i32
    %1 = arith.extui %0 : i1 to i32
    %c0_i32_0 = arith.constant 0 : i32
    %2 = arith.cmpi ne, %1, %c0_i32_0 : i32
    scf.if %2 {
      %cst_115 = arith.constant 0.000000e+00 : f32
      %290 = vector.broadcast %cst_115 : f32 to vector<2x8x128xf32>
      %c0_116 = arith.constant 0 : index
      %c0_117 = arith.constant 0 : index
      %c0_118 = arith.constant 0 : index
      %291 = vector.load %arg15[%c0_116, %c0_117, %c0_118] : memref<2x8x128xf32, #tpu.memory_space<vmem>>, vector<2x8x128xf32>
      tpu.vector_store %arg15[%c0_116, %c0_117, %c0_118], %290 {strides = array<i32>} : memref<2x8x128xf32, #tpu.memory_space<vmem>>, vector<2x8x128xf32>,
      %cst_119 = arith.constant 0.000000e+00 : f32
      %292 = vector.broadcast %cst_119 : f32 to vector<2x8x128xf32>
      %c0_120 = arith.constant 0 : index
      %c0_121 = arith.constant 0 : index
      %c0_122 = arith.constant 0 : index
      %293 = vector.load %arg16[%c0_120, %c0_121, %c0_122] : memref<2x8x128xf32, #tpu.memory_space<vmem>>, vector<2x8x128xf32>
      tpu.vector_store %arg16[%c0_120, %c0_121, %c0_122], %292 {strides = array<i32>} : memref<2x8x128xf32, #tpu.memory_space<vmem>>, vector<2x8x128xf32>,
    } else {
    }
    %c0 = arith.constant 0 : index
    %c0_1 = arith.constant 0 : index
    %c0_2 = arith.constant 0 : index
    %3 = vector.load %arg1[%c0, %c0_1, %c0_2] : memref<4x8x128xf32, #tpu.memory_space<vmem>>, vector<4x8x128xf32>
    %4 = vector.shape_cast %3 : vector<4x8x128xf32> to vector<32x128xf32>
    %c0_3 = arith.constant 0 : index
    %c0_4 = arith.constant 0 : index
    %5 = vector.load %arg2[%c0_3, %c0_4] : memref<128x512xf32, #tpu.memory_space<vmem>>, vector<128x512xf32>
    %cst = arith.constant dense<0.000000e+00> : vector<32x512xf32>
    %6 = tpu.matmul %4, %5, %cst {dimension_numbers = #tpu.dot_dimension_numbers<[1], [0], [0], [1], [0, 0, 1, 1], [], []>} : vector<32x128xf32>, vector<128x512xf32>, vector<32x512xf32> -> vector<32x512xf32>
    %c0_5 = arith.constant 0 : index
    %c0_6 = arith.constant 0 : index
    %7 = vector.load %arg4[%c0_5, %c0_6] : memref<1x512xf32, #tpu.memory_space<vmem>>, vector<1x512xf32>
    %8 = vector.broadcast %7 : vector<1x512xf32> to vector<32x512xf32>
    %9 = arith.addf %6, %8 : vector<32x512xf32>
    %10 = vector.shape_cast %9 : vector<32x512xf32> to vector<4x8x512xf32>
    %c0_7 = arith.constant 0 : index
    %c0_8 = arith.constant 0 : index
    %c0_9 = arith.constant 0 : index
    %11 = vector.load %arg13[%c0_7, %c0_8, %c0_9] : memref<4x8x512xf32, #tpu.memory_space<vmem>>, vector<4x8x512xf32>
    tpu.vector_store %arg13[%c0_7, %c0_8, %c0_9], %10 {strides = array<i32>} : memref<4x8x512xf32, #tpu.memory_space<vmem>>, vector<4x8x512xf32>,
    %c0_10 = arith.constant 0 : index
    %c0_11 = arith.constant 0 : index
    %c0_12 = arith.constant 0 : index
    %12 = vector.load %arg15[%c0_10, %c0_11, %c0_12] : memref<2x8x128xf32, #tpu.memory_space<vmem>>, vector<1x8x128xf32>
    %13 = vector.shape_cast %12 : vector<1x8x128xf32> to vector<8x128xf32>
    %c0_13 = arith.constant 0 : index
    %c0_14 = arith.constant 0 : index
    %c0_15 = arith.constant 0 : index
    %14 = vector.load %arg16[%c0_13, %c0_14, %c0_15] : memref<2x8x128xf32, #tpu.memory_space<vmem>>, vector<1x8x128xf32>
    %15 = vector.shape_cast %14 : vector<1x8x128xf32> to vector<8x128xf32>
    %c0_16 = arith.constant 0 : index
    %c0_17 = arith.constant 0 : index
    %16 = vector.load %arg3[%c0_16, %c0_17] : memref<128x512xf32, #tpu.memory_space<vmem>>, vector<128x512xf32>
    %c0_18 = arith.constant 0 : index
    %c0_19 = arith.constant 0 : index
    %c0_20 = arith.constant 0 : index
    %17 = vector.load %arg13[%c0_18, %c0_19, %c0_20] : memref<4x8x512xf32, #tpu.memory_space<vmem>>, vector<1x8x512xf32>
    %18 = vector.shape_cast %17 : vector<1x8x512xf32> to vector<8x512xf32>
    %cst_21 = arith.constant dense<0.000000e+00> : vector<8x512xf32>
    %19 = tpu.matmul %13, %16, %cst_21 {dimension_numbers = #tpu.dot_dimension_numbers<[1], [0], [0], [1], [0, 0, 1, 1], [], []>} : vector<8x128xf32>, vector<128x512xf32>, vector<8x512xf32> -> vector<8x512xf32>
    %20 = arith.addf %18, %19 : vector<8x512xf32>
    %21 = vector.extract_strided_slice %20 {offsets = [0, 0], sizes = [8, 128], strides = [1, 1]} : vector<8x512xf32> to vector<8x128xf32>
    %22 = arith.negf %21 : vector<8x128xf32>
    %23 = math.exp %22 : vector<8x128xf32>
    %cst_22 = arith.constant 1.000000e+00 : f32
    %24 = vector.broadcast %cst_22 : f32 to vector<8x128xf32>
    %25 = arith.addf %24, %23 : vector<8x128xf32>
    %26 = arith.divf %24, %25 : vector<8x128xf32>
    %27 = vector.extract_strided_slice %20 {offsets = [0, 128], sizes = [8, 128], strides = [1, 1]} : vector<8x512xf32> to vector<8x128xf32>
    %28 = arith.negf %27 : vector<8x128xf32>
    %29 = math.exp %28 : vector<8x128xf32>
    %cst_23 = arith.constant 1.000000e+00 : f32
    %30 = vector.broadcast %cst_23 : f32 to vector<8x128xf32>
    %31 = arith.addf %30, %29 : vector<8x128xf32>
    %32 = arith.divf %30, %31 : vector<8x128xf32>
    %33 = vector.extract_strided_slice %20 {offsets = [0, 256], sizes = [8, 128], strides = [1, 1]} : vector<8x512xf32> to vector<8x128xf32>
    %34 = math.tanh %33 : vector<8x128xf32>
    %35 = vector.extract_strided_slice %20 {offsets = [0, 384], sizes = [8, 128], strides = [1, 1]} : vector<8x512xf32> to vector<8x128xf32>
    %36 = arith.negf %35 : vector<8x128xf32>
    %37 = math.exp %36 : vector<8x128xf32>
    %cst_24 = arith.constant 1.000000e+00 : f32
    %38 = vector.broadcast %cst_24 : f32 to vector<8x128xf32>
    %39 = arith.addf %38, %37 : vector<8x128xf32>
    %40 = arith.divf %38, %39 : vector<8x128xf32>
    %41 = arith.mulf %32, %15 : vector<8x128xf32>
    %42 = arith.mulf %26, %34 : vector<8x128xf32>
    %43 = arith.addf %41, %42 : vector<8x128xf32>
    %44 = math.tanh %43 : vector<8x128xf32>
    %45 = arith.mulf %40, %44 : vector<8x128xf32>
    %c0_25 = arith.constant 0 : index
    %c0_26 = arith.constant 0 : index
    %c0_27 = arith.constant 0 : index
    %46 = vector.load %arg14[%c0_25, %c0_26, %c0_27] : memref<4x8x128xf32, #tpu.memory_space<vmem>>, vector<1x8x128xf32>
    %47 = vector.shape_cast %46 : vector<1x8x128xf32> to vector<8x128xf32>
    %48 = vector.shape_cast %45 : vector<8x128xf32> to vector<1x8x128xf32>
    tpu.vector_store %arg14[%c0_25, %c0_26, %c0_27], %48 {strides = array<i32>} : memref<4x8x128xf32, #tpu.memory_space<vmem>>, vector<1x8x128xf32>,
    %c1 = arith.constant 1 : index
    %c0_28 = arith.constant 0 : index
    %c0_29 = arith.constant 0 : index
    %49 = vector.load %arg13[%c1, %c0_28, %c0_29] : memref<4x8x512xf32, #tpu.memory_space<vmem>>, vector<1x8x512xf32>
    %50 = vector.shape_cast %49 : vector<1x8x512xf32> to vector<8x512xf32>
    %cst_30 = arith.constant dense<0.000000e+00> : vector<8x512xf32>
    %51 = tpu.matmul %45, %16, %cst_30 {dimension_numbers = #tpu.dot_dimension_numbers<[1], [0], [0], [1], [0, 0, 1, 1], [], []>} : vector<8x128xf32>, vector<128x512xf32>, vector<8x512xf32> -> vector<8x512xf32>
    %52 = arith.addf %50, %51 : vector<8x512xf32>
    %53 = vector.extract_strided_slice %52 {offsets = [0, 0], sizes = [8, 128], strides = [1, 1]} : vector<8x512xf32> to vector<8x128xf32>
    %54 = arith.negf %53 : vector<8x128xf32>
    %55 = math.exp %54 : vector<8x128xf32>
    %cst_31 = arith.constant 1.000000e+00 : f32
    %56 = vector.broadcast %cst_31 : f32 to vector<8x128xf32>
    %57 = arith.addf %56, %55 : vector<8x128xf32>
    %58 = arith.divf %56, %57 : vector<8x128xf32>
    %59 = vector.extract_strided_slice %52 {offsets = [0, 128], sizes = [8, 128], strides = [1, 1]} : vector<8x512xf32> to vector<8x128xf32>
    %60 = arith.negf %59 : vector<8x128xf32>
    %61 = math.exp %60 : vector<8x128xf32>
    %cst_32 = arith.constant 1.000000e+00 : f32
    %62 = vector.broadcast %cst_32 : f32 to vector<8x128xf32>
    %63 = arith.addf %62, %61 : vector<8x128xf32>
    %64 = arith.divf %62, %63 : vector<8x128xf32>
    %65 = vector.extract_strided_slice %52 {offsets = [0, 256], sizes = [8, 128], strides = [1, 1]} : vector<8x512xf32> to vector<8x128xf32>
    %66 = math.tanh %65 : vector<8x128xf32>
    %67 = vector.extract_strided_slice %52 {offsets = [0, 384], sizes = [8, 128], strides = [1, 1]} : vector<8x512xf32> to vector<8x128xf32>
    %68 = arith.negf %67 : vector<8x128xf32>
    %69 = math.exp %68 : vector<8x128xf32>
    %cst_33 = arith.constant 1.000000e+00 : f32
    %70 = vector.broadcast %cst_33 : f32 to vector<8x128xf32>
    %71 = arith.addf %70, %69 : vector<8x128xf32>
    %72 = arith.divf %70, %71 : vector<8x128xf32>
    %73 = arith.mulf %64, %43 : vector<8x128xf32>
    %74 = arith.mulf %58, %66 : vector<8x128xf32>
    %75 = arith.addf %73, %74 : vector<8x128xf32>
    %76 = math.tanh %75 : vector<8x128xf32>
    %77 = arith.mulf %72, %76 : vector<8x128xf32>
    %c1_34 = arith.constant 1 : index
    %c0_35 = arith.constant 0 : index
    %c0_36 = arith.constant 0 : index
    %78 = vector.load %arg14[%c1_34, %c0_35, %c0_36] : memref<4x8x128xf32, #tpu.memory_space<vmem>>, vector<1x8x128xf32>
    %79 = vector.shape_cast %78 : vector<1x8x128xf32> to vector<8x128xf32>
    %80 = vector.shape_cast %77 : vector<8x128xf32> to vector<1x8x128xf32>
    tpu.vector_store %arg14[%c1_34, %c0_35, %c0_36], %80 {strides = array<i32>} : memref<4x8x128xf32, #tpu.memory_space<vmem>>, vector<1x8x128xf32>,
    %c2 = arith.constant 2 : index
    %c0_37 = arith.constant 0 : index
    %c0_38 = arith.constant 0 : index
    %81 = vector.load %arg13[%c2, %c0_37, %c0_38] : memref<4x8x512xf32, #tpu.memory_space<vmem>>, vector<1x8x512xf32>
    %82 = vector.shape_cast %81 : vector<1x8x512xf32> to vector<8x512xf32>
    %cst_39 = arith.constant dense<0.000000e+00> : vector<8x512xf32>
    %83 = tpu.matmul %77, %16, %cst_39 {dimension_numbers = #tpu.dot_dimension_numbers<[1], [0], [0], [1], [0, 0, 1, 1], [], []>} : vector<8x128xf32>, vector<128x512xf32>, vector<8x512xf32> -> vector<8x512xf32>
    %84 = arith.addf %82, %83 : vector<8x512xf32>
    %85 = vector.extract_strided_slice %84 {offsets = [0, 0], sizes = [8, 128], strides = [1, 1]} : vector<8x512xf32> to vector<8x128xf32>
    %86 = arith.negf %85 : vector<8x128xf32>
    %87 = math.exp %86 : vector<8x128xf32>
    %cst_40 = arith.constant 1.000000e+00 : f32
    %88 = vector.broadcast %cst_40 : f32 to vector<8x128xf32>
    %89 = arith.addf %88, %87 : vector<8x128xf32>
    %90 = arith.divf %88, %89 : vector<8x128xf32>
    %91 = vector.extract_strided_slice %84 {offsets = [0, 128], sizes = [8, 128], strides = [1, 1]} : vector<8x512xf32> to vector<8x128xf32>
    %92 = arith.negf %91 : vector<8x128xf32>
    %93 = math.exp %92 : vector<8x128xf32>
    %cst_41 = arith.constant 1.000000e+00 : f32
    %94 = vector.broadcast %cst_41 : f32 to vector<8x128xf32>
    %95 = arith.addf %94, %93 : vector<8x128xf32>
    %96 = arith.divf %94, %95 : vector<8x128xf32>
    %97 = vector.extract_strided_slice %84 {offsets = [0, 256], sizes = [8, 128], strides = [1, 1]} : vector<8x512xf32> to vector<8x128xf32>
    %98 = math.tanh %97 : vector<8x128xf32>
    %99 = vector.extract_strided_slice %84 {offsets = [0, 384], sizes = [8, 128], strides = [1, 1]} : vector<8x512xf32> to vector<8x128xf32>
    %100 = arith.negf %99 : vector<8x128xf32>
    %101 = math.exp %100 : vector<8x128xf32>
    %cst_42 = arith.constant 1.000000e+00 : f32
    %102 = vector.broadcast %cst_42 : f32 to vector<8x128xf32>
    %103 = arith.addf %102, %101 : vector<8x128xf32>
    %104 = arith.divf %102, %103 : vector<8x128xf32>
    %105 = arith.mulf %96, %75 : vector<8x128xf32>
    %106 = arith.mulf %90, %98 : vector<8x128xf32>
    %107 = arith.addf %105, %106 : vector<8x128xf32>
    %108 = math.tanh %107 : vector<8x128xf32>
    %109 = arith.mulf %104, %108 : vector<8x128xf32>
    %c2_43 = arith.constant 2 : index
    %c0_44 = arith.constant 0 : index
    %c0_45 = arith.constant 0 : index
    %110 = vector.load %arg14[%c2_43, %c0_44, %c0_45] : memref<4x8x128xf32, #tpu.memory_space<vmem>>, vector<1x8x128xf32>
    %111 = vector.shape_cast %110 : vector<1x8x128xf32> to vector<8x128xf32>
    %112 = vector.shape_cast %109 : vector<8x128xf32> to vector<1x8x128xf32>
    tpu.vector_store %arg14[%c2_43, %c0_44, %c0_45], %112 {strides = array<i32>} : memref<4x8x128xf32, #tpu.memory_space<vmem>>, vector<1x8x128xf32>,
    %c3 = arith.constant 3 : index
    %c0_46 = arith.constant 0 : index
    %c0_47 = arith.constant 0 : index
    %113 = vector.load %arg13[%c3, %c0_46, %c0_47] : memref<4x8x512xf32, #tpu.memory_space<vmem>>, vector<1x8x512xf32>
    %114 = vector.shape_cast %113 : vector<1x8x512xf32> to vector<8x512xf32>
    %cst_48 = arith.constant dense<0.000000e+00> : vector<8x512xf32>
    %115 = tpu.matmul %109, %16, %cst_48 {dimension_numbers = #tpu.dot_dimension_numbers<[1], [0], [0], [1], [0, 0, 1, 1], [], []>} : vector<8x128xf32>, vector<128x512xf32>, vector<8x512xf32> -> vector<8x512xf32>
    %116 = arith.addf %114, %115 : vector<8x512xf32>
    %117 = vector.extract_strided_slice %116 {offsets = [0, 0], sizes = [8, 128], strides = [1, 1]} : vector<8x512xf32> to vector<8x128xf32>
    %118 = arith.negf %117 : vector<8x128xf32>
    %119 = math.exp %118 : vector<8x128xf32>
    %cst_49 = arith.constant 1.000000e+00 : f32
    %120 = vector.broadcast %cst_49 : f32 to vector<8x128xf32>
    %121 = arith.addf %120, %119 : vector<8x128xf32>
    %122 = arith.divf %120, %121 : vector<8x128xf32>
    %123 = vector.extract_strided_slice %116 {offsets = [0, 128], sizes = [8, 128], strides = [1, 1]} : vector<8x512xf32> to vector<8x128xf32>
    %124 = arith.negf %123 : vector<8x128xf32>
    %125 = math.exp %124 : vector<8x128xf32>
    %cst_50 = arith.constant 1.000000e+00 : f32
    %126 = vector.broadcast %cst_50 : f32 to vector<8x128xf32>
    %127 = arith.addf %126, %125 : vector<8x128xf32>
    %128 = arith.divf %126, %127 : vector<8x128xf32>
    %129 = vector.extract_strided_slice %116 {offsets = [0, 256], sizes = [8, 128], strides = [1, 1]} : vector<8x512xf32> to vector<8x128xf32>
    %130 = math.tanh %129 : vector<8x128xf32>
    %131 = vector.extract_strided_slice %116 {offsets = [0, 384], sizes = [8, 128], strides = [1, 1]} : vector<8x512xf32> to vector<8x128xf32>
    %132 = arith.negf %131 : vector<8x128xf32>
    %133 = math.exp %132 : vector<8x128xf32>
    %cst_51 = arith.constant 1.000000e+00 : f32
    %134 = vector.broadcast %cst_51 : f32 to vector<8x128xf32>
    %135 = arith.addf %134, %133 : vector<8x128xf32>
    %136 = arith.divf %134, %135 : vector<8x128xf32>
    %137 = arith.mulf %128, %107 : vector<8x128xf32>
    %138 = arith.mulf %122, %130 : vector<8x128xf32>
    %139 = arith.addf %137, %138 : vector<8x128xf32>
    %140 = math.tanh %139 : vector<8x128xf32>
    %141 = arith.mulf %136, %140 : vector<8x128xf32>
    %c3_52 = arith.constant 3 : index
    %c0_53 = arith.constant 0 : index
    %c0_54 = arith.constant 0 : index
    %142 = vector.load %arg14[%c3_52, %c0_53, %c0_54] : memref<4x8x128xf32, #tpu.memory_space<vmem>>, vector<1x8x128xf32>
    %143 = vector.shape_cast %142 : vector<1x8x128xf32> to vector<8x128xf32>
    %144 = vector.shape_cast %141 : vector<8x128xf32> to vector<1x8x128xf32>
    tpu.vector_store %arg14[%c3_52, %c0_53, %c0_54], %144 {strides = array<i32>} : memref<4x8x128xf32, #tpu.memory_space<vmem>>, vector<1x8x128xf32>,
    %c0_55 = arith.constant 0 : index
    %c0_56 = arith.constant 0 : index
    %c0_57 = arith.constant 0 : index
    %145 = vector.load %arg15[%c0_55, %c0_56, %c0_57] : memref<2x8x128xf32, #tpu.memory_space<vmem>>, vector<1x8x128xf32>
    %146 = vector.shape_cast %145 : vector<1x8x128xf32> to vector<8x128xf32>
    %147 = vector.shape_cast %141 : vector<8x128xf32> to vector<1x8x128xf32>
    tpu.vector_store %arg15[%c0_55, %c0_56, %c0_57], %147 {strides = array<i32>} : memref<2x8x128xf32, #tpu.memory_space<vmem>>, vector<1x8x128xf32>,
    %c0_58 = arith.constant 0 : index
    %c0_59 = arith.constant 0 : index
    %c0_60 = arith.constant 0 : index
    %148 = vector.load %arg16[%c0_58, %c0_59, %c0_60] : memref<2x8x128xf32, #tpu.memory_space<vmem>>, vector<1x8x128xf32>
    %149 = vector.shape_cast %148 : vector<1x8x128xf32> to vector<8x128xf32>
    %150 = vector.shape_cast %139 : vector<8x128xf32> to vector<1x8x128xf32>
    tpu.vector_store %arg16[%c0_58, %c0_59, %c0_60], %150 {strides = array<i32>} : memref<2x8x128xf32, #tpu.memory_space<vmem>>, vector<1x8x128xf32>,
    %c0_61 = arith.constant 0 : index
    %c0_62 = arith.constant 0 : index
    %c0_63 = arith.constant 0 : index
    %151 = vector.load %arg14[%c0_61, %c0_62, %c0_63] : memref<4x8x128xf32, #tpu.memory_space<vmem>>, vector<4x8x128xf32>
    %152 = vector.shape_cast %151 : vector<4x8x128xf32> to vector<32x128xf32>
    %c0_64 = arith.constant 0 : index
    %c0_65 = arith.constant 0 : index
    %153 = vector.load %arg5[%c0_64, %c0_65] : memref<128x512xf32, #tpu.memory_space<vmem>>, vector<128x512xf32>
    %cst_66 = arith.constant dense<0.000000e+00> : vector<32x512xf32>
    %154 = tpu.matmul %152, %153, %cst_66 {dimension_numbers = #tpu.dot_dimension_numbers<[1], [0], [0], [1], [0, 0, 1, 1], [], []>} : vector<32x128xf32>, vector<128x512xf32>, vector<32x512xf32> -> vector<32x512xf32>
    %c0_67 = arith.constant 0 : index
    %c0_68 = arith.constant 0 : index
    %155 = vector.load %arg7[%c0_67, %c0_68] : memref<1x512xf32, #tpu.memory_space<vmem>>, vector<1x512xf32>
    %156 = vector.broadcast %155 : vector<1x512xf32> to vector<32x512xf32>
    %157 = arith.addf %154, %156 : vector<32x512xf32>
    %158 = vector.shape_cast %157 : vector<32x512xf32> to vector<4x8x512xf32>
    %c0_69 = arith.constant 0 : index
    %c0_70 = arith.constant 0 : index
    %c0_71 = arith.constant 0 : index
    %159 = vector.load %arg13[%c0_69, %c0_70, %c0_71] : memref<4x8x512xf32, #tpu.memory_space<vmem>>, vector<4x8x512xf32>
    tpu.vector_store %arg13[%c0_69, %c0_70, %c0_71], %158 {strides = array<i32>} : memref<4x8x512xf32, #tpu.memory_space<vmem>>, vector<4x8x512xf32>,
    %c1_72 = arith.constant 1 : index
    %c0_73 = arith.constant 0 : index
    %c0_74 = arith.constant 0 : index
    %160 = vector.load %arg15[%c1_72, %c0_73, %c0_74] : memref<2x8x128xf32, #tpu.memory_space<vmem>>, vector<1x8x128xf32>
    %161 = vector.shape_cast %160 : vector<1x8x128xf32> to vector<8x128xf32>
    %c1_75 = arith.constant 1 : index
    %c0_76 = arith.constant 0 : index
    %c0_77 = arith.constant 0 : index
    %162 = vector.load %arg16[%c1_75, %c0_76, %c0_77] : memref<2x8x128xf32, #tpu.memory_space<vmem>>, vector<1x8x128xf32>
    %163 = vector.shape_cast %162 : vector<1x8x128xf32> to vector<8x128xf32>
    %c0_78 = arith.constant 0 : index
    %c0_79 = arith.constant 0 : index
    %164 = vector.load %arg6[%c0_78, %c0_79] : memref<128x512xf32, #tpu.memory_space<vmem>>, vector<128x512xf32>
    %c0_80 = arith.constant 0 : index
    %c0_81 = arith.constant 0 : index
    %c0_82 = arith.constant 0 : index
    %165 = vector.load %arg13[%c0_80, %c0_81, %c0_82] : memref<4x8x512xf32, #tpu.memory_space<vmem>>, vector<1x8x512xf32>
    %166 = vector.shape_cast %165 : vector<1x8x512xf32> to vector<8x512xf32>
    %cst_83 = arith.constant dense<0.000000e+00> : vector<8x512xf32>
    %167 = tpu.matmul %161, %164, %cst_83 {dimension_numbers = #tpu.dot_dimension_numbers<[1], [0], [0], [1], [0, 0, 1, 1], [], []>} : vector<8x128xf32>, vector<128x512xf32>, vector<8x512xf32> -> vector<8x512xf32>
    %168 = arith.addf %166, %167 : vector<8x512xf32>
    %169 = vector.extract_strided_slice %168 {offsets = [0, 0], sizes = [8, 128], strides = [1, 1]} : vector<8x512xf32> to vector<8x128xf32>
    %170 = arith.negf %169 : vector<8x128xf32>
    %171 = math.exp %170 : vector<8x128xf32>
    %cst_84 = arith.constant 1.000000e+00 : f32
    %172 = vector.broadcast %cst_84 : f32 to vector<8x128xf32>
    %173 = arith.addf %172, %171 : vector<8x128xf32>
    %174 = arith.divf %172, %173 : vector<8x128xf32>
    %175 = vector.extract_strided_slice %168 {offsets = [0, 128], sizes = [8, 128], strides = [1, 1]} : vector<8x512xf32> to vector<8x128xf32>
    %176 = arith.negf %175 : vector<8x128xf32>
    %177 = math.exp %176 : vector<8x128xf32>
    %cst_85 = arith.constant 1.000000e+00 : f32
    %178 = vector.broadcast %cst_85 : f32 to vector<8x128xf32>
    %179 = arith.addf %178, %177 : vector<8x128xf32>
    %180 = arith.divf %178, %179 : vector<8x128xf32>
    %181 = vector.extract_strided_slice %168 {offsets = [0, 256], sizes = [8, 128], strides = [1, 1]} : vector<8x512xf32> to vector<8x128xf32>
    %182 = math.tanh %181 : vector<8x128xf32>
    %183 = vector.extract_strided_slice %168 {offsets = [0, 384], sizes = [8, 128], strides = [1, 1]} : vector<8x512xf32> to vector<8x128xf32>
    %184 = arith.negf %183 : vector<8x128xf32>
    %185 = math.exp %184 : vector<8x128xf32>
    %cst_86 = arith.constant 1.000000e+00 : f32
    %186 = vector.broadcast %cst_86 : f32 to vector<8x128xf32>
    %187 = arith.addf %186, %185 : vector<8x128xf32>
    %188 = arith.divf %186, %187 : vector<8x128xf32>
    %189 = arith.mulf %180, %163 : vector<8x128xf32>
    %190 = arith.mulf %174, %182 : vector<8x128xf32>
    %191 = arith.addf %189, %190 : vector<8x128xf32>
    %192 = math.tanh %191 : vector<8x128xf32>
    %193 = arith.mulf %188, %192 : vector<8x128xf32>
    %c1_87 = arith.constant 1 : index
    %c0_88 = arith.constant 0 : index
    %c0_89 = arith.constant 0 : index
    %194 = vector.load %arg13[%c1_87, %c0_88, %c0_89] : memref<4x8x512xf32, #tpu.memory_space<vmem>>, vector<1x8x512xf32>
    %195 = vector.shape_cast %194 : vector<1x8x512xf32> to vector<8x512xf32>
    %cst_90 = arith.constant dense<0.000000e+00> : vector<8x512xf32>
    %196 = tpu.matmul %193, %164, %cst_90 {dimension_numbers = #tpu.dot_dimension_numbers<[1], [0], [0], [1], [0, 0, 1, 1], [], []>} : vector<8x128xf32>, vector<128x512xf32>, vector<8x512xf32> -> vector<8x512xf32>
    %197 = arith.addf %195, %196 : vector<8x512xf32>
    %198 = vector.extract_strided_slice %197 {offsets = [0, 0], sizes = [8, 128], strides = [1, 1]} : vector<8x512xf32> to vector<8x128xf32>
    %199 = arith.negf %198 : vector<8x128xf32>
    %200 = math.exp %199 : vector<8x128xf32>
    %cst_91 = arith.constant 1.000000e+00 : f32
    %201 = vector.broadcast %cst_91 : f32 to vector<8x128xf32>
    %202 = arith.addf %201, %200 : vector<8x128xf32>
    %203 = arith.divf %201, %202 : vector<8x128xf32>
    %204 = vector.extract_strided_slice %197 {offsets = [0, 128], sizes = [8, 128], strides = [1, 1]} : vector<8x512xf32> to vector<8x128xf32>
    %205 = arith.negf %204 : vector<8x128xf32>
    %206 = math.exp %205 : vector<8x128xf32>
    %cst_92 = arith.constant 1.000000e+00 : f32
    %207 = vector.broadcast %cst_92 : f32 to vector<8x128xf32>
    %208 = arith.addf %207, %206 : vector<8x128xf32>
    %209 = arith.divf %207, %208 : vector<8x128xf32>
    %210 = vector.extract_strided_slice %197 {offsets = [0, 256], sizes = [8, 128], strides = [1, 1]} : vector<8x512xf32> to vector<8x128xf32>
    %211 = math.tanh %210 : vector<8x128xf32>
    %212 = vector.extract_strided_slice %197 {offsets = [0, 384], sizes = [8, 128], strides = [1, 1]} : vector<8x512xf32> to vector<8x128xf32>
    %213 = arith.negf %212 : vector<8x128xf32>
    %214 = math.exp %213 : vector<8x128xf32>
    %cst_93 = arith.constant 1.000000e+00 : f32
    %215 = vector.broadcast %cst_93 : f32 to vector<8x128xf32>
    %216 = arith.addf %215, %214 : vector<8x128xf32>
    %217 = arith.divf %215, %216 : vector<8x128xf32>
    %218 = arith.mulf %209, %191 : vector<8x128xf32>
    %219 = arith.mulf %203, %211 : vector<8x128xf32>
    %220 = arith.addf %218, %219 : vector<8x128xf32>
    %221 = math.tanh %220 : vector<8x128xf32>
    %222 = arith.mulf %217, %221 : vector<8x128xf32>
    %c2_94 = arith.constant 2 : index
    %c0_95 = arith.constant 0 : index
    %c0_96 = arith.constant 0 : index
    %223 = vector.load %arg13[%c2_94, %c0_95, %c0_96] : memref<4x8x512xf32, #tpu.memory_space<vmem>>, vector<1x8x512xf32>
    %224 = vector.shape_cast %223 : vector<1x8x512xf32> to vector<8x512xf32>
    %cst_97 = arith.constant dense<0.000000e+00> : vector<8x512xf32>
    %225 = tpu.matmul %222, %164, %cst_97 {dimension_numbers = #tpu.dot_dimension_numbers<[1], [0], [0], [1], [0, 0, 1, 1], [], []>} : vector<8x128xf32>, vector<128x512xf32>, vector<8x512xf32> -> vector<8x512xf32>
    %226 = arith.addf %224, %225 : vector<8x512xf32>
    %227 = vector.extract_strided_slice %226 {offsets = [0, 0], sizes = [8, 128], strides = [1, 1]} : vector<8x512xf32> to vector<8x128xf32>
    %228 = arith.negf %227 : vector<8x128xf32>
    %229 = math.exp %228 : vector<8x128xf32>
    %cst_98 = arith.constant 1.000000e+00 : f32
    %230 = vector.broadcast %cst_98 : f32 to vector<8x128xf32>
    %231 = arith.addf %230, %229 : vector<8x128xf32>
    %232 = arith.divf %230, %231 : vector<8x128xf32>
    %233 = vector.extract_strided_slice %226 {offsets = [0, 128], sizes = [8, 128], strides = [1, 1]} : vector<8x512xf32> to vector<8x128xf32>
    %234 = arith.negf %233 : vector<8x128xf32>
    %235 = math.exp %234 : vector<8x128xf32>
    %cst_99 = arith.constant 1.000000e+00 : f32
    %236 = vector.broadcast %cst_99 : f32 to vector<8x128xf32>
    %237 = arith.addf %236, %235 : vector<8x128xf32>
    %238 = arith.divf %236, %237 : vector<8x128xf32>
    %239 = vector.extract_strided_slice %226 {offsets = [0, 256], sizes = [8, 128], strides = [1, 1]} : vector<8x512xf32> to vector<8x128xf32>
    %240 = math.tanh %239 : vector<8x128xf32>
    %241 = vector.extract_strided_slice %226 {offsets = [0, 384], sizes = [8, 128], strides = [1, 1]} : vector<8x512xf32> to vector<8x128xf32>
    %242 = arith.negf %241 : vector<8x128xf32>
    %243 = math.exp %242 : vector<8x128xf32>
    %cst_100 = arith.constant 1.000000e+00 : f32
    %244 = vector.broadcast %cst_100 : f32 to vector<8x128xf32>
    %245 = arith.addf %244, %243 : vector<8x128xf32>
    %246 = arith.divf %244, %245 : vector<8x128xf32>
    %247 = arith.mulf %238, %220 : vector<8x128xf32>
    %248 = arith.mulf %232, %240 : vector<8x128xf32>
    %249 = arith.addf %247, %248 : vector<8x128xf32>
    %250 = math.tanh %249 : vector<8x128xf32>
    %251 = arith.mulf %246, %250 : vector<8x128xf32>
    %c3_101 = arith.constant 3 : index
    %c0_102 = arith.constant 0 : index
    %c0_103 = arith.constant 0 : index
    %252 = vector.load %arg13[%c3_101, %c0_102, %c0_103] : memref<4x8x512xf32, #tpu.memory_space<vmem>>, vector<1x8x512xf32>
    %253 = vector.shape_cast %252 : vector<1x8x512xf32> to vector<8x512xf32>
    %cst_104 = arith.constant dense<0.000000e+00> : vector<8x512xf32>
    %254 = tpu.matmul %251, %164, %cst_104 {dimension_numbers = #tpu.dot_dimension_numbers<[1], [0], [0], [1], [0, 0, 1, 1], [], []>} : vector<8x128xf32>, vector<128x512xf32>, vector<8x512xf32> -> vector<8x512xf32>
    %255 = arith.addf %253, %254 : vector<8x512xf32>
    %256 = vector.extract_strided_slice %255 {offsets = [0, 0], sizes = [8, 128], strides = [1, 1]} : vector<8x512xf32> to vector<8x128xf32>
    %257 = arith.negf %256 : vector<8x128xf32>
    %258 = math.exp %257 : vector<8x128xf32>
    %cst_105 = arith.constant 1.000000e+00 : f32
    %259 = vector.broadcast %cst_105 : f32 to vector<8x128xf32>
    %260 = arith.addf %259, %258 : vector<8x128xf32>
    %261 = arith.divf %259, %260 : vector<8x128xf32>
    %262 = vector.extract_strided_slice %255 {offsets = [0, 128], sizes = [8, 128], strides = [1, 1]} : vector<8x512xf32> to vector<8x128xf32>
    %263 = arith.negf %262 : vector<8x128xf32>
    %264 = math.exp %263 : vector<8x128xf32>
    %cst_106 = arith.constant 1.000000e+00 : f32
    %265 = vector.broadcast %cst_106 : f32 to vector<8x128xf32>
    %266 = arith.addf %265, %264 : vector<8x128xf32>
    %267 = arith.divf %265, %266 : vector<8x128xf32>
    %268 = vector.extract_strided_slice %255 {offsets = [0, 256], sizes = [8, 128], strides = [1, 1]} : vector<8x512xf32> to vector<8x128xf32>
    %269 = math.tanh %268 : vector<8x128xf32>
    %270 = vector.extract_strided_slice %255 {offsets = [0, 384], sizes = [8, 128], strides = [1, 1]} : vector<8x512xf32> to vector<8x128xf32>
    %271 = arith.negf %270 : vector<8x128xf32>
    %272 = math.exp %271 : vector<8x128xf32>
    %cst_107 = arith.constant 1.000000e+00 : f32
    %273 = vector.broadcast %cst_107 : f32 to vector<8x128xf32>
    %274 = arith.addf %273, %272 : vector<8x128xf32>
    %275 = arith.divf %273, %274 : vector<8x128xf32>
    %276 = arith.mulf %267, %249 : vector<8x128xf32>
    %277 = arith.mulf %261, %269 : vector<8x128xf32>
    %278 = arith.addf %276, %277 : vector<8x128xf32>
    %279 = math.tanh %278 : vector<8x128xf32>
    %280 = arith.mulf %275, %279 : vector<8x128xf32>
    %c1_108 = arith.constant 1 : index
    %c0_109 = arith.constant 0 : index
    %c0_110 = arith.constant 0 : index
    %281 = vector.load %arg15[%c1_108, %c0_109, %c0_110] : memref<2x8x128xf32, #tpu.memory_space<vmem>>, vector<1x8x128xf32>
    %282 = vector.shape_cast %281 : vector<1x8x128xf32> to vector<8x128xf32>
    %283 = vector.shape_cast %280 : vector<8x128xf32> to vector<1x8x128xf32>
    tpu.vector_store %arg15[%c1_108, %c0_109, %c0_110], %283 {strides = array<i32>} : memref<2x8x128xf32, #tpu.memory_space<vmem>>, vector<1x8x128xf32>,
    %c1_111 = arith.constant 1 : index
    %c0_112 = arith.constant 0 : index
    %c0_113 = arith.constant 0 : index
    %284 = vector.load %arg16[%c1_111, %c0_112, %c0_113] : memref<2x8x128xf32, #tpu.memory_space<vmem>>, vector<1x8x128xf32>
    %285 = vector.shape_cast %284 : vector<1x8x128xf32> to vector<8x128xf32>
    %286 = vector.shape_cast %278 : vector<8x128xf32> to vector<1x8x128xf32>
    tpu.vector_store %arg16[%c1_111, %c0_112, %c0_113], %286 {strides = array<i32>} : memref<2x8x128xf32, #tpu.memory_space<vmem>>, vector<1x8x128xf32>,
    %c1_i32 = arith.constant 1 : i32
    %287 = arith.cmpi eq, %arg0, %c1_i32 : i32
    %288 = arith.extui %287 : i1 to i32
    %c0_i32_114 = arith.constant 0 : i32
    %289 = arith.cmpi ne, %288, %c0_i32_114 : i32
    scf.if %289 {
      %c0_115 = arith.constant 0 : index
      %c0_116 = arith.constant 0 : index
      %290 = vector.load %arg8[%c0_115, %c0_116] : memref<128x256xf32, #tpu.memory_space<vmem>>, vector<128x256xf32>
      %cst_117 = arith.constant dense<0.000000e+00> : vector<8x256xf32>
      %291 = tpu.matmul %280, %290, %cst_117 {dimension_numbers = #tpu.dot_dimension_numbers<[1], [0], [0], [1], [0, 0, 1, 1], [], []>} : vector<8x128xf32>, vector<128x256xf32>, vector<8x256xf32> -> vector<8x256xf32>
      %c0_118 = arith.constant 0 : index
      %c0_119 = arith.constant 0 : index
      %292 = vector.load %arg9[%c0_118, %c0_119] : memref<1x256xf32, #tpu.memory_space<vmem>>, vector<1x256xf32>
      %293 = vector.broadcast %292 : vector<1x256xf32> to vector<8x256xf32>
      %294 = arith.addf %291, %293 : vector<8x256xf32>
      %c0_120 = arith.constant 0 : index
      %c0_121 = arith.constant 0 : index
      %295 = vector.load %arg10[%c0_120, %c0_121] : memref<256x128xf32, #tpu.memory_space<vmem>>, vector<256x128xf32>
      %cst_122 = arith.constant dense<0.000000e+00> : vector<8x128xf32>
      %296 = tpu.matmul %294, %295, %cst_122 {dimension_numbers = #tpu.dot_dimension_numbers<[1], [0], [0], [1], [0, 0, 1, 1], [], []>} : vector<8x256xf32>, vector<256x128xf32>, vector<8x128xf32> -> vector<8x128xf32>
      %c0_123 = arith.constant 0 : index
      %c0_124 = arith.constant 0 : index
      %297 = vector.load %arg11[%c0_123, %c0_124] : memref<1x128xf32, #tpu.memory_space<vmem>>, vector<1x128xf32>
      %298 = vector.broadcast %297 : vector<1x128xf32> to vector<8x128xf32>
      %299 = arith.addf %296, %298 : vector<8x128xf32>
      %c0_125 = arith.constant 0 : index
      %c0_126 = arith.constant 0 : index
      %300 = vector.load %arg12[%c0_125, %c0_126] : memref<8x128xf32, #tpu.memory_space<vmem>>, vector<8x128xf32>
      tpu.vector_store %arg12[%c0_125, %c0_126], %299 {strides = array<i32>} : memref<8x128xf32, #tpu.memory_space<vmem>>, vector<8x128xf32>,
    } else {
    }
    return
  }
  func.func @transform_0(%arg0: i32) -> (i32, i32, i32) {
    %c0_i32 = arith.constant 0 : i32
    %c0_i32_0 = arith.constant 0 : i32
    %c0_i32_1 = arith.constant 0 : i32
    return %arg0, %c0_i32, %c0_i32_0 : i32, i32, i32
  }
  func.func @transform_1(%arg0: i32) -> (i32, i32) {
    %c0_i32 = arith.constant 0 : i32
    %c0_i32_0 = arith.constant 0 : i32
    %c0_i32_1 = arith.constant 0 : i32
    return %c0_i32, %c0_i32_0 : i32, i32
  }
  func.func @transform_2(%arg0: i32) -> (i32, i32) {
    %c0_i32 = arith.constant 0 : i32
    %c0_i32_0 = arith.constant 0 : i32
    %c0_i32_1 = arith.constant 0 : i32
    return %c0_i32, %c0_i32_0 : i32, i32
  }
  func.func @transform_3(%arg0: i32) -> (i32, i32) {
    %c0_i32 = arith.constant 0 : i32
    %c0_i32_0 = arith.constant 0 : i32
    %c0_i32_1 = arith.constant 0 : i32
    return %c0_i32, %c0_i32_0 : i32, i32
  }
  func.func @transform_4(%arg0: i32) -> (i32, i32) {
    %c0_i32 = arith.constant 0 : i32
    %c0_i32_0 = arith.constant 0 : i32
    %c0_i32_1 = arith.constant 0 : i32
    return %c0_i32, %c0_i32_0 : i32, i32
  }
  func.func @transform_5(%arg0: i32) -> (i32, i32) {
    %c0_i32 = arith.constant 0 : i32
    %c0_i32_0 = arith.constant 0 : i32
    %c0_i32_1 = arith.constant 0 : i32
    return %c0_i32, %c0_i32_0 : i32, i32
  }
  func.func @transform_6(%arg0: i32) -> (i32, i32) {
    %c0_i32 = arith.constant 0 : i32
    %c0_i32_0 = arith.constant 0 : i32
    %c0_i32_1 = arith.constant 0 : i32
    return %c0_i32, %c0_i32_0 : i32, i32
  }
  func.func @transform_7(%arg0: i32) -> (i32, i32) {
    %c0_i32 = arith.constant 0 : i32
    %c0_i32_0 = arith.constant 0 : i32
    %c0_i32_1 = arith.constant 0 : i32
    return %c0_i32, %c0_i32_0 : i32, i32
  }
  func.func @transform_8(%arg0: i32) -> (i32, i32) {
    %c0_i32 = arith.constant 0 : i32
    %c0_i32_0 = arith.constant 0 : i32
    %c0_i32_1 = arith.constant 0 : i32
    return %c0_i32, %c0_i32_0 : i32, i32
  }
  func.func @transform_9(%arg0: i32) -> (i32, i32) {
    %c0_i32 = arith.constant 0 : i32
    %c0_i32_0 = arith.constant 0 : i32
    %c0_i32_1 = arith.constant 0 : i32
    return %c0_i32, %c0_i32_0 : i32, i32
  }
  func.func @transform_10(%arg0: i32) -> (i32, i32) {
    %c0_i32 = arith.constant 0 : i32
    %c0_i32_0 = arith.constant 0 : i32
    %c0_i32_1 = arith.constant 0 : i32
    return %c0_i32, %c0_i32_0 : i32, i32
  }
  func.func @transform_11(%arg0: i32) -> (i32, i32) {
    %c0_i32 = arith.constant 0 : i32
    %c0_i32_0 = arith.constant 0 : i32
    %c0_i32_1 = arith.constant 0 : i32
    return %c0_i32, %c0_i32_0 : i32, i32
  }
}

</mosaic_0001>

<bundles_post_ra>
// kernel: lstm_net_forward.1
= control target key start
LH: loop header
LB: loop body
LE: loop exit
PB: predicated region body
PF: predicated region fallthrough
CT: control target
= control target key end

     0   :  { %s3027_s17 = smov 0   ;;  %s4989_s0 = inlined_call_operand.vmem [shape: f32[8,8,128], index: 0, kind: input, shape index: {}]   ;;  %s4990_s1 = inlined_call_operand.vmem [shape: f32[128,512], index: 1, kind: input, shape index: {}]   ;;  %s4991_s2 = inlined_call_operand.vmem [shape: f32[128,512], index: 2, kind: input, shape index: {}]   ;;  %s4992_s3 = inlined_call_operand.vmem [shape: f32[1,512], index: 3, kind: input, shape index: {}]   ;;  %s4993_s4 = inlined_call_operand.vmem [shape: f32[128,512], index: 4, kind: input, shape index: {}]   ;;  %s4994_s5 = inlined_call_operand.vmem [shape: f32[128,512], index: 5, kind: input, shape index: {}]   ;;  %s4995_s6 = inlined_call_operand.vmem [shape: f32[1,512], index: 6, kind: input, shape index: {}]   ;;  %s4996_s7 = inlined_call_operand.vmem [shape: f32[128,256], index: 7, kind: input, shape index: {}]   ;;  %s4997_s8 = inlined_call_operand.vmem [shape: f32[1,256], index: 8, kind: input, shape index: {}]   ;;  %s4998_s9 = inlined_call_operand.vmem [shape: f32[256,128], index: 9, kind: input, shape index: {}]   ;;  %s4999_s10 = inlined_call_operand.vmem [shape: f32[1,128], index: 10, kind: input, shape index: {}]   ;;  %s5000_s11 = inlined_call_operand.vmem [shape: f32[8,128], index: 11, kind: output, shape index: {}]  }
   0x1 LB: > { %s3033_s18 = sadd.s32 4294967295, %s2962_s17   ;;  %p2750_p0 = scmp.ge.s32.totalorder %s2962_s17, 1  ;;  %s2962_s17 = sphi %s3027_s17, %s21_s17  }
   0x2   : > { %p333_p1 = scmp.lt.s32.totalorder %s2962_s17, 3 }
   0x4   : > { %p334_p2 = pnand %p2750_p0, %p333_p1 }
   0x6   : > { %337 = sbr.rel (%p334_p2) target bundleno = 2523 (0x9db), region = 64 }
   0xb   : > { %s2751_s19 = sshll.u32 %s3033_s18, 2  ;;  %p2753_p4 = scmp.ne.s32.totalorder %s3033_s18, 0 }
   0xc   : > { %p369_p3 = scmp.lt.s32.totalorder %s2751_s19, 7 }
   0xd   : > { %377 = sbr.rel (%p2753_p4) target bundleno = 21 (0x15), region = 68 }
   0xe   : > { %s5341_s19 = smov (!%p369_p3, %s2751_s19), 7 }
   0xf   : > { %s2752_s20 = sshll.u32 %s5341_s19, 3 }
  0x10   : > { %s3041_s23 = scalar_lea.vmem %s4989_s0, %s2752_s20 }
  0x12   : > { %v2964_v0 = vmov 0.0  }
  0x13   : > { %378 = vst [vmem:[#allocation4] sm:$0xff] %v2964_v0  ;;  %379 = vst [vmem:[#allocation4 + $0x8] sm:$0xff] %v2964_v0 }
  0x14   : > { %380 = vst [vmem:[#allocation5 + $0x8] sm:$0xff] %v2964_v0  ;;  %381 = vst [vmem:[#allocation5] sm:$0xff] %v2964_v0 }
  0x15 PF: > { %v447_v1 = vld [vmem:[%s4990_s1 + $0x1e8] sm:$0xff]  ;;  %v449_v2 = vld [vmem:[%s4990_s1 + $0x1f8] sm:$0xff]  ;;  %v446_v3 = vld [vmem:[%s4990_s1 + $0x1e0] sm:$0xff]  ;;  %p2778_p5 = scmp.ne.s32.totalorder %s3033_s18, 1 }
  0x16   : > { %472 = vmatprep.subr.mxu0 %v447_v1  ;;  %561 = vmatprep.subr.mxu1 %v449_v2  ;;  %v448_v4 = vld [vmem:[%s4990_s1 + $0x1f0] sm:$0xff]  ;;  %v443_v5 = vld [vmem:[%s4990_s1 + $0x1c8] sm:$0xff]  ;;  %v445_v6 = vld [vmem:[%s4990_s1 + $0x1d8] sm:$0xff] }
  0x17   : > { %473 = vmatpush1.msra.mxu0 %v446_v3  ;;  %562 = vmatpush1.msra.mxu1 %v448_v4  ;;  %v442_v7 = vld [vmem:[%s4990_s1 + $0x1c0] sm:$0xff]  ;;  %v444_v8 = vld [vmem:[%s4990_s1 + $0x1d0] sm:$0xff]  ;;  %v439_v9 = vld [vmem:[%s4990_s1 + $0x1a8] sm:$0xff]  ;;  %v5001_v3 = vmov 0.0  }
  0x18   : > { %474 = vmatprep.subr.mxu0 %v443_v5  ;;  %563 = vmatprep.subr.mxu1 %v445_v6  ;;  %v441_v10 = vld [vmem:[%s4990_s1 + $0x1b8] sm:$0xff]  ;;  %v438_v11 = vld [vmem:[%s4990_s1 + $0x1a0] sm:$0xff]  ;;  %v440_v12 = vld [vmem:[%s4990_s1 + $0x1b0] sm:$0xff] }
  0x19   : > { %475 = vmatpush1.msra.mxu0 %v442_v7  ;;  %564 = vmatpush1.msra.mxu1 %v444_v8  ;;  %v435_v13 = vld [vmem:[%s4990_s1 + $0x188] sm:$0xff]  ;;  %v437_v14 = vld [vmem:[%s4990_s1 + $0x198] sm:$0xff]  ;;  %v434_v15 = vld [vmem:[%s4990_s1 + $0x180] sm:$0xff] }
  0x1a   : > { %476 = vmatprep.subr.mxu0 %v439_v9  ;;  %565 = vmatprep.subr.mxu1 %v441_v10  ;;  %v436_v16 = vld [vmem:[%s4990_s1 + $0x190] sm:$0xff]  ;;  %v431_v17 = vld [vmem:[%s4990_s1 + $0x168] sm:$0xff]  ;;  %v433_v18 = vld [vmem:[%s4990_s1 + $0x178] sm:$0xff] }
  0x1b   : > { %477 = vmatpush1.msra.mxu0 %v438_v11  ;;  %566 = vmatpush1.msra.mxu1 %v440_v12  ;;  %v430_v19 = vld [vmem:[%s4990_s1 + $0x160] sm:$0xff]  ;;  %v432_v20 = vld [vmem:[%s4990_s1 + $0x170] sm:$0xff]  ;;  %v427_v21 = vld [vmem:[%s4990_s1 + $0x148] sm:$0xff] }
  0x1c   : > { %478 = vmatprep.subr.mxu0 %v435_v13  ;;  %567 = vmatprep.subr.mxu1 %v437_v14  ;;  %v429_v22 = vld [vmem:[%s4990_s1 + $0x158] sm:$0xff]  ;;  %v426_v23 = vld [vmem:[%s4990_s1 + $0x140] sm:$0xff]  ;;  %v428_v24 = vld [vmem:[%s4990_s1 + $0x150] sm:$0xff] }
  0x1d   : > { %479 = vmatpush1.msra.mxu0 %v434_v15  ;;  %568 = vmatpush1.msra.mxu1 %v436_v16  ;;  %v423_v25 = vld [vmem:[%s4990_s1 + $0x128] sm:$0xff]  ;;  %v425_v26 = vld [vmem:[%s4990_s1 + $0x138] sm:$0xff]  ;;  %v422_v27 = vld [vmem:[%s4990_s1 + $0x120] sm:$0xff] }
  0x1e   : > { %480 = vmatprep.subr.mxu0 %v431_v17  ;;  %569 = vmatprep.subr.mxu1 %v433_v18  ;;  %v424_v28 = vld [vmem:[%s4990_s1 + $0x130] sm:$0xff]  ;;  %v419_v29 = vld [vmem:[%s4990_s1 + $0x108] sm:$0xff]  ;;  %v421_v30 = vld [vmem:[%s4990_s1 + $0x118] sm:$0xff] }
  0x1f   : > { %481 = vmatpush1.msra.mxu0 %v430_v19  ;;  %570 = vmatpush1.msra.mxu1 %v432_v20  ;;  %v418_v31 = vld [vmem:[%s4990_s1 + $0x100] sm:$0xff]  ;;  %v420_v32 = vld [vmem:[%s4990_s1 + $0x110] sm:$0xff]  ;;  %v415_v33 = vld [vmem:[%s4990_s1 + $0xe8] sm:$0xff] }
  0x20   : > { %482 = vmatprep.subr.mxu0 %v427_v21  ;;  %571 = vmatprep.subr.mxu1 %v429_v22  ;;  %v417_v34 = vld [vmem:[%s4990_s1 + $0xf8] sm:$0xff]  ;;  %v414_v35 = vld [vmem:[%s4990_s1 + $0xe0] sm:$0xff]  ;;  %v416_v36 = vld [vmem:[%s4990_s1 + $0xf0] sm:$0xff] }
  0x21   : > { %483 = vmatpush1.msra.mxu0 %v426_v23  ;;  %572 = vmatpush1.msra.mxu1 %v428_v24  ;;  %v411_v37 = vld [vmem:[%s4990_s1 + $0xc8] sm:$0xff]  ;;  %v413_v38 = vld [vmem:[%s4990_s1 + $0xd8] sm:$0xff]  ;;  %v410_v39 = vld [vmem:[%s4990_s1 + $0xc0] sm:$0xff] }
  0x22   : > { %484 = vmatprep.subr.mxu0 %v423_v25  ;;  %573 = vmatprep.subr.mxu1 %v425_v26  ;;  %v412_v40 = vld [vmem:[%s4990_s1 + $0xd0] sm:$0xff]  ;;  %v407_v41 = vld [vmem:[%s4990_s1 + $0xa8] sm:$0xff]  ;;  %v409_v42 = vld [vmem:[%s4990_s1 + $0xb8] sm:$0xff] }
  0x23   : > { %485 = vmatpush1.msra.mxu0 %v422_v27  ;;  %574 = vmatpush1.msra.mxu1 %v424_v28  ;;  %v406_v43 = vld [vmem:[%s4990_s1 + $0xa0] sm:$0xff]  ;;  %v408_v44 = vld [vmem:[%s4990_s1 + $0xb0] sm:$0xff]  ;;  %v403_v45 = vld [vmem:[%s4990_s1 + $0x88] sm:$0xff] }
  0x24   : > { %486 = vmatprep.subr.mxu0 %v419_v29  ;;  %575 = vmatprep.subr.mxu1 %v421_v30  ;;  %v405_v46 = vld [vmem:[%s4990_s1 + $0x98] sm:$0xff]  ;;  %v402_v47 = vld [vmem:[%s4990_s1 + $0x80] sm:$0xff]  ;;  %v404_v48 = vld [vmem:[%s4990_s1 + $0x90] sm:$0xff] }
  0x25   : > { %487 = vmatpush1.msra.mxu0 %v418_v31  ;;  %576 = vmatpush1.msra.mxu1 %v420_v32  ;;  %v399_v49 = vld [vmem:[%s4990_s1 + $0x68] sm:$0xff]  ;;  %v401_v50 = vld [vmem:[%s4990_s1 + $0x78] sm:$0xff]  ;;  %v398_v51 = vld [vmem:[%s4990_s1 + $0x60] sm:$0xff] }
  0x26   : > { %488 = vmatprep.subr.mxu0 %v415_v33  ;;  %577 = vmatprep.subr.mxu1 %v417_v34  ;;  %v400_v52 = vld [vmem:[%s4990_s1 + $0x70] sm:$0xff]  ;;  %v395_v53 = vld [vmem:[%s4990_s1 + $0x48] sm:$0xff]  ;;  %v397_v54 = vld [vmem:[%s4990_s1 + $0x58] sm:$0xff] }
  0x27   : > { %489 = vmatpush1.msra.mxu0 %v414_v35  ;;  %578 = vmatpush1.msra.mxu1 %v416_v36  ;;  %v394_v55 = vld [vmem:[%s4990_s1 + $0x40] sm:$0xff]  ;;  %v396_v56 = vld [vmem:[%s4990_s1 + $0x50] sm:$0xff]  ;;  %v391_v57 = vld [vmem:[%s4990_s1 + $0x28] sm:$0xff] }
  0x28   : > { %490 = vmatprep.subr.mxu0 %v411_v37  ;;  %579 = vmatprep.subr.mxu1 %v413_v38  ;;  %v393_v58 = vld [vmem:[%s4990_s1 + $0x38] sm:$0xff]  ;;  %v390_v59 = vld [vmem:[%s4990_s1 + $0x20] sm:$0xff]  ;;  %v392_v60 = vld [vmem:[%s4990_s1 + $0x30] sm:$0xff] }
  0x29   : > { %491 = vmatpush1.msra.mxu0 %v410_v39  ;;  %580 = vmatpush1.msra.mxu1 %v412_v40  ;;  %v387_v61 = vld [vmem:[%s4990_s1 + $0x8] sm:$0xff]  ;;  %v389_v62 = vld [vmem:[%s4990_s1 + $0x18] sm:$0xff]  ;;  %v386_v63 = vld [vmem:[%s4990_s1] sm:$0xff] }
  0x2a   : > { %492 = vmatprep.subr.mxu0 %v407_v41  ;;  %581 = vmatprep.subr.mxu1 %v409_v42  ;;  %v388_v0 = vld [vmem:[%s4990_s1 + $0x10] sm:$0xff]  ;;  %v382_v1 = vld [vmem:[%s3041_s23] sm:$0xff]  ;;  %v3240_v2 = vld [vmem:[%s4991_s2 + $0x1e8] sm:$0xff] }
  0x2b   : > { %493 = vmatpush1.msra.mxu0 %v406_v43  ;;  %582 = vmatpush1.msra.mxu1 %v408_v44  ;;  %5114 = vst [vmem:[#allocation6_spill] sm:$0xff] %v3240_v2  ;;  %v3246_v4 = vld [vmem:[%s4991_s2 + $0x1f8] sm:$0xff]  ;;  %v3251_v5 = vld [vmem:[%s4991_s2 + $0x1e0] sm:$0xff]  ;;  %v3256_v6 = vld [vmem:[%s4991_s2 + $0x1f0] sm:$0xff] }
  0x2c   : > { %494 = vmatprep.subr.mxu0 %v403_v45  ;;  %583 = vmatprep.subr.mxu1 %v405_v46  ;;  %5115 = vst [vmem:[#allocation7_spill] sm:$0xff] %v3246_v4  ;;  %v3263_v7 = vld [vmem:[%s4991_s2 + $0x1c8] sm:$0xff]  ;;  %v3268_v8 = vld [vmem:[%s4991_s2 + $0x1d8] sm:$0xff]  ;;  %v3274_v9 = vld [vmem:[%s4991_s2 + $0x1c0] sm:$0xff] }
  0x2d   : > { %495 = vmatpush1.msra.mxu0 %v402_v47  ;;  %584 = vmatpush1.msra.mxu1 %v404_v48  ;;  %v3279_v10 = vld [vmem:[%s4991_s2 + $0x1d0] sm:$0xff]  ;;  %v3286_v11 = vld [vmem:[%s4991_s2 + $0x1a8] sm:$0xff]  ;;  %v3291_v12 = vld [vmem:[%s4991_s2 + $0x1b8] sm:$0xff] }
  0x2e   : > { %496 = vmatprep.subr.mxu0 %v399_v49  ;;  %585 = vmatprep.subr.mxu1 %v401_v50  ;;  %v3298_v13 = vld [vmem:[%s4991_s2 + $0x1a0] sm:$0xff]  ;;  %v3303_v14 = vld [vmem:[%s4991_s2 + $0x1b0] sm:$0xff]  ;;  %v3310_v15 = vld [vmem:[%s4991_s2 + $0x188] sm:$0xff] }
  0x2f   : > { %497 = vmatpush1.msra.mxu0 %v398_v51  ;;  %586 = vmatpush1.msra.mxu1 %v400_v52  ;;  %v3315_v16 = vld [vmem:[%s4991_s2 + $0x198] sm:$0xff]  ;;  %v3322_v17 = vld [vmem:[%s4991_s2 + $0x180] sm:$0xff]  ;;  %v3327_v18 = vld [vmem:[%s4991_s2 + $0x190] sm:$0xff] }
  0x30   : > { %498 = vmatprep.subr.mxu0 %v395_v53  ;;  %587 = vmatprep.subr.mxu1 %v397_v54  ;;  %v3334_v19 = vld [vmem:[%s4991_s2 + $0x168] sm:$0xff]  ;;  %v3339_v20 = vld [vmem:[%s4991_s2 + $0x178] sm:$0xff]  ;;  %v3346_v21 = vld [vmem:[%s4991_s2 + $0x160] sm:$0xff] }
  0x31   : > { %499 = vmatpush1.msra.mxu0 %v394_v55  ;;  %588 = vmatpush1.msra.mxu1 %v396_v56  ;;  %v3351_v22 = vld [vmem:[%s4991_s2 + $0x170] sm:$0xff]  ;;  %v3358_v23 = vld [vmem:[%s4991_s2 + $0x148] sm:$0xff]  ;;  %v3363_v24 = vld [vmem:[%s4991_s2 + $0x158] sm:$0xff] }
  0x32   : > { %500 = vmatprep.subr.mxu0 %v391_v57  ;;  %589 = vmatprep.subr.mxu1 %v393_v58  ;;  %v3370_v25 = vld [vmem:[%s4991_s2 + $0x140] sm:$0xff]  ;;  %v3375_v26 = vld [vmem:[%s4991_s2 + $0x150] sm:$0xff]  ;;  %v3382_v27 = vld [vmem:[%s4991_s2 + $0x128] sm:$0xff] }
  0x33   : > { %501 = vmatpush1.msra.mxu0 %v390_v59  ;;  %590 = vmatpush1.msra.mxu1 %v392_v60  ;;  %v3387_v28 = vld [vmem:[%s4991_s2 + $0x138] sm:$0xff]  ;;  %v3394_v29 = vld [vmem:[%s4991_s2 + $0x120] sm:$0xff]  ;;  %v3399_v30 = vld [vmem:[%s4991_s2 + $0x130] sm:$0xff] }
  0x34   : > { %502 = vmatprep.subr.mxu0 %v387_v61  ;;  %591 = vmatprep.subr.mxu1 %v389_v62  ;;  %v3406_v31 = vld [vmem:[%s4991_s2 + $0x108] sm:$0xff]  ;;  %v3411_v32 = vld [vmem:[%s4991_s2 + $0x118] sm:$0xff]  ;;  %v3418_v33 = vld [vmem:[%s4991_s2 + $0x100] sm:$0xff] }
  0x35   : > { %503 = vmatpush1.msra.mxu0 %v386_v63  ;;  %536 = vmatprep.mubr.f32.mxu0 %v5001_v3  ;;  %v3423_v34 = vld [vmem:[%s4991_s2 + $0x110] sm:$0xff]  ;;  %v3430_v35 = vld [vmem:[%s4991_s2 + $0xe8] sm:$0xff]  ;;  %v3435_v36 = vld [vmem:[%s4991_s2 + $0xf8] sm:$0xff] }
  0x36   : > { %592 = vmatpush1.msra.mxu1 %v388_v0  ;;  %537 = vmatmul.mubr.f32.vlgmr.msra.gmra.mxu0 %v382_v1  ;;  %v3442_v37 = vld [vmem:[%s4991_s2 + $0xe0] sm:$0xff]  ;;  %v3449_v38 = vld [vmem:[%s4991_s2 + $0xf0] sm:$0xff]  ;;  %v383_v39 = vld [vmem:[%s3041_s23 + $0x8] sm:$0xff] }
  0x37   : > { %625 = vmatprep.mubr.f32.mxu1 %v5001_v3  ;;  %736 = vmatprep.subr.mxu0 %v3240_v2  ;;  %v3457_v40 = vld [vmem:[%s4991_s2 + $0xc8] sm:$0xff]  ;;  %v3462_v41 = vld [vmem:[%s4991_s2 + $0xd8] sm:$0xff]  ;;  %v3469_v42 = vld [vmem:[%s4991_s2 + $0xc0] sm:$0xff] }
  0x38   : > { %807 = vmatprep.subr.mxu1 %v3246_v4  ;;  %626 = vmatmul.mubr.f32.vlgmr.msra.gmra.mxu1 %v382_v1  ;;  %v3475_v43 = vld [vmem:[%s4991_s2 + $0xd0] sm:$0xff]  ;;  %v3480_v44 = vld [vmem:[%s4991_s2 + $0xa8] sm:$0xff]  ;;  %v3487_v45 = vld [vmem:[%s4991_s2 + $0xb8] sm:$0xff] }
  0x39   : > { %737 = vmatpush1.msra.mxu0 %v3251_v5  ;;  %808 = vmatpush1.msra.mxu1 %v3256_v6  ;;  %5116 = vst [vmem:[#allocation8_spill] sm:$0xff] %v3480_v44  ;;  %5117 = vst [vmem:[#allocation9_spill] sm:$0xff] %v3487_v45  ;;  %v3494_v46 = vld [vmem:[%s4991_s2 + $0xa0] sm:$0xff]  ;;  %v3501_v47 = vld [vmem:[%s4991_s2 + $0xb0] sm:$0xff] }
  0x3a   : > { %738 = vmatprep.subr.mxu0 %v3263_v7  ;;  %809 = vmatprep.subr.mxu1 %v3268_v8  ;;  %5118 = vst [vmem:[#allocation10_spill] sm:$0xff] %v3494_v46  ;;  %5119 = vst [vmem:[#allocation11_spill] sm:$0xff] %v3501_v47  ;;  %v384_v48 = vld [vmem:[%s3041_s23 + $0x10] sm:$0xff]  ;;  %v3508_v49 = vld [vmem:[%s4991_s2 + $0x88] sm:$0xff] }
  0x3b   : > { %739 = vmatpush1.msra.mxu0 %v3274_v9  ;;  %810 = vmatpush1.msra.mxu1 %v3279_v10  ;;  %5120 = vst [vmem:[#allocation12_spill] sm:$0xff] %v3508_v49  ;;  %v3513_v50 = vld [vmem:[%s4991_s2 + $0x98] sm:$0xff]  ;;  %v3520_v51 = vld [vmem:[%s4991_s2 + $0x80] sm:$0xff]  ;;  %v3526_v52 = vld [vmem:[%s4991_s2 + $0x90] sm:$0xff] }
  0x3c   : > { %740 = vmatprep.subr.mxu0 %v3286_v11  ;;  %811 = vmatprep.subr.mxu1 %v3291_v12  ;;  %5121 = vst [vmem:[#allocation13_spill] sm:$0xff] %v3513_v50  ;;  %5122 = vst [vmem:[#allocation14_spill] sm:$0xff] %v3520_v51  ;;  %v3531_v53 = vld [vmem:[%s4991_s2 + $0x68] sm:$0xff]  ;;  %v3538_v54 = vld [vmem:[%s4991_s2 + $0x78] sm:$0xff] }
  0x3d   : > { %741 = vmatpush1.msra.mxu0 %v3298_v13  ;;  %812 = vmatpush1.msra.mxu1 %v3303_v14  ;;  %5123 = vst [vmem:[#allocation15_spill] sm:$0xff] %v3526_v52  ;;  %5124 = vst [vmem:[#allocation16_spill] sm:$0xff] %v3531_v53  ;;  %v3545_v55 = vld [vmem:[%s4991_s2 + $0x60] sm:$0xff]  ;;  %v3552_v56 = vld [vmem:[%s4991_s2 + $0x70] sm:$0xff] }
  0x3e   : > { %742 = vmatprep.subr.mxu0 %v3310_v15  ;;  %813 = vmatprep.subr.mxu1 %v3315_v16  ;;  %5125 = vst [vmem:[#allocation17_spill] sm:$0xff] %v3538_v54  ;;  %5126 = vst [vmem:[#allocation18_spill] sm:$0xff] %v3545_v55  ;;  %v385_v57 = vld [vmem:[%s3041_s23 + $0x18] sm:$0xff]  ;;  %v3559_v58 = vld [vmem:[%s4991_s2 + $0x48] sm:$0xff] }
  0x3f   : > { %743 = vmatpush1.msra.mxu0 %v3322_v17  ;;  %814 = vmatpush1.msra.mxu1 %v3327_v18  ;;  %5127 = vst [vmem:[#allocation19_spill] sm:$0xff] %v3552_v56  ;;  %5128 = vst [vmem:[#allocation20_spill] sm:$0xff] %v3559_v58  ;;  %v3564_v59 = vld [vmem:[%s4991_s2 + $0x58] sm:$0xff]  ;;  %v3571_v60 = vld [vmem:[%s4991_s2 + $0x40] sm:$0xff] }
  0x40   : > { %744 = vmatprep.subr.mxu0 %v3334_v19  ;;  %815 = vmatprep.subr.mxu1 %v3339_v20  ;;  %5129 = vst [vmem:[#allocation21_spill] sm:$0xff] %v3564_v59  ;;  %5130 = vst [vmem:[#allocation22_spill] sm:$0xff] %v3571_v60  ;;  %v3577_v61 = vld [vmem:[%s4991_s2 + $0x50] sm:$0xff]  ;;  %v3582_v62 = vld [vmem:[%s4991_s2 + $0x28] sm:$0xff] }
  0x41   : > { %745 = vmatpush1.msra.mxu0 %v3346_v21  ;;  %816 = vmatpush1.msra.mxu1 %v3351_v22  ;;  %5131 = vst [vmem:[#allocation23_spill] sm:$0xff] %v3577_v61  ;;  %5132 = vst [vmem:[#allocation24_spill] sm:$0xff] %v3582_v62  ;;  %v3589_v63 = vld [vmem:[%s4991_s2 + $0x38] sm:$0xff]  ;;  %v3596_v0 = vld [vmem:[%s4991_s2 + $0x20] sm:$0xff] }
  0x42   : > { %746 = vmatprep.subr.mxu0 %v3358_v23  ;;  %817 = vmatprep.subr.mxu1 %v3363_v24  ;;  %5133 = vst [vmem:[#allocation25_spill] sm:$0xff] %v3589_v63  ;;  %5134 = vst [vmem:[#allocation26_spill] sm:$0xff] %v3596_v0  ;;  %v3601_v1 = vld [vmem:[%s4991_s2 + $0x30] sm:$0xff] }
  0x43   : > { %747 = vmatpush1.msra.mxu0 %v3370_v25  ;;  %818 = vmatpush1.msra.mxu1 %v3375_v26  ;;  %5135 = vst [vmem:[#allocation27_spill] sm:$0xff] %v3601_v1 }
  0x44   : > { %748 = vmatprep.subr.mxu0 %v3382_v27  ;;  %819 = vmatprep.subr.mxu1 %v3387_v28 }
  0x45   : > { %749 = vmatpush1.msra.mxu0 %v3394_v29  ;;  %820 = vmatpush1.msra.mxu1 %v3399_v30 }
  0x46   : > { %750 = vmatprep.subr.mxu0 %v3406_v31  ;;  %821 = vmatprep.subr.mxu1 %v3411_v32 }
  0x47   : > { %751 = vmatpush1.msra.mxu0 %v3418_v33  ;;  %822 = vmatpush1.msra.mxu1 %v3423_v34 }
  0x48   : > { %752 = vmatprep.subr.mxu0 %v3430_v35  ;;  %823 = vmatprep.subr.mxu1 %v3435_v36 }
  0x49   : > { %542 = vmatprep.mubr.f32.mxu0 %v5001_v3  ;;  %753 = vmatpush1.msra.mxu0 %v3442_v37 }
  0x4a   : > { %824 = vmatpush1.msra.mxu1 %v3449_v38  ;;  %543 = vmatmul.mubr.f32.gmra.mxu0 %v383_v39 }
  0x4b   : > { %754 = vmatprep.subr.mxu0 %v3457_v40  ;;  %825 = vmatprep.subr.mxu1 %v3462_v41 }
  0x4c   : > { %631 = vmatprep.mubr.f32.mxu1 %v5001_v3  ;;  %755 = vmatpush1.msra.mxu0 %v3469_v42 }
  0x4d   : > { %826 = vmatpush1.msra.mxu1 %v3475_v43  ;;  %756 = vmatprep.subr.mxu0 %v3480_v44 }
  0x4e   : > { %632 = vmatmul.mubr.f32.gmra.mxu1 %v383_v39  ;;  %827 = vmatprep.subr.mxu1 %v3487_v45  ;;  %v3608_v39 = vld [vmem:[%s4991_s2 + $0x8] sm:$0xff] }
  0x4f   : > { %548 = vmatprep.mubr.f32.mxu0 %v5001_v3  ;;  %757 = vmatpush1.msra.mxu0 %v3494_v46  ;;  %5136 = vst [vmem:[#allocation28_spill] sm:$0xff] %v3608_v39 }
  0x50   : > { %828 = vmatpush1.msra.mxu1 %v3501_v47  ;;  %549 = vmatmul.mubr.f32.gmra.mxu0 %v384_v48 }
  0x51   : > { %758 = vmatprep.subr.mxu0 %v3508_v49  ;;  %829 = vmatprep.subr.mxu1 %v3513_v50 }
  0x52   : > { %637 = vmatprep.mubr.f32.mxu1 %v5001_v3  ;;  %759 = vmatpush1.msra.mxu0 %v3520_v51 }
  0x53   : > { %830 = vmatpush1.msra.mxu1 %v3526_v52  ;;  %760 = vmatprep.subr.mxu0 %v3531_v53 }
  0x54   : > { %638 = vmatmul.mubr.f32.gmra.mxu1 %v384_v48  ;;  %831 = vmatprep.subr.mxu1 %v3538_v54  ;;  %v3613_v48 = vld [vmem:[%s4991_s2 + $0x18] sm:$0xff] }
  0x55   : > { %554 = vmatprep.mubr.f32.mxu0 %v5001_v3  ;;  %761 = vmatpush1.msra.mxu0 %v3545_v55  ;;  %5137 = vst [vmem:[#allocation29_spill] sm:$0xff] %v3613_v48 }
  0x56   : > { %832 = vmatpush1.msra.mxu1 %v3552_v56  ;;  %555 = vmatmul.mubr.f32.gmra.mxu0 %v385_v57 }
  0x57   : > { %762 = vmatprep.subr.mxu0 %v3559_v58  ;;  %833 = vmatprep.subr.mxu1 %v3564_v59 }
  0x58   : > { %643 = vmatprep.mubr.f32.mxu1 %v5001_v3  ;;  %763 = vmatpush1.msra.mxu0 %v3571_v60  ;;  %v3619_v3 = vld [vmem:[%s4991_s2] sm:$0xff] }
  0x59   : > { %834 = vmatpush1.msra.mxu1 %v3577_v61  ;;  %764 = vmatprep.subr.mxu0 %v3582_v62  ;;  %5138 = vst [vmem:[#allocation30_spill] sm:$0xff] %v3619_v3  ;;  %v3626_v62 = vld [vmem:[%s4991_s2 + $0x10] sm:$0xff] }
  0x5a   : > { %644 = vmatmul.mubr.f32.gmra.mxu1 %v385_v57  ;;  %835 = vmatprep.subr.mxu1 %v3589_v63  ;;  %5139 = vst [vmem:[#allocation31_spill] sm:$0xff] %v3626_v62  ;;  %v666_v57 = vld [vmem:[#allocation4] sm:$0xff]  ;;  %v5140_v63 = vmov 0.0  }
  0x5b   : > { %765 = vmatpush1.msra.mxu0 %v3596_v0  ;;  %836 = vmatpush1.msra.mxu1 %v3601_v1 }
  0x5c   : > { %766 = vmatprep.subr.mxu0 %v3608_v39  ;;  %837 = vmatprep.subr.mxu1 %v3613_v48 }
  0x5d   : > { %767 = vmatpush1.msra.mxu0 %v3619_v3  ;;  %800 = vmatprep.mubr.f32.mxu0 %v5140_v63 }
  0x5e   : > { %838 = vmatpush1.msra.mxu1 %v3626_v62  ;;  %871 = vmatprep.mubr.f32.mxu1 %v5140_v63 }
  0x5f   : > { %801 = vmatmul.mubr.f32.vlgmr.msra.gmra.mxu0 %v666_v57  ;;  %872 = vmatmul.mubr.f32.vlgmr.msra.gmra.mxu1 %v666_v57  ;;  %v5141_v57 = vld [vmem:[#allocation24_spill] sm:$0xff] }
  0x60   : > { %912 = vmatprep.subr.mxu0 %v3240_v2  ;;  %983 = vmatprep.subr.mxu1 %v3246_v4 }
  0x61   : > { %913 = vmatpush1.msra.mxu0 %v3251_v5  ;;  %984 = vmatpush1.msra.mxu1 %v3256_v6 }
  0x62   : > { %914 = vmatprep.subr.mxu0 %v3263_v7  ;;  %985 = vmatprep.subr.mxu1 %v3268_v8 }
  0x63   : > { %915 = vmatpush1.msra.mxu0 %v3274_v9  ;;  %986 = vmatpush1.msra.mxu1 %v3279_v10 }
  0x64   : > { %916 = vmatprep.subr.mxu0 %v3286_v11  ;;  %987 = vmatprep.subr.mxu1 %v3291_v12 }
  0x65   : > { %917 = vmatpush1.msra.mxu0 %v3298_v13  ;;  %988 = vmatpush1.msra.mxu1 %v3303_v14 }
  0x66   : > { %918 = vmatprep.subr.mxu0 %v3310_v15  ;;  %989 = vmatprep.subr.mxu1 %v3315_v16 }
  0x67   : > { %919 = vmatpush1.msra.mxu0 %v3322_v17  ;;  %990 = vmatpush1.msra.mxu1 %v3327_v18 }
  0x68   : > { %920 = vmatprep.subr.mxu0 %v3334_v19  ;;  %991 = vmatprep.subr.mxu1 %v3339_v20 }
  0x69   : > { %921 = vmatpush1.msra.mxu0 %v3346_v21  ;;  %992 = vmatpush1.msra.mxu1 %v3351_v22 }
  0x6a   : > { %922 = vmatprep.subr.mxu0 %v3358_v23  ;;  %993 = vmatprep.subr.mxu1 %v3363_v24 }
  0x6b   : > { %923 = vmatpush1.msra.mxu0 %v3370_v25  ;;  %994 = vmatpush1.msra.mxu1 %v3375_v26 }
  0x6c   : > { %924 = vmatprep.subr.mxu0 %v3382_v27  ;;  %995 = vmatprep.subr.mxu1 %v3387_v28 }
  0x6d   : > { %925 = vmatpush1.msra.mxu0 %v3394_v29  ;;  %996 = vmatpush1.msra.mxu1 %v3399_v30 }
  0x6e   : > { %926 = vmatprep.subr.mxu0 %v3406_v31  ;;  %997 = vmatprep.subr.mxu1 %v3411_v32 }
  0x6f   : > { %927 = vmatpush1.msra.mxu0 %v3418_v33  ;;  %998 = vmatpush1.msra.mxu1 %v3423_v34 }
  0x70   : > { %928 = vmatprep.subr.mxu0 %v3430_v35  ;;  %999 = vmatprep.subr.mxu1 %v3435_v36 }
  0x71   : > { %929 = vmatpush1.msra.mxu0 %v3442_v37  ;;  %1000 = vmatpush1.msra.mxu1 %v3449_v38 }
  0x72   : > { %930 = vmatprep.subr.mxu0 %v3457_v40  ;;  %1001 = vmatprep.subr.mxu1 %v3462_v41 }
  0x73   : > { %931 = vmatpush1.msra.mxu0 %v3469_v42  ;;  %1002 = vmatpush1.msra.mxu1 %v3475_v43 }
  0x74   : > { %932 = vmatprep.subr.mxu0 %v3480_v44  ;;  %1003 = vmatprep.subr.mxu1 %v3487_v45 }
  0x75   : > { %933 = vmatpush1.msra.mxu0 %v3494_v46  ;;  %1004 = vmatpush1.msra.mxu1 %v3501_v47 }
  0x76   : > { %934 = vmatprep.subr.mxu0 %v3508_v49  ;;  %1005 = vmatprep.subr.mxu1 %v3513_v50 }
  0x77   : > { %935 = vmatpush1.msra.mxu0 %v3520_v51  ;;  %1006 = vmatpush1.msra.mxu1 %v3526_v52  ;;  %v5142_v51 = vld [vmem:[#allocation25_spill] sm:$0xff] }
  0x78   : > { %936 = vmatprep.subr.mxu0 %v3531_v53  ;;  %1007 = vmatprep.subr.mxu1 %v3538_v54 }
  0x79   : > { %937 = vmatpush1.msra.mxu0 %v3545_v55  ;;  %1008 = vmatpush1.msra.mxu1 %v3552_v56 }
  0x7a   : > { %938 = vmatprep.subr.mxu0 %v3559_v58  ;;  %1009 = vmatprep.subr.mxu1 %v3564_v59 }
  0x7b   : > { %939 = vmatpush1.msra.mxu0 %v3571_v60  ;;  %1010 = vmatpush1.msra.mxu1 %v3577_v61 }
  0x7c   : > { %940 = vmatprep.subr.mxu0 %v5141_v57  ;;  %1011 = vmatprep.subr.mxu1 %v5142_v51  ;;  %v452_v51 = vlaneseq }
  0x7d   : > { %941 = vmatpush1.msra.mxu0 %v3596_v0  ;;  %1012 = vmatpush1.msra.mxu1 %v3601_v1 }
  0x7e   : > { %942 = vmatprep.subr.mxu0 %v3608_v39  ;;  %1013 = vmatprep.subr.mxu1 %v3613_v48  ;;  %v3702_v0 = vshrl.u32 %v452_v51, 7 }
  0x7f   : > { %943 = vmatpush1.msra.mxu0 %v3619_v3  ;;  %976 = vmatprep.mubr.f32.mxu0 %v5140_v63  ;;  %v450_v3 = vld [vmem:[%s4992_s3] sm:$0xf] }
  0x80   : > { %1014 = vmatpush1.msra.mxu1 %v3626_v62  ;;  %1047 = vmatprep.mubr.f32.mxu1 %v5140_v63  ;;  %5143 = vst [vmem:[#allocation32_spill] sm:$0xff] %v3702_v0  ;;  %v3705_v39 = vsub.s32 0, %v3702_v0  ;;  %v3711_v62 = vsub.s32 1, %v3702_v0  ;;  %v5055_v59 = vsub.s32 3, %v3702_v0 }
  0x81   : > { %1089 = vmatprep.subr.mxu0 %v3240_v2  ;;  %1160 = vmatprep.subr.mxu1 %v3246_v4  ;;  %v5052_v4 = vsub.s32 2, %v3702_v0 }
  0x82   : > { %5144 = vst [vmem:[#allocation33_spill] sm:$0xff] %v3705_v39  ;;  %5145 = vst [vmem:[#allocation34_spill] sm:$0xff] %v3711_v62  ;;  %v455_v2 = vrot.slane %v450_v3, %v3705_v39  ;;  %v459_v61 = vrot.slane %v450_v3, %v3711_v62  ;;  %v467_v39 = vrot.slane %v450_v3, %v5055_v59 }
  0x83   : > { %v463_v56 = vrot.slane %v450_v3, %v5052_v4 }
  0xf6   : > { %v538_v1 = vpop.f32.mrf.mxu0 }
  0xf8   : > { %v627_v48 = vpop.f32.mrf.mxu1  ;;  %v540_v63 = vpop.f32.mrf.mxu0 }
  0xfa   : > { %v629_v51 = vpop.f32.mrf.mxu1 }
 0x10a   : > { %v544_v57 = vpop.f32.mrf.mxu0 }
 0x10b   : > { %v3716_v60 = vadd.f32 %v544_v57, %v455_v2 }
 0x10c   : > { %v546_v58 = vpop.f32.mrf.mxu0 }
 0x10d   : > { %5146 = vst [vmem:[#allocation35_spill] sm:$0xff] %v3716_v60  ;;  %v3721_v55 = vadd.f32 %v546_v58, %v459_v61 }
 0x10e   : > { %v633_v54 = vpop.f32.mrf.mxu1 }
 0x10f   : > { %5147 = vst [vmem:[#allocation36_spill] sm:$0xff] %v3721_v55  ;;  %v3725_v53 = vadd.f32 %v633_v54, %v463_v56 }
 0x110   : > { %v550_v52 = vpop.f32.mrf.mxu0  ;;  %v635_v50 = vpop.f32.mrf.mxu1 }
 0x111   : > { %5148 = vst [vmem:[#allocation37_spill] sm:$0xff] %v3725_v53  ;;  %v3727_v49 = vadd.f32 %v550_v52, %v455_v2  ;;  %v3729_v57 = vadd.f32 %v635_v50, %v467_v39  ;;  %v541_v53 = vadd.f32 %v540_v63, %v459_v61 }
 0x112   : > { %v552_v62 = vpop.f32.mrf.mxu0 }
 0x113   : > { %5149 = vst [vmem:[#allocation38_spill] sm:$0xff] %v3727_v49  ;;  %5150 = vst [vmem:[#allocation39_spill] sm:$0xff] %v3729_v57  ;;  %v3731_v60 = vadd.f32 %v552_v62, %v459_v61  ;;  %v539_v62 = vadd.f32 %v538_v1, %v455_v2 }
 0x114   : > { %v639_v47 = vpop.f32.mrf.mxu1 }
 0x115   : > { %5151 = vst [vmem:[#allocation40_spill] sm:$0xff] %v3731_v60  ;;  %v3733_v46 = vadd.f32 %v639_v47, %v463_v56 }
 0x116   : > { %v556_v58 = vpop.f32.mrf.mxu0  ;;  %v641_v4 = vpop.f32.mrf.mxu1 }
 0x117   : > { %5152 = vst [vmem:[#allocation41_spill] sm:$0xff] %v3733_v46  ;;  %v3735_v55 = vadd.f32 %v556_v58, %v455_v2  ;;  %v3737_v0 = vadd.f32 %v641_v4, %v467_v39 }
 0x118   : > { %v558_v3 = vpop.f32.mrf.mxu0 }
 0x119   : > { %5153 = vst [vmem:[#allocation42_spill] sm:$0xff] %v3735_v55  ;;  %5154 = vst [vmem:[#allocation43_spill] sm:$0xff] %v3737_v0  ;;  %v3739_v54 = vadd.f32 %v558_v3, %v459_v61  ;;  %v630_v3 = vadd.f32 %v629_v51, %v467_v39  ;;  %v628_v0 = vadd.f32 %v627_v48, %v463_v56  ;;  %v5161_v51 = vld [vmem:[#allocation10_spill] sm:$0xff] }
 0x11a   : > { %v645_v59 = vpop.f32.mrf.mxu1 }
 0x11b   : > { %5155 = vst [vmem:[#allocation44_spill] sm:$0xff] %v3739_v54  ;;  %v3741_v52 = vadd.f32 %v645_v59, %v463_v56 }
 0x11c   : > { %v647_v50 = vpop.f32.mrf.mxu1 }
 0x11d   : > { %5156 = vst [vmem:[#allocation45_spill] sm:$0xff] %v3741_v52  ;;  %v3743_v49 = vadd.f32 %v647_v50, %v467_v39 }
 0x11f   : > { %5157 = vst [vmem:[#allocation46_spill] sm:$0xff] %v3743_v49  ;;  %v802_v60 = vpop.f32.mrf.mxu0  ;;  %v873_v58 = vpop.f32.mrf.mxu1 }
 0x120   : > { %v878_v47 = vadd.f32 %v802_v60, %v539_v62  ;;  %v880_v44 = vadd.f32 %v873_v58, %v628_v0  ;;  %v5165_v62 = vld [vmem:[#allocation14_spill] sm:$0xff]  ;;  %v5167_v58 = vld [vmem:[#allocation16_spill] sm:$0xff] }
 0x121   : > { %v804_v46 = vpop.f32.mrf.mxu0  ;;  %v875_v55 = vpop.f32.mrf.mxu1 }
 0x122   : > { %v2754_v57 = vmul.f32 -1.442695, %v878_v47  ;;  %v879_v45 = vadd.f32 %v804_v46, %v541_v53  ;;  %v881_v54 = vadd.f32 %v875_v55, %v630_v3  ;;  %v667_v53 = vld [vmem:[#allocation5 + $0x8] sm:$0xff]  ;;  %v5166_v47 = vld [vmem:[#allocation15_spill] sm:$0xff]  ;;  %v5169_v3 = vld [vmem:[#allocation18_spill] sm:$0xff] }
 0x124   : > { %2828 = vpow2.f32 %v2754_v57  ;;  %v2755_v4 = vmul.f32 -1.442695, %v879_v45  ;;  %v2756_v59 = vmul.f32 -1.442695, %v881_v54  ;;  %v5162_v57 = vld [vmem:[#allocation11_spill] sm:$0xff]  ;;  %v5163_v54 = vld [vmem:[#allocation12_spill] sm:$0xff] }
 0x126   : > { %2830 = vpow2.f32 %v2755_v4  ;;  %v5168_v4 = vld [vmem:[#allocation17_spill] sm:$0xff] }
 0x127   : > { %2832 = vpow2.f32 %v2756_v59  ;;  %v5170_v59 = vld [vmem:[#allocation19_spill] sm:$0xff] }
 0x131   : > { %v2829_v52 = vpop.eup %2828 }
 0x132   : > { %v885_v50 = vadd.f32 1.0, %v2829_v52  ;;  %v5164_v52 = vld [vmem:[#allocation13_spill] sm:$0xff] }
 0x133   : > { %v2831_v49 = vpop.eup %2830 }
 0x134   : > { %2834 = vrcp.f32 %v885_v50  ;;  %v891_v2 = vadd.f32 1.0, %v2831_v49  ;;  %v2833_v60 = vpop.eup %2832  ;;  %v5160_v49 = vld [vmem:[#allocation9_spill] sm:$0xff]  ;;  %v5171_v50 = vld [vmem:[#allocation20_spill] sm:$0xff] }
 0x135   : > { %2836 = vtanh.f32 %v880_v44  ;;  %v898_v63 = vadd.f32 1.0, %v2833_v60  ;;  %v5159_v44 = vld [vmem:[#allocation8_spill] sm:$0xff]  ;;  %v5173_v60 = vld [vmem:[#allocation22_spill] sm:$0xff] }
 0x136   : > { %2838 = vrcp.f32 %v891_v2  ;;  %v5172_v2 = vld [vmem:[#allocation21_spill] sm:$0xff] }
 0x137   : > { %2840 = vrcp.f32 %v898_v63  ;;  %v5178_v63 = vld [vmem:[#allocation27_spill] sm:$0xff] }
 0x141   : > { %v2835_v46 = vpop.eup %2834 }
 0x142   : > { %v2837_v61 = vpop.eup %2836 }
 0x143   : > { %v2839_v45 = vpop.eup %2838  ;;  %v902_v1 = vmul.f32 %v2837_v61, %v2835_v46  ;;  %v5174_v46 = vld [vmem:[#allocation23_spill] sm:$0xff]  ;;  %v5176_v61 = vld [vmem:[#allocation25_spill] sm:$0xff] }
 0x144   : > { %v901_v39 = vmul.f32 %v2839_v45, %v667_v53  ;;  %v2841_v56 = vpop.eup %2840  ;;  %v5175_v53 = vld [vmem:[#allocation24_spill] sm:$0xff]  ;;  %v5177_v45 = vld [vmem:[#allocation26_spill] sm:$0xff] }
 0x146   : > { %v3745_v55 = vadd.f32 %v902_v1, %v901_v39  ;;  %v5179_v1 = vld [vmem:[#allocation28_spill] sm:$0xff]  ;;  %v5180_v39 = vld [vmem:[#allocation29_spill] sm:$0xff] }
 0x148   : > { %2842 = vtanh.f32 %v3745_v55 }
 0x155   : > { %v2843_v0 = vpop.eup %2842 }
 0x156   : > { %v3748_v48 = vmul.f32 %v2843_v0, %v2841_v56  ;;  %v5181_v56 = vld [vmem:[#allocation30_spill] sm:$0xff]  ;;  %v5182_v0 = vmov 0.0  }
 0x158   : > { %5158 = vst [vmem:[#allocation47_spill] sm:$0xff] %v3748_v48  ;;  %977 = vmatmul.mubr.f32.vlgmr.msra.gmra.mxu0 %v3748_v48  ;;  %1048 = vmatmul.mubr.f32.vlgmr.msra.gmra.mxu1 %v3748_v48  ;;  %v5183_v48 = vld [vmem:[#allocation31_spill] sm:$0xff] }
 0x159   : > { %1090 = vmatpush1.msra.mxu0 %v3251_v5  ;;  %1161 = vmatpush1.msra.mxu1 %v3256_v6 }
 0x15a   : > { %1091 = vmatprep.subr.mxu0 %v3263_v7  ;;  %1162 = vmatprep.subr.mxu1 %v3268_v8 }
 0x15b   : > { %1092 = vmatpush1.msra.mxu0 %v3274_v9  ;;  %1163 = vmatpush1.msra.mxu1 %v3279_v10 }
 0x15c   : > { %1093 = vmatprep.subr.mxu0 %v3286_v11  ;;  %1164 = vmatprep.subr.mxu1 %v3291_v12 }
 0x15d   : > { %1094 = vmatpush1.msra.mxu0 %v3298_v13  ;;  %1165 = vmatpush1.msra.mxu1 %v3303_v14 }
 0x15e   : > { %1095 = vmatprep.subr.mxu0 %v3310_v15  ;;  %1166 = vmatprep.subr.mxu1 %v3315_v16 }
 0x15f   : > { %1096 = vmatpush1.msra.mxu0 %v3322_v17  ;;  %1167 = vmatpush1.msra.mxu1 %v3327_v18 }
 0x160   : > { %1097 = vmatprep.subr.mxu0 %v3334_v19  ;;  %1168 = vmatprep.subr.mxu1 %v3339_v20 }
 0x161   : > { %1098 = vmatpush1.msra.mxu0 %v3346_v21  ;;  %1169 = vmatpush1.msra.mxu1 %v3351_v22 }
 0x162   : > { %1099 = vmatprep.subr.mxu0 %v3358_v23  ;;  %1170 = vmatprep.subr.mxu1 %v3363_v24 }
 0x163   : > { %1100 = vmatpush1.msra.mxu0 %v3370_v25  ;;  %1171 = vmatpush1.msra.mxu1 %v3375_v26 }
 0x164   : > { %1101 = vmatprep.subr.mxu0 %v3382_v27  ;;  %1172 = vmatprep.subr.mxu1 %v3387_v28 }
 0x165   : > { %1102 = vmatpush1.msra.mxu0 %v3394_v29  ;;  %1173 = vmatpush1.msra.mxu1 %v3399_v30 }
 0x166   : > { %1103 = vmatprep.subr.mxu0 %v3406_v31  ;;  %1174 = vmatprep.subr.mxu1 %v3411_v32 }
 0x167   : > { %1104 = vmatpush1.msra.mxu0 %v3418_v33  ;;  %1175 = vmatpush1.msra.mxu1 %v3423_v34 }
 0x168   : > { %1105 = vmatprep.subr.mxu0 %v3430_v35  ;;  %1176 = vmatprep.subr.mxu1 %v3435_v36 }
 0x169   : > { %1106 = vmatpush1.msra.mxu0 %v3442_v37  ;;  %1177 = vmatpush1.msra.mxu1 %v3449_v38 }
 0x16a   : > { %1107 = vmatprep.subr.mxu0 %v3457_v40  ;;  %1178 = vmatprep.subr.mxu1 %v3462_v41 }
 0x16b   : > { %1108 = vmatpush1.msra.mxu0 %v3469_v42  ;;  %1179 = vmatpush1.msra.mxu1 %v3475_v43 }
 0x16c   : > { %1109 = vmatprep.subr.mxu0 %v5159_v44  ;;  %1180 = vmatprep.subr.mxu1 %v5160_v49 }
 0x16d   : > { %1110 = vmatpush1.msra.mxu0 %v5161_v51  ;;  %1181 = vmatpush1.msra.mxu1 %v5162_v57 }
 0x16e   : > { %1111 = vmatprep.subr.mxu0 %v5163_v54  ;;  %1182 = vmatprep.subr.mxu1 %v5164_v52 }
 0x16f   : > { %1112 = vmatpush1.msra.mxu0 %v5165_v62  ;;  %1183 = vmatpush1.msra.mxu1 %v5166_v47 }
 0x170   : > { %1113 = vmatprep.subr.mxu0 %v5167_v58  ;;  %1184 = vmatprep.subr.mxu1 %v5168_v4  ;;  %v5189_v4 = vld [vmem:[#allocation37_spill] sm:$0xff] }
 0x171   : > { %1114 = vmatpush1.msra.mxu0 %v5169_v3  ;;  %1185 = vmatpush1.msra.mxu1 %v5170_v59  ;;  %v5188_v3 = vld [vmem:[#allocation39_spill] sm:$0xff] }
 0x172   : > { %1115 = vmatprep.subr.mxu0 %v5171_v50  ;;  %1186 = vmatprep.subr.mxu1 %v5172_v2 }
 0x173   : > { %1116 = vmatpush1.msra.mxu0 %v5173_v60  ;;  %1187 = vmatpush1.msra.mxu1 %v5174_v46  ;;  %v5184_v46 = vld [vmem:[#allocation6_spill] sm:$0xff] }
 0x174   : > { %1117 = vmatprep.subr.mxu0 %v5175_v53  ;;  %1188 = vmatprep.subr.mxu1 %v5176_v61  ;;  %v5185_v53 = vld [vmem:[#allocation7_spill] sm:$0xff] }
 0x175   : > { %1118 = vmatpush1.msra.mxu0 %v5177_v45  ;;  %1189 = vmatpush1.msra.mxu1 %v5178_v63  ;;  %v5186_v45 = vld [vmem:[#allocation35_spill] sm:$0xff] }
 0x176   : > { %1119 = vmatprep.subr.mxu0 %v5179_v1  ;;  %1190 = vmatprep.subr.mxu1 %v5180_v39  ;;  %v5187_v1 = vld [vmem:[#allocation36_spill] sm:$0xff] }
 0x177   : > { %1120 = vmatpush1.msra.mxu0 %v5181_v56  ;;  %1153 = vmatprep.mubr.f32.mxu0 %v5182_v0 }
 0x178   : > { %1191 = vmatpush1.msra.mxu1 %v5183_v48  ;;  %1224 = vmatprep.mubr.f32.mxu1 %v5182_v0 }
 0x179   : > { %1266 = vmatprep.subr.mxu0 %v5184_v46  ;;  %1337 = vmatprep.subr.mxu1 %v5185_v53 }
 0x218   : > { %v978_v61 = vpop.f32.mrf.mxu0  ;;  %v1049_v39 = vpop.f32.mrf.mxu1 }
 0x219   : > { %v1054_v60 = vadd.f32 %v978_v61, %v5186_v45  ;;  %v1056_v0 = vadd.f32 %v1049_v39, %v5189_v4 }
 0x21a   : > { %v980_v63 = vpop.f32.mrf.mxu0  ;;  %v1051_v59 = vpop.f32.mrf.mxu1 }
 0x21b   : > { %v2757_v2 = vmul.f32 -1.442695, %v1054_v60  ;;  %v1055_v50 = vadd.f32 %v980_v63, %v5187_v1  ;;  %v1057_v48 = vadd.f32 %v1051_v59, %v5188_v3 }
 0x21d   : > { %2844 = vpow2.f32 %v2757_v2  ;;  %v2758_v56 = vmul.f32 -1.442695, %v1055_v50  ;;  %v2759_v58 = vmul.f32 -1.442695, %v1057_v48 }
 0x21f   : > { %2846 = vpow2.f32 %v2758_v56 }
 0x220   : > { %2848 = vtanh.f32 %v1056_v0 }
 0x221   : > { %2850 = vpow2.f32 %v2759_v58 }
 0x22a   : > { %v2845_v46 = vpop.eup %2844 }
 0x22b   : > { %v1061_v47 = vadd.f32 1.0, %v2845_v46  ;;  %v1504_v46 = vld [vmem:[%s4993_s4 + $0x1e0] sm:$0xff] }
 0x22c   : > { %v2847_v53 = vpop.eup %2846 }
 0x22d   : > { %2852 = vrcp.f32 %v1061_v47  ;;  %v1067_v61 = vadd.f32 1.0, %v2847_v53  ;;  %v2849_v60 = vpop.eup %2848  ;;  %v1506_v53 = vld [vmem:[%s4993_s4 + $0x1f0] sm:$0xff] }
 0x22e   : > { %v2851_v45 = vpop.eup %2850 }
 0x22f   : > { %2854 = vrcp.f32 %v1067_v61  ;;  %v1074_v1 = vadd.f32 1.0, %v2851_v45  ;;  %v1501_v61 = vld [vmem:[%s4993_s4 + $0x1c8] sm:$0xff]  ;;  %v1500_v45 = vld [vmem:[%s4993_s4 + $0x1c0] sm:$0xff] }
 0x231   : > { %2856 = vrcp.f32 %v1074_v1  ;;  %v1496_v1 = vld [vmem:[%s4993_s4 + $0x1a0] sm:$0xff] }
 0x23a   : > { %v2853_v2 = vpop.eup %2852 }
 0x23b   : > { %v1078_v63 = vmul.f32 %v2853_v2, %v2849_v60  ;;  %v1503_v60 = vld [vmem:[%s4993_s4 + $0x1d8] sm:$0xff]  ;;  %v1502_v2 = vld [vmem:[%s4993_s4 + $0x1d0] sm:$0xff] }
 0x23c   : > { %v2855_v50 = vpop.eup %2854 }
 0x23d   : > { %v1077_v56 = vmul.f32 %v2855_v50, %v3745_v55  ;;  %v1499_v50 = vld [vmem:[%s4993_s4 + $0x1b8] sm:$0xff] }
 0x23e   : > { %v2857_v48 = vpop.eup %2856 }
 0x23f   : > { %v3823_v3 = vadd.f32 %v1078_v63, %v1077_v56  ;;  %v1497_v63 = vld [vmem:[%s4993_s4 + $0x1a8] sm:$0xff]  ;;  %v1498_v56 = vld [vmem:[%s4993_s4 + $0x1b0] sm:$0xff] }
 0x241   : > { %2858 = vtanh.f32 %v3823_v3 }
 0x24e   : > { %v2859_v4 = vpop.eup %2858 }
 0x24f   : > { %v3826_v59 = vmul.f32 %v2859_v4, %v2857_v48  ;;  %v1495_v48 = vld [vmem:[%s4993_s4 + $0x198] sm:$0xff]  ;;  %v1492_v4 = vld [vmem:[%s4993_s4 + $0x180] sm:$0xff] }
 0x251   : > { %1154 = vmatmul.mubr.f32.vlgmr.msra.gmra.mxu0 %v3826_v59  ;;  %1225 = vmatmul.mubr.f32.vlgmr.msra.gmra.mxu1 %v3826_v59 }
 0x252   : > { %1267 = vmatpush1.msra.mxu0 %v3251_v5  ;;  %1338 = vmatpush1.msra.mxu1 %v3256_v6  ;;  %v5190_v5 = vld [vmem:[#allocation15_spill] sm:$0xff]  ;;  %v5191_v6 = vld [vmem:[#allocation16_spill] sm:$0xff] }
 0x253   : > { %1268 = vmatprep.subr.mxu0 %v3263_v7  ;;  %1339 = vmatprep.subr.mxu1 %v3268_v8  ;;  %v5192_v7 = vld [vmem:[#allocation17_spill] sm:$0xff]  ;;  %v5193_v8 = vld [vmem:[#allocation18_spill] sm:$0xff] }
 0x254   : > { %1269 = vmatpush1.msra.mxu0 %v3274_v9  ;;  %1340 = vmatpush1.msra.mxu1 %v3279_v10  ;;  %v5194_v9 = vld [vmem:[#allocation19_spill] sm:$0xff]  ;;  %v5195_v10 = vld [vmem:[#allocation20_spill] sm:$0xff] }
 0x255   : > { %1270 = vmatprep.subr.mxu0 %v3286_v11  ;;  %1341 = vmatprep.subr.mxu1 %v3291_v12  ;;  %v5196_v11 = vld [vmem:[#allocation21_spill] sm:$0xff]  ;;  %v5197_v12 = vld [vmem:[#allocation22_spill] sm:$0xff] }
 0x256   : > { %1271 = vmatpush1.msra.mxu0 %v3298_v13  ;;  %1342 = vmatpush1.msra.mxu1 %v3303_v14  ;;  %v5198_v13 = vld [vmem:[#allocation23_spill] sm:$0xff]  ;;  %v5199_v14 = vld [vmem:[#allocation24_spill] sm:$0xff] }
 0x257   : > { %1272 = vmatprep.subr.mxu0 %v3310_v15  ;;  %1343 = vmatprep.subr.mxu1 %v3315_v16  ;;  %v5200_v15 = vld [vmem:[#allocation25_spill] sm:$0xff]  ;;  %v5201_v16 = vld [vmem:[#allocation26_spill] sm:$0xff] }
 0x258   : > { %1273 = vmatpush1.msra.mxu0 %v3322_v17  ;;  %1344 = vmatpush1.msra.mxu1 %v3327_v18  ;;  %v5202_v17 = vld [vmem:[#allocation27_spill] sm:$0xff]  ;;  %v5203_v18 = vld [vmem:[#allocation28_spill] sm:$0xff] }
 0x259   : > { %1274 = vmatprep.subr.mxu0 %v3334_v19  ;;  %1345 = vmatprep.subr.mxu1 %v3339_v20  ;;  %v5204_v19 = vld [vmem:[#allocation29_spill] sm:$0xff]  ;;  %v5205_v20 = vld [vmem:[#allocation30_spill] sm:$0xff] }
 0x25a   : > { %1275 = vmatpush1.msra.mxu0 %v3346_v21  ;;  %1346 = vmatpush1.msra.mxu1 %v3351_v22  ;;  %v5206_v21 = vld [vmem:[#allocation31_spill] sm:$0xff]  ;;  %v5207_v22 = vmov 0.0  }
 0x25b   : > { %1276 = vmatprep.subr.mxu0 %v3358_v23  ;;  %1347 = vmatprep.subr.mxu1 %v3363_v24  ;;  %v1505_v23 = vld [vmem:[%s4993_s4 + $0x1e8] sm:$0xff]  ;;  %v1507_v24 = vld [vmem:[%s4993_s4 + $0x1f8] sm:$0xff] }
 0x25c   : > { %1277 = vmatpush1.msra.mxu0 %v3370_v25  ;;  %1348 = vmatpush1.msra.mxu1 %v3375_v26  ;;  %v5208_v26 = vld [vmem:[#allocation38_spill] sm:$0xff] }
 0x25d   : > { %1278 = vmatprep.subr.mxu0 %v3382_v27  ;;  %1349 = vmatprep.subr.mxu1 %v3387_v28 }
 0x25e   : > { %1279 = vmatpush1.msra.mxu0 %v3394_v29  ;;  %1350 = vmatpush1.msra.mxu1 %v3399_v30  ;;  %v5209_v30 = vld [vmem:[#allocation40_spill] sm:$0xff] }
 0x25f   : > { %1280 = vmatprep.subr.mxu0 %v3406_v31  ;;  %1351 = vmatprep.subr.mxu1 %v3411_v32 }
 0x260   : > { %1281 = vmatpush1.msra.mxu0 %v3418_v33  ;;  %1352 = vmatpush1.msra.mxu1 %v3423_v34 }
 0x261   : > { %1282 = vmatprep.subr.mxu0 %v3430_v35  ;;  %1353 = vmatprep.subr.mxu1 %v3435_v36  ;;  %v5210_v35 = vld [vmem:[#allocation43_spill] sm:$0xff] }
 0x262   : > { %1283 = vmatpush1.msra.mxu0 %v3442_v37  ;;  %1354 = vmatpush1.msra.mxu1 %v3449_v38  ;;  %v5211_v37 = vld [vmem:[#allocation41_spill] sm:$0xff] }
 0x263   : > { %1284 = vmatprep.subr.mxu0 %v3457_v40  ;;  %1355 = vmatprep.subr.mxu1 %v3462_v41 }
 0x264   : > { %1285 = vmatpush1.msra.mxu0 %v3469_v42  ;;  %1356 = vmatpush1.msra.mxu1 %v3475_v43 }
 0x265   : > { %1286 = vmatprep.subr.mxu0 %v5159_v44  ;;  %1357 = vmatprep.subr.mxu1 %v5160_v49 }
 0x266   : > { %1287 = vmatpush1.msra.mxu0 %v5161_v51  ;;  %1358 = vmatpush1.msra.mxu1 %v5162_v57 }
 0x267   : > { %1288 = vmatprep.subr.mxu0 %v5163_v54  ;;  %1359 = vmatprep.subr.mxu1 %v5164_v52 }
 0x268   : > { %1289 = vmatpush1.msra.mxu0 %v5165_v62  ;;  %1360 = vmatpush1.msra.mxu1 %v5190_v5  ;;  %v1494_v5 = vld [vmem:[%s4993_s4 + $0x190] sm:$0xff] }
 0x269   : > { %1290 = vmatprep.subr.mxu0 %v5191_v6  ;;  %1361 = vmatprep.subr.mxu1 %v5192_v7  ;;  %v1489_v6 = vld [vmem:[%s4993_s4 + $0x168] sm:$0xff]  ;;  %v1491_v7 = vld [vmem:[%s4993_s4 + $0x178] sm:$0xff] }
 0x26a   : > { %1291 = vmatpush1.msra.mxu0 %v5193_v8  ;;  %1362 = vmatpush1.msra.mxu1 %v5194_v9  ;;  %v1488_v8 = vld [vmem:[%s4993_s4 + $0x160] sm:$0xff]  ;;  %v1490_v9 = vld [vmem:[%s4993_s4 + $0x170] sm:$0xff] }
 0x26b   : > { %1292 = vmatprep.subr.mxu0 %v5195_v10  ;;  %1363 = vmatprep.subr.mxu1 %v5196_v11  ;;  %v1485_v10 = vld [vmem:[%s4993_s4 + $0x148] sm:$0xff]  ;;  %v1487_v11 = vld [vmem:[%s4993_s4 + $0x158] sm:$0xff] }
 0x26c   : > { %1293 = vmatpush1.msra.mxu0 %v5197_v12  ;;  %1364 = vmatpush1.msra.mxu1 %v5198_v13  ;;  %v1484_v12 = vld [vmem:[%s4993_s4 + $0x140] sm:$0xff]  ;;  %v1486_v13 = vld [vmem:[%s4993_s4 + $0x150] sm:$0xff] }
 0x26d   : > { %1294 = vmatprep.subr.mxu0 %v5199_v14  ;;  %1365 = vmatprep.subr.mxu1 %v5200_v15  ;;  %v1481_v14 = vld [vmem:[%s4993_s4 + $0x128] sm:$0xff]  ;;  %v1483_v15 = vld [vmem:[%s4993_s4 + $0x138] sm:$0xff] }
 0x26e   : > { %1295 = vmatpush1.msra.mxu0 %v5201_v16  ;;  %1366 = vmatpush1.msra.mxu1 %v5202_v17  ;;  %v1480_v16 = vld [vmem:[%s4993_s4 + $0x120] sm:$0xff]  ;;  %v1482_v17 = vld [vmem:[%s4993_s4 + $0x130] sm:$0xff] }
 0x26f   : > { %1296 = vmatprep.subr.mxu0 %v5203_v18  ;;  %1367 = vmatprep.subr.mxu1 %v5204_v19  ;;  %v1477_v18 = vld [vmem:[%s4993_s4 + $0x108] sm:$0xff]  ;;  %v1479_v19 = vld [vmem:[%s4993_s4 + $0x118] sm:$0xff] }
 0x270   : > { %1297 = vmatpush1.msra.mxu0 %v5205_v20  ;;  %1368 = vmatpush1.msra.mxu1 %v5206_v21  ;;  %v1476_v20 = vld [vmem:[%s4993_s4 + $0x100] sm:$0xff]  ;;  %v1478_v21 = vld [vmem:[%s4993_s4 + $0x110] sm:$0xff] }
 0x271   : > { %1330 = vmatprep.mubr.f32.mxu0 %v5207_v22  ;;  %1401 = vmatprep.mubr.f32.mxu1 %v5207_v22 }
 0x272   : > { %1530 = vmatprep.subr.mxu0 %v1505_v23  ;;  %1619 = vmatprep.subr.mxu1 %v1507_v24  ;;  %v1473_v23 = vld [vmem:[%s4993_s4 + $0xe8] sm:$0xff]  ;;  %v1475_v24 = vld [vmem:[%s4993_s4 + $0xf8] sm:$0xff] }
 0x311   : > { %v1155_v25 = vpop.f32.mrf.mxu0  ;;  %v1226_v32 = vpop.f32.mrf.mxu1 }
 0x312   : > { %v1231_v27 = vadd.f32 %v1155_v25, %v5208_v26  ;;  %v1233_v38 = vadd.f32 %v1226_v32, %v5211_v37  ;;  %v1472_v25 = vld [vmem:[%s4993_s4 + $0xe0] sm:$0xff]  ;;  %v1474_v26 = vld [vmem:[%s4993_s4 + $0xf0] sm:$0xff]  ;;  %v1467_v32 = vld [vmem:[%s4993_s4 + $0xb8] sm:$0xff] }
 0x313   : > { %v1157_v28 = vpop.f32.mrf.mxu0  ;;  %v1228_v34 = vpop.f32.mrf.mxu1  ;;  %v1460_v37 = vld [vmem:[%s4993_s4 + $0x80] sm:$0xff] }
 0x314   : > { %v2760_v29 = vmul.f32 -1.442695, %v1231_v27  ;;  %v1232_v31 = vadd.f32 %v1157_v28, %v5209_v30  ;;  %v1234_v36 = vadd.f32 %v1228_v34, %v5210_v35  ;;  %v1469_v27 = vld [vmem:[%s4993_s4 + $0xc8] sm:$0xff]  ;;  %v1471_v28 = vld [vmem:[%s4993_s4 + $0xd8] sm:$0xff]  ;;  %v1470_v30 = vld [vmem:[%s4993_s4 + $0xd0] sm:$0xff] }
 0x315   : > { %v1466_v34 = vld [vmem:[%s4993_s4 + $0xb0] sm:$0xff]  ;;  %v1461_v35 = vld [vmem:[%s4993_s4 + $0x88] sm:$0xff] }
 0x316   : > { %2860 = vpow2.f32 %v2760_v29  ;;  %v2761_v33 = vmul.f32 -1.442695, %v1232_v31  ;;  %v2762_v40 = vmul.f32 -1.442695, %v1234_v36  ;;  %v1468_v29 = vld [vmem:[%s4993_s4 + $0xc0] sm:$0xff]  ;;  %v1465_v31 = vld [vmem:[%s4993_s4 + $0xa8] sm:$0xff] }
 0x317   : > { %v1463_v36 = vld [vmem:[%s4993_s4 + $0x98] sm:$0xff] }
 0x318   : > { %2862 = vpow2.f32 %v2761_v33  ;;  %v1464_v33 = vld [vmem:[%s4993_s4 + $0xa0] sm:$0xff] }
 0x319   : > { %2864 = vtanh.f32 %v1233_v38  ;;  %v1462_v38 = vld [vmem:[%s4993_s4 + $0x90] sm:$0xff] }
 0x31a   : > { %2866 = vpow2.f32 %v2762_v40  ;;  %v1457_v40 = vld [vmem:[%s4993_s4 + $0x68] sm:$0xff] }
 0x323   : > { %v2861_v41 = vpop.eup %2860 }
 0x324   : > { %v1238_v42 = vadd.f32 1.0, %v2861_v41  ;;  %v1459_v41 = vld [vmem:[%s4993_s4 + $0x78] sm:$0xff] }
 0x325   : > { %v2863_v43 = vpop.eup %2862 }
 0x326   : > { %2868 = vrcp.f32 %v1238_v42  ;;  %v1244_v55 = vadd.f32 1.0, %v2863_v43  ;;  %v2865_v44 = vpop.eup %2864  ;;  %v1456_v42 = vld [vmem:[%s4993_s4 + $0x60] sm:$0xff]  ;;  %v1458_v43 = vld [vmem:[%s4993_s4 + $0x70] sm:$0xff] }
 0x327   : > { %v2867_v49 = vpop.eup %2866 }
 0x328   : > { %2870 = vrcp.f32 %v1244_v55  ;;  %v1251_v52 = vadd.f32 1.0, %v2867_v49  ;;  %v1453_v55 = vld [vmem:[%s4993_s4 + $0x48] sm:$0xff]  ;;  %v1452_v49 = vld [vmem:[%s4993_s4 + $0x40] sm:$0xff] }
 0x32a   : > { %2872 = vrcp.f32 %v1251_v52  ;;  %v1448_v52 = vld [vmem:[%s4993_s4 + $0x20] sm:$0xff] }
 0x333   : > { %v2869_v51 = vpop.eup %2868 }
 0x334   : > { %v1255_v57 = vmul.f32 %v2869_v51, %v2865_v44  ;;  %v1455_v44 = vld [vmem:[%s4993_s4 + $0x58] sm:$0xff]  ;;  %v1454_v51 = vld [vmem:[%s4993_s4 + $0x50] sm:$0xff] }
 0x335   : > { %v2871_v54 = vpop.eup %2870 }
 0x336   : > { %v1254_v62 = vmul.f32 %v2871_v54, %v3823_v3  ;;  %v1493_v3 = vld [vmem:[%s4993_s4 + $0x188] sm:$0xff]  ;;  %v1451_v54 = vld [vmem:[%s4993_s4 + $0x38] sm:$0xff] }
 0x337   : > { %v2873_v58 = vpop.eup %2872 }
 0x338   : > { %v3905_v47 = vadd.f32 %v1255_v57, %v1254_v62  ;;  %v1449_v57 = vld [vmem:[%s4993_s4 + $0x28] sm:$0xff]  ;;  %v1450_v62 = vld [vmem:[%s4993_s4 + $0x30] sm:$0xff] }
 0x33a   : > { %2874 = vtanh.f32 %v3905_v47 }
 0x347   : > { %v2875_v39 = vpop.eup %2874 }
 0x348   : > { %v3908_v0 = vmul.f32 %v2875_v39, %v2873_v58  ;;  %v1445_v58 = vld [vmem:[%s4993_s4 + $0x8] sm:$0xff]  ;;  %v1447_v39 = vld [vmem:[%s4993_s4 + $0x18] sm:$0xff] }
 0x34a   : > { %1331 = vmatmul.mubr.f32.vlgmr.msra.gmra.mxu0 %v3908_v0  ;;  %1402 = vmatmul.mubr.f32.vlgmr.msra.gmra.mxu1 %v3908_v0 }
 0x34b   : > { %1531 = vmatpush1.msra.mxu0 %v1504_v46  ;;  %1620 = vmatpush1.msra.mxu1 %v1506_v53  ;;  %v1444_v46 = vld [vmem:[%s4993_s4] sm:$0xff]  ;;  %v1446_v53 = vld [vmem:[%s4993_s4 + $0x10] sm:$0xff] }
 0x34c   : > { %1532 = vmatprep.subr.mxu0 %v1501_v61  ;;  %1621 = vmatprep.subr.mxu1 %v1503_v60  ;;  %v5212_v61 = vld [vmem:[#allocation47_spill] sm:$0xff] }
 0x34d   : > { %1533 = vmatpush1.msra.mxu0 %v1500_v45  ;;  %1622 = vmatpush1.msra.mxu1 %v1502_v2  ;;  %v4115_v60 = vld [vmem:[%s4994_s5 + $0x1e8] sm:$0xff]  ;;  %v4132_v45 = vld [vmem:[%s4994_s5 + $0x1f0] sm:$0xff] }
 0x34e   : > { %1534 = vmatprep.subr.mxu0 %v1497_v63  ;;  %1623 = vmatprep.subr.mxu1 %v1499_v50  ;;  %5213 = vst [vmem:[#allocation8_spill] sm:$0xff] %v4115_v60  ;;  %v4139_v2 = vld [vmem:[%s4994_s5 + $0x1c8] sm:$0xff]  ;;  %v4144_v63 = vld [vmem:[%s4994_s5 + $0x1d8] sm:$0xff]  ;;  %v4151_v50 = vld [vmem:[%s4994_s5 + $0x1c0] sm:$0xff] }
 0x34f   : > { %1535 = vmatpush1.msra.mxu0 %v1496_v1  ;;  %1624 = vmatpush1.msra.mxu1 %v1498_v56  ;;  %v4156_v1 = vld [vmem:[%s4994_s5 + $0x1d0] sm:$0xff]  ;;  %v4163_v56 = vld [vmem:[%s4994_s5 + $0x1a8] sm:$0xff] }
 0x350   : > { %1536 = vmatprep.subr.mxu0 %v1493_v3  ;;  %1625 = vmatprep.subr.mxu1 %v1495_v48  ;;  %v4168_v3 = vld [vmem:[%s4994_s5 + $0x1b8] sm:$0xff]  ;;  %v4175_v48 = vld [vmem:[%s4994_s5 + $0x1a0] sm:$0xff] }
 0x351   : > { %1537 = vmatpush1.msra.mxu0 %v1492_v4  ;;  %1626 = vmatpush1.msra.mxu1 %v1494_v5  ;;  %v4180_v4 = vld [vmem:[%s4994_s5 + $0x1b0] sm:$0xff]  ;;  %v4187_v5 = vld [vmem:[%s4994_s5 + $0x188] sm:$0xff] }
 0x352   : > { %1538 = vmatprep.subr.mxu0 %v1489_v6  ;;  %1627 = vmatprep.subr.mxu1 %v1491_v7  ;;  %v4192_v6 = vld [vmem:[%s4994_s5 + $0x198] sm:$0xff]  ;;  %v4199_v7 = vld [vmem:[%s4994_s5 + $0x180] sm:$0xff] }
 0x353   : > { %1539 = vmatpush1.msra.mxu0 %v1488_v8  ;;  %1628 = vmatpush1.msra.mxu1 %v1490_v9  ;;  %v4204_v8 = vld [vmem:[%s4994_s5 + $0x190] sm:$0xff]  ;;  %v4211_v9 = vld [vmem:[%s4994_s5 + $0x168] sm:$0xff] }
 0x354   : > { %1540 = vmatprep.subr.mxu0 %v1485_v10  ;;  %1629 = vmatprep.subr.mxu1 %v1487_v11  ;;  %v4216_v10 = vld [vmem:[%s4994_s5 + $0x178] sm:$0xff]  ;;  %v4223_v11 = vld [vmem:[%s4994_s5 + $0x160] sm:$0xff] }
 0x355   : > { %1541 = vmatpush1.msra.mxu0 %v1484_v12  ;;  %1630 = vmatpush1.msra.mxu1 %v1486_v13  ;;  %v4228_v12 = vld [vmem:[%s4994_s5 + $0x170] sm:$0xff]  ;;  %v4235_v13 = vld [vmem:[%s4994_s5 + $0x148] sm:$0xff] }
 0x356   : > { %1542 = vmatprep.subr.mxu0 %v1481_v14  ;;  %1631 = vmatprep.subr.mxu1 %v1483_v15  ;;  %v4240_v14 = vld [vmem:[%s4994_s5 + $0x158] sm:$0xff]  ;;  %v4247_v15 = vld [vmem:[%s4994_s5 + $0x140] sm:$0xff] }
 0x357   : > { %1543 = vmatpush1.msra.mxu0 %v1480_v16  ;;  %1632 = vmatpush1.msra.mxu1 %v1482_v17  ;;  %v4252_v16 = vld [vmem:[%s4994_s5 + $0x150] sm:$0xff]  ;;  %v4259_v17 = vld [vmem:[%s4994_s5 + $0x128] sm:$0xff] }
 0x358   : > { %1544 = vmatprep.subr.mxu0 %v1477_v18  ;;  %1633 = vmatprep.subr.mxu1 %v1479_v19  ;;  %v4264_v18 = vld [vmem:[%s4994_s5 + $0x138] sm:$0xff]  ;;  %v4271_v19 = vld [vmem:[%s4994_s5 + $0x120] sm:$0xff] }
 0x359   : > { %1545 = vmatpush1.msra.mxu0 %v1476_v20  ;;  %1634 = vmatpush1.msra.mxu1 %v1478_v21  ;;  %v4276_v20 = vld [vmem:[%s4994_s5 + $0x130] sm:$0xff]  ;;  %v4283_v21 = vld [vmem:[%s4994_s5 + $0x108] sm:$0xff] }
 0x35a   : > { %1546 = vmatprep.subr.mxu0 %v1473_v23  ;;  %1635 = vmatprep.subr.mxu1 %v1475_v24  ;;  %v4288_v23 = vld [vmem:[%s4994_s5 + $0x118] sm:$0xff]  ;;  %v4293_v24 = vld [vmem:[%s4994_s5 + $0x100] sm:$0xff] }
 0x35b   : > { %1547 = vmatpush1.msra.mxu0 %v1472_v25  ;;  %1636 = vmatpush1.msra.mxu1 %v1474_v26  ;;  %v4300_v25 = vld [vmem:[%s4994_s5 + $0x110] sm:$0xff]  ;;  %v4305_v26 = vld [vmem:[%s4994_s5 + $0xe8] sm:$0xff] }
 0x35c   : > { %1548 = vmatprep.subr.mxu0 %v1469_v27  ;;  %1637 = vmatprep.subr.mxu1 %v1471_v28  ;;  %v4310_v27 = vld [vmem:[%s4994_s5 + $0xf8] sm:$0xff]  ;;  %v4317_v28 = vld [vmem:[%s4994_s5 + $0xe0] sm:$0xff] }
 0x35d   : > { %1549 = vmatpush1.msra.mxu0 %v1468_v29  ;;  %1638 = vmatpush1.msra.mxu1 %v1470_v30  ;;  %v4322_v29 = vld [vmem:[%s4994_s5 + $0xf0] sm:$0xff]  ;;  %v4327_v30 = vld [vmem:[%s4994_s5 + $0xc8] sm:$0xff] }
 0x35e   : > { %1550 = vmatprep.subr.mxu0 %v1465_v31  ;;  %1639 = vmatprep.subr.mxu1 %v1467_v32  ;;  %v4334_v31 = vld [vmem:[%s4994_s5 + $0xd8] sm:$0xff]  ;;  %v4339_v32 = vld [vmem:[%s4994_s5 + $0xc0] sm:$0xff] }
 0x35f   : > { %1551 = vmatpush1.msra.mxu0 %v1464_v33  ;;  %1640 = vmatpush1.msra.mxu1 %v1466_v34  ;;  %v4344_v33 = vld [vmem:[%s4994_s5 + $0xd0] sm:$0xff]  ;;  %v4351_v34 = vld [vmem:[%s4994_s5 + $0xa8] sm:$0xff] }
 0x360   : > { %1552 = vmatprep.subr.mxu0 %v1461_v35  ;;  %1641 = vmatprep.subr.mxu1 %v1463_v36  ;;  %v4356_v35 = vld [vmem:[%s4994_s5 + $0xb8] sm:$0xff]  ;;  %v4363_v36 = vld [vmem:[%s4994_s5 + $0xa0] sm:$0xff] }
 0x361   : > { %1553 = vmatpush1.msra.mxu0 %v1460_v37  ;;  %1642 = vmatpush1.msra.mxu1 %v1462_v38  ;;  %v4368_v37 = vld [vmem:[%s4994_s5 + $0xb0] sm:$0xff]  ;;  %v4375_v38 = vld [vmem:[%s4994_s5 + $0x88] sm:$0xff] }
 0x362   : > { %1554 = vmatprep.subr.mxu0 %v1457_v40  ;;  %1643 = vmatprep.subr.mxu1 %v1459_v41  ;;  %5215 = vst [vmem:[#allocation10_spill] sm:$0xff] %v4368_v37  ;;  %5216 = vst [vmem:[#allocation11_spill] sm:$0xff] %v4375_v38  ;;  %v4380_v40 = vld [vmem:[%s4994_s5 + $0x98] sm:$0xff]  ;;  %v4387_v41 = vld [vmem:[%s4994_s5 + $0x80] sm:$0xff] }
 0x363   : > { %1555 = vmatpush1.msra.mxu0 %v1456_v42  ;;  %1644 = vmatpush1.msra.mxu1 %v1458_v43  ;;  %5217 = vst [vmem:[#allocation12_spill] sm:$0xff] %v4380_v40  ;;  %5218 = vst [vmem:[#allocation13_spill] sm:$0xff] %v4387_v41  ;;  %v4392_v42 = vld [vmem:[%s4994_s5 + $0x90] sm:$0xff]  ;;  %v4399_v43 = vld [vmem:[%s4994_s5 + $0x68] sm:$0xff] }
 0x364   : > { %1556 = vmatprep.subr.mxu0 %v1453_v55  ;;  %1645 = vmatprep.subr.mxu1 %v1455_v44  ;;  %5219 = vst [vmem:[#allocation14_spill] sm:$0xff] %v4392_v42  ;;  %5220 = vst [vmem:[#allocation6_spill] sm:$0xff] %v4399_v43  ;;  %v4404_v55 = vld [vmem:[%s4994_s5 + $0x78] sm:$0xff]  ;;  %v4411_v44 = vld [vmem:[%s4994_s5 + $0x60] sm:$0xff] }
 0x365   : > { %1557 = vmatpush1.msra.mxu0 %v1452_v49  ;;  %1646 = vmatpush1.msra.mxu1 %v1454_v51  ;;  %5221 = vst [vmem:[#allocation7_spill] sm:$0xff] %v4404_v55  ;;  %5222 = vst [vmem:[#allocation35_spill] sm:$0xff] %v4411_v44  ;;  %v4416_v49 = vld [vmem:[%s4994_s5 + $0x70] sm:$0xff]  ;;  %v4423_v51 = vld [vmem:[%s4994_s5 + $0x48] sm:$0xff] }
 0x366   : > { %1558 = vmatprep.subr.mxu0 %v1449_v57  ;;  %1647 = vmatprep.subr.mxu1 %v1451_v54  ;;  %5223 = vst [vmem:[#allocation36_spill] sm:$0xff] %v4416_v49  ;;  %5224 = vst [vmem:[#allocation39_spill] sm:$0xff] %v4423_v51  ;;  %v4428_v57 = vld [vmem:[%s4994_s5 + $0x58] sm:$0xff]  ;;  %v4435_v54 = vld [vmem:[%s4994_s5 + $0x40] sm:$0xff] }
 0x367   : > { %1559 = vmatpush1.msra.mxu0 %v1448_v52  ;;  %1648 = vmatpush1.msra.mxu1 %v1450_v62  ;;  %5225 = vst [vmem:[#allocation37_spill] sm:$0xff] %v4428_v57  ;;  %5226 = vst [vmem:[#allocation15_spill] sm:$0xff] %v4435_v54  ;;  %v4440_v52 = vld [vmem:[%s4994_s5 + $0x50] sm:$0xff]  ;;  %v4449_v62 = vld [vmem:[%s4994_s5 + $0x28] sm:$0xff] }
 0x368   : > { %1560 = vmatprep.subr.mxu0 %v1445_v58  ;;  %1649 = vmatprep.subr.mxu1 %v1447_v39  ;;  %5227 = vst [vmem:[#allocation16_spill] sm:$0xff] %v4440_v52  ;;  %5228 = vst [vmem:[#allocation17_spill] sm:$0xff] %v4449_v62  ;;  %v4454_v58 = vld [vmem:[%s4994_s5 + $0x38] sm:$0xff]  ;;  %v4459_v39 = vld [vmem:[%s4994_s5 + $0x20] sm:$0xff] }
 0x369   : > { %1561 = vmatpush1.msra.mxu0 %v1444_v46  ;;  %1594 = vmatprep.mubr.f32.mxu0 %v5207_v22  ;;  %5229 = vst [vmem:[#allocation18_spill] sm:$0xff] %v4454_v58  ;;  %5230 = vst [vmem:[#allocation19_spill] sm:$0xff] %v4459_v39  ;;  %v4466_v46 = vld [vmem:[%s4994_s5 + $0x30] sm:$0xff] }
 0x36a   : > { %1650 = vmatpush1.msra.mxu1 %v1446_v53  ;;  %1683 = vmatprep.mubr.f32.mxu1 %v5207_v22  ;;  %5231 = vst [vmem:[#allocation20_spill] sm:$0xff] %v4466_v46  ;;  %v4471_v53 = vld [vmem:[%s4994_s5 + $0x8] sm:$0xff] }
 0x36b   : > { %1595 = vmatmul.mubr.f32.vlgmr.msra.gmra.mxu0 %v5212_v61  ;;  %1684 = vmatmul.mubr.f32.vlgmr.msra.gmra.mxu1 %v5212_v61  ;;  %5232 = vst [vmem:[#allocation21_spill] sm:$0xff] %v4471_v53  ;;  %v4476_v61 = vld [vmem:[%s4994_s5 + $0x18] sm:$0xff] }
 0x36c   : > { %1600 = vmatprep.mubr.f32.mxu0 %v5207_v22  ;;  %1689 = vmatprep.mubr.f32.mxu1 %v5207_v22  ;;  %5233 = vst [vmem:[#allocation22_spill] sm:$0xff] %v4476_v61 }
 0x36d   : > { %1796 = vmatprep.subr.mxu0 %v4115_v60 }
 0x36f   : > { %1601 = vmatmul.mubr.f32.gmra.mxu0 %v3826_v59  ;;  %1690 = vmatmul.mubr.f32.gmra.mxu1 %v3826_v59  ;;  %v4120_v59 = vld [vmem:[%s4994_s5 + $0x1f8] sm:$0xff] }
 0x370   : > { %1606 = vmatprep.mubr.f32.mxu0 %v5207_v22  ;;  %1695 = vmatprep.mubr.f32.mxu1 %v5207_v22  ;;  %5214 = vst [vmem:[#allocation9_spill] sm:$0xff] %v4120_v59 }
 0x371   : > { %1867 = vmatprep.subr.mxu1 %v4120_v59 }
 0x372   : > { %1868 = vmatpush1.msra.mxu1 %v4132_v45 }
 0x373   : > { %1607 = vmatmul.mubr.f32.gmra.mxu0 %v3908_v0  ;;  %1696 = vmatmul.mubr.f32.gmra.mxu1 %v3908_v0  ;;  %v4127_v0 = vld [vmem:[%s4994_s5 + $0x1e0] sm:$0xff] }
 0x374   : > { %1612 = vmatprep.mubr.f32.mxu0 %v5207_v22  ;;  %1701 = vmatprep.mubr.f32.mxu1 %v5207_v22 }
 0x375   : > { %1797 = vmatpush1.msra.mxu0 %v4127_v0  ;;  %1869 = vmatprep.subr.mxu1 %v4144_v63 }
 0x376   : > { %1798 = vmatprep.subr.mxu0 %v4139_v2  ;;  %1870 = vmatpush1.msra.mxu1 %v4156_v1 }
 0x377   : > { %1799 = vmatpush1.msra.mxu0 %v4151_v50  ;;  %1871 = vmatprep.subr.mxu1 %v4168_v3 }
 0x378   : > { %1800 = vmatprep.subr.mxu0 %v4163_v56  ;;  %1872 = vmatpush1.msra.mxu1 %v4180_v4 }
 0x379   : > { %1801 = vmatpush1.msra.mxu0 %v4175_v48  ;;  %1873 = vmatprep.subr.mxu1 %v4192_v6 }
 0x37a   : > { %1802 = vmatprep.subr.mxu0 %v4187_v5  ;;  %1874 = vmatpush1.msra.mxu1 %v4204_v8 }
 0x37b   : > { %1803 = vmatpush1.msra.mxu0 %v4199_v7  ;;  %1875 = vmatprep.subr.mxu1 %v4216_v10 }
 0x37c   : > { %1804 = vmatprep.subr.mxu0 %v4211_v9  ;;  %1876 = vmatpush1.msra.mxu1 %v4228_v12 }
 0x37d   : > { %1805 = vmatpush1.msra.mxu0 %v4223_v11  ;;  %1877 = vmatprep.subr.mxu1 %v4240_v14 }
 0x37e   : > { %1806 = vmatprep.subr.mxu0 %v4235_v13  ;;  %1878 = vmatpush1.msra.mxu1 %v4252_v16 }
 0x37f   : > { %1807 = vmatpush1.msra.mxu0 %v4247_v15  ;;  %1879 = vmatprep.subr.mxu1 %v4264_v18 }
 0x380   : > { %1808 = vmatprep.subr.mxu0 %v4259_v17  ;;  %1880 = vmatpush1.msra.mxu1 %v4276_v20 }
 0x381   : > { %1809 = vmatpush1.msra.mxu0 %v4271_v19  ;;  %1881 = vmatprep.subr.mxu1 %v4288_v23 }
 0x382   : > { %1810 = vmatprep.subr.mxu0 %v4283_v21  ;;  %1882 = vmatpush1.msra.mxu1 %v4300_v25 }
 0x383   : > { %1811 = vmatpush1.msra.mxu0 %v4293_v24  ;;  %1883 = vmatprep.subr.mxu1 %v4310_v27 }
 0x384   : > { %1812 = vmatprep.subr.mxu0 %v4305_v26  ;;  %1884 = vmatpush1.msra.mxu1 %v4322_v29 }
 0x385   : > { %1813 = vmatpush1.msra.mxu0 %v4317_v28  ;;  %1885 = vmatprep.subr.mxu1 %v4334_v31 }
 0x386   : > { %1814 = vmatprep.subr.mxu0 %v4327_v30  ;;  %1886 = vmatpush1.msra.mxu1 %v4344_v33 }
 0x387   : > { %1815 = vmatpush1.msra.mxu0 %v4339_v32  ;;  %1887 = vmatprep.subr.mxu1 %v4356_v35 }
 0x388   : > { %1816 = vmatprep.subr.mxu0 %v4351_v34  ;;  %1888 = vmatpush1.msra.mxu1 %v4368_v37 }
 0x389   : > { %1817 = vmatpush1.msra.mxu0 %v4363_v36  ;;  %1889 = vmatprep.subr.mxu1 %v4380_v40 }
 0x38a   : > { %1818 = vmatprep.subr.mxu0 %v4375_v38  ;;  %1890 = vmatpush1.msra.mxu1 %v4392_v42 }
 0x38b   : > { %1819 = vmatpush1.msra.mxu0 %v4387_v41  ;;  %1891 = vmatprep.subr.mxu1 %v4404_v55  ;;  %v5238_v55 = vld [vmem:[#allocation46_spill] sm:$0xff] }
 0x38c   : > { %1820 = vmatprep.subr.mxu0 %v4399_v43  ;;  %1892 = vmatpush1.msra.mxu1 %v4416_v49  ;;  %v5239_v43 = vld [vmem:[#allocation45_spill] sm:$0xff] }
 0x38d   : > { %1821 = vmatpush1.msra.mxu0 %v4411_v44  ;;  %1893 = vmatprep.subr.mxu1 %v4428_v57 }
 0x38e   : > { %1822 = vmatprep.subr.mxu0 %v4423_v51  ;;  %1894 = vmatpush1.msra.mxu1 %v4440_v52  ;;  %v4483_v52 = vld [vmem:[%s4994_s5] sm:$0xff] }
 0x38f   : > { %1823 = vmatpush1.msra.mxu0 %v4435_v54  ;;  %1895 = vmatprep.subr.mxu1 %v4454_v58  ;;  %5234 = vst [vmem:[#allocation23_spill] sm:$0xff] %v4483_v52  ;;  %v4488_v54 = vld [vmem:[%s4994_s5 + $0x10] sm:$0xff] }
 0x390   : > { %1824 = vmatprep.subr.mxu0 %v4449_v62  ;;  %5235 = vst [vmem:[#allocation24_spill] sm:$0xff] %v4488_v54  ;;  %1896 = vmatpush1.msra.mxu1 %v4466_v46  ;;  %v5236_v62 = vld [vmem:[#allocation42_spill] sm:$0xff] }
 0x391   : > { %1825 = vmatpush1.msra.mxu0 %v4459_v39  ;;  %1897 = vmatprep.subr.mxu1 %v4476_v61  ;;  %v5237_v39 = vld [vmem:[#allocation44_spill] sm:$0xff] }
 0x392   : > { %1826 = vmatprep.subr.mxu0 %v4471_v53  ;;  %1898 = vmatpush1.msra.mxu1 %v4488_v54 }
 0x393   : > { %1827 = vmatpush1.msra.mxu0 %v4483_v52  ;;  %2041 = vmatprep.subr.mxu1 %v4120_v59 }
 0x394   : > { %1970 = vmatprep.subr.mxu0 %v4115_v60 }
 0x40a   : > { %v1332_v58 = vpop.f32.mrf.mxu0  ;;  %v1403_v46 = vpop.f32.mrf.mxu1 }
 0x40b   : > { %v1408_v57 = vadd.f32 %v1332_v58, %v5236_v62  ;;  %v1410_v54 = vadd.f32 %v1403_v46, %v5239_v43  ;;  %v5244_v46 = vld [vmem:[#allocation35_spill] sm:$0xff] }
 0x40c   : > { %v1334_v51 = vpop.f32.mrf.mxu0  ;;  %v1405_v61 = vpop.f32.mrf.mxu1 }
 0x40d   : > { %v2763_v49 = vmul.f32 -1.442695, %v1408_v57  ;;  %v1409_v44 = vadd.f32 %v1334_v51, %v5237_v39  ;;  %v1411_v52 = vadd.f32 %v1405_v61, %v5238_v55  ;;  %v5245_v61 = vld [vmem:[#allocation36_spill] sm:$0xff] }
 0x40f   : > { %2876 = vpow2.f32 %v2763_v49  ;;  %v2764_v53 = vmul.f32 -1.442695, %v1409_v44  ;;  %v2765_v42 = vmul.f32 -1.442695, %v1411_v52  ;;  %v5243_v52 = vld [vmem:[#allocation7_spill] sm:$0xff] }
 0x411   : > { %2878 = vpow2.f32 %v2764_v53 }
 0x412   : > { %2880 = vtanh.f32 %v1410_v54 }
 0x413   : > { %2882 = vpow2.f32 %v2765_v42  ;;  %v5242_v42 = vld [vmem:[#allocation6_spill] sm:$0xff] }
 0x41c   : > { %v2877_v60 = vpop.eup %2876 }
 0x41d   : > { %v1415_v41 = vadd.f32 1.0, %v2877_v60 }
 0x41e   : > { %v2879_v59 = vpop.eup %2878 }
 0x41f   : > { %2884 = vrcp.f32 %v1415_v41  ;;  %v1421_v62 = vadd.f32 1.0, %v2879_v59  ;;  %v2881_v57 = vpop.eup %2880  ;;  %v1725_v59 = vld [vmem:[#allocation4 + $0x8] sm:$0xff]  ;;  %v5241_v41 = vld [vmem:[#allocation14_spill] sm:$0xff] }
 0x420   : > { %v2883_v51 = vpop.eup %2882 }
 0x421   : > { %2886 = vrcp.f32 %v1421_v62  ;;  %v1428_v39 = vadd.f32 1.0, %v2883_v51  ;;  %v5246_v62 = vld [vmem:[#allocation39_spill] sm:$0xff] }
 0x422   : > { %v5248_v51 = vld [vmem:[#allocation15_spill] sm:$0xff] }
 0x423   : > { %2888 = vrcp.f32 %v1428_v39  ;;  %v5252_v39 = vld [vmem:[#allocation19_spill] sm:$0xff] }
 0x42c   : > { %v2885_v49 = vpop.eup %2884 }
 0x42d   : > { %v1432_v58 = vmul.f32 %v2885_v49, %v2881_v57  ;;  %v5247_v57 = vld [vmem:[#allocation37_spill] sm:$0xff]  ;;  %v5249_v49 = vld [vmem:[#allocation16_spill] sm:$0xff] }
 0x42e   : > { %v2887_v44 = vpop.eup %2886 }
 0x42f   : > { %v1431_v53 = vmul.f32 %v2887_v44, %v3905_v47  ;;  %v5240_v47 = vld [vmem:[#allocation13_spill] sm:$0xff]  ;;  %v5251_v44 = vld [vmem:[#allocation18_spill] sm:$0xff] }
 0x430   : > { %v2889_v43 = vpop.eup %2888 }
 0x431   : > { %v1433_v55 = vadd.f32 %v1432_v58, %v1431_v53  ;;  %v5250_v58 = vld [vmem:[#allocation17_spill] sm:$0xff]  ;;  %v5253_v53 = vld [vmem:[#allocation20_spill] sm:$0xff] }
 0x433   : > { %2890 = vtanh.f32 %v1433_v55  ;;  %1439 = vst [vmem:[#allocation5 + $0x8] sm:$0xff] %v1433_v55  ;;  %v5254_v55 = vld [vmem:[#allocation21_spill] sm:$0xff] }
 0x440   : > { %v2891_v60 = vpop.eup %2890 }
 0x441   : > { %v1435_v54 = vmul.f32 %v2891_v60, %v2889_v43  ;;  %v5255_v43 = vld [vmem:[#allocation22_spill] sm:$0xff]  ;;  %v5256_v60 = vld [vmem:[#allocation23_spill] sm:$0xff] }
 0x443   : > { %1438 = vst [vmem:[#allocation4] sm:$0xff] %v1435_v54  ;;  %1613 = vmatmul.mubr.f32.gmra.mxu0 %v1435_v54  ;;  %1702 = vmatmul.mubr.f32.gmra.mxu1 %v1435_v54  ;;  %v5257_v54 = vld [vmem:[#allocation24_spill] sm:$0xff] }
 0x444   : > { %1860 = vmatprep.mubr.f32.mxu0 %v5207_v22  ;;  %1931 = vmatprep.mubr.f32.mxu1 %v5207_v22 }
 0x447   : > { %1861 = vmatmul.mubr.f32.vlgmr.msra.gmra.mxu0 %v1725_v59  ;;  %1932 = vmatmul.mubr.f32.vlgmr.msra.gmra.mxu1 %v1725_v59  ;;  %v5258_v59 = vld [vmem:[#allocation8_spill] sm:$0xff] }
 0x448   : > { %1971 = vmatpush1.msra.mxu0 %v4127_v0  ;;  %2042 = vmatpush1.msra.mxu1 %v4132_v45 }
 0x449   : > { %1972 = vmatprep.subr.mxu0 %v4139_v2  ;;  %2043 = vmatprep.subr.mxu1 %v4144_v63 }
 0x44a   : > { %1973 = vmatpush1.msra.mxu0 %v4151_v50  ;;  %2044 = vmatpush1.msra.mxu1 %v4156_v1 }
 0x44b   : > { %1974 = vmatprep.subr.mxu0 %v4163_v56  ;;  %2045 = vmatprep.subr.mxu1 %v4168_v3 }
 0x44c   : > { %1975 = vmatpush1.msra.mxu0 %v4175_v48  ;;  %2046 = vmatpush1.msra.mxu1 %v4180_v4 }
 0x44d   : > { %1976 = vmatprep.subr.mxu0 %v4187_v5  ;;  %2047 = vmatprep.subr.mxu1 %v4192_v6 }
 0x44e   : > { %1977 = vmatpush1.msra.mxu0 %v4199_v7  ;;  %2048 = vmatpush1.msra.mxu1 %v4204_v8 }
 0x44f   : > { %1978 = vmatprep.subr.mxu0 %v4211_v9  ;;  %2049 = vmatprep.subr.mxu1 %v4216_v10 }
 0x450   : > { %1979 = vmatpush1.msra.mxu0 %v4223_v11  ;;  %2050 = vmatpush1.msra.mxu1 %v4228_v12 }
 0x451   : > { %1980 = vmatprep.subr.mxu0 %v4235_v13  ;;  %2051 = vmatprep.subr.mxu1 %v4240_v14 }
 0x452   : > { %1981 = vmatpush1.msra.mxu0 %v4247_v15  ;;  %2052 = vmatpush1.msra.mxu1 %v4252_v16 }
 0x453   : > { %1982 = vmatprep.subr.mxu0 %v4259_v17  ;;  %2053 = vmatprep.subr.mxu1 %v4264_v18 }
 0x454   : > { %1983 = vmatpush1.msra.mxu0 %v4271_v19  ;;  %2054 = vmatpush1.msra.mxu1 %v4276_v20 }
 0x455   : > { %1984 = vmatprep.subr.mxu0 %v4283_v21  ;;  %2055 = vmatprep.subr.mxu1 %v4288_v23 }
 0x456   : > { %1985 = vmatpush1.msra.mxu0 %v4293_v24  ;;  %2056 = vmatpush1.msra.mxu1 %v4300_v25 }
 0x457   : > { %1986 = vmatprep.subr.mxu0 %v4305_v26  ;;  %2057 = vmatprep.subr.mxu1 %v4310_v27 }
 0x458   : > { %1987 = vmatpush1.msra.mxu0 %v4317_v28  ;;  %2058 = vmatpush1.msra.mxu1 %v4322_v29 }
 0x459   : > { %1988 = vmatprep.subr.mxu0 %v4327_v30  ;;  %2059 = vmatprep.subr.mxu1 %v4334_v31 }
 0x45a   : > { %1989 = vmatpush1.msra.mxu0 %v4339_v32  ;;  %2060 = vmatpush1.msra.mxu1 %v4344_v33 }
 0x45b   : > { %1990 = vmatprep.subr.mxu0 %v4351_v34  ;;  %2061 = vmatprep.subr.mxu1 %v4356_v35 }
 0x45c   : > { %1991 = vmatpush1.msra.mxu0 %v4363_v36  ;;  %2062 = vmatpush1.msra.mxu1 %v4368_v37 }
 0x45d   : > { %1992 = vmatprep.subr.mxu0 %v4375_v38  ;;  %2063 = vmatprep.subr.mxu1 %v4380_v40 }
 0x45e   : > { %1993 = vmatpush1.msra.mxu0 %v5240_v47  ;;  %2064 = vmatpush1.msra.mxu1 %v5241_v41 }
 0x45f   : > { %1994 = vmatprep.subr.mxu0 %v5242_v42  ;;  %2065 = vmatprep.subr.mxu1 %v5243_v52 }
 0x460   : > { %1995 = vmatpush1.msra.mxu0 %v5244_v46  ;;  %2066 = vmatpush1.msra.mxu1 %v5245_v61 }
 0x461   : > { %1996 = vmatprep.subr.mxu0 %v5246_v62  ;;  %2067 = vmatprep.subr.mxu1 %v5247_v57 }
 0x462   : > { %1997 = vmatpush1.msra.mxu0 %v5248_v51  ;;  %2068 = vmatpush1.msra.mxu1 %v5249_v49 }
 0x463   : > { %1998 = vmatprep.subr.mxu0 %v5250_v58  ;;  %2069 = vmatprep.subr.mxu1 %v5251_v44  ;;  %v5259_v58 = vld [vmem:[#allocation9_spill] sm:$0xff]  ;;  %v1596_v44 = vpop.f32.mrf.mxu0 }
 0x464   : > { %1999 = vmatpush1.msra.mxu0 %v5252_v39  ;;  %2070 = vmatpush1.msra.mxu1 %v5253_v53  ;;  %v1685_v39 = vpop.f32.mrf.mxu1 }
 0x465   : > { %2000 = vmatprep.subr.mxu0 %v5254_v55  ;;  %2071 = vmatprep.subr.mxu1 %v5255_v43  ;;  %v1598_v49 = vpop.f32.mrf.mxu0 }
 0x466   : > { %2001 = vmatpush1.msra.mxu0 %v5256_v60  ;;  %2034 = vmatprep.mubr.f32.mxu0 %v5207_v22  ;;  %v1687_v53 = vpop.f32.mrf.mxu1 }
 0x467   : > { %2072 = vmatpush1.msra.mxu1 %v5257_v54  ;;  %2105 = vmatprep.mubr.f32.mxu1 %v5207_v22  ;;  %v4571_v51 = vpop.f32.mrf.mxu0  ;;  %v5267_v22 = vld [vmem:[#allocation33_spill] sm:$0xff] }
 0x468   : > { %2144 = vmatprep.subr.mxu0 %v5258_v59  ;;  %2215 = vmatprep.subr.mxu1 %v5259_v58  ;;  %5260 = vst [vmem:[#allocation25_spill] sm:$0xff] %v4571_v51  ;;  %v4573_v55 = vpop.f32.mrf.mxu1  ;;  %v1508_v58 = vld [vmem:[%s4995_s6] sm:$0xf] }
 0x469   : > { %5261 = vst [vmem:[#allocation26_spill] sm:$0xff] %v4573_v55  ;;  %v4575_v43 = vpop.f32.mrf.mxu0  ;;  %v4589_v62 = vrot.slane %v1508_v58, %v5267_v22 }
 0x46a   : > { %5262 = vst [vmem:[#allocation27_spill] sm:$0xff] %v4575_v43  ;;  %v4577_v60 = vpop.f32.mrf.mxu1  ;;  %v5271_v43 = vld [vmem:[#allocation34_spill] sm:$0xff] }
 0x46b   : > { %5263 = vst [vmem:[#allocation28_spill] sm:$0xff] %v4577_v60  ;;  %v4579_v57 = vpop.f32.mrf.mxu0  ;;  %5268 = vst [vmem:[#allocation38_spill] sm:$0xff] %v4589_v62  ;;  %v4596_v61 = vrot.slane %v1508_v58, %v5271_v43  ;;  %v5275_v43 = vld [vmem:[#allocation32_spill] sm:$0xff] }
 0x46c   : > { %5264 = vst [vmem:[#allocation29_spill] sm:$0xff] %v4579_v57  ;;  %v4581_v54 = vpop.f32.mrf.mxu1  ;;  %v5276_v40 = vsub.s32 3, %v5275_v43 }
 0x46d   : > { %5265 = vst [vmem:[#allocation30_spill] sm:$0xff] %v4581_v54  ;;  %v4586_v59 = vpop.f32.mrf.mxu0  ;;  %v1597_v54 = vadd.f32 %v1596_v44, %v4589_v62  ;;  %v1599_v52 = vadd.f32 %v1598_v49, %v4596_v61 }
 0x46e   : > { %5266 = vst [vmem:[#allocation31_spill] sm:$0xff] %v4586_v59  ;;  %v4591_v51 = vpop.f32.mrf.mxu1  ;;  %v4608_v38 = vrot.slane %v1508_v58, %v5276_v40 }
 0x46f   : > { %5269 = vst [vmem:[#allocation40_spill] sm:$0xff] %v4591_v51 }
 0x470   : > { %5277 = vst [vmem:[#allocation44_spill] sm:$0xff] %v4608_v38  ;;  %v1688_v44 = vadd.f32 %v1687_v53, %v4608_v38  ;;  %v1727_v53 = vld [vmem:[#allocation5] sm:$0xff] }
 0x503   : > { %v4593_v55 = vpop.f32.mrf.mxu0  ;;  %v4598_v60 = vpop.f32.mrf.mxu1 }
 0x504   : > { %5270 = vst [vmem:[#allocation43_spill] sm:$0xff] %v4593_v55  ;;  %5272 = vst [vmem:[#allocation41_spill] sm:$0xff] %v4598_v60 }
 0x505   : > { %v4600_v57 = vpop.f32.mrf.mxu0  ;;  %v4604_v59 = vpop.f32.mrf.mxu1 }
 0x506   : > { %5273 = vst [vmem:[#allocation47_spill] sm:$0xff] %v4600_v57  ;;  %5274 = vst [vmem:[#allocation42_spill] sm:$0xff] %v4604_v59  ;;  %v5278_v57 = vsub.s32 2, %v5275_v43 }
 0x507   : > { %v1862_v46 = vpop.f32.mrf.mxu0  ;;  %v1933_v55 = vpop.f32.mrf.mxu1 }
 0x508   : > { %v1938_v22 = vadd.f32 %v1862_v46, %v1597_v54  ;;  %v4613_v49 = vrot.slane %v1508_v58, %v5278_v57 }
 0x509   : > { %v1864_v42 = vpop.f32.mrf.mxu0  ;;  %v1935_v60 = vpop.f32.mrf.mxu1 }
 0x50a   : > { %v2766_v41 = vmul.f32 -1.442695, %v1938_v22  ;;  %v1939_v51 = vadd.f32 %v1864_v42, %v1599_v52  ;;  %v1941_v59 = vadd.f32 %v1935_v60, %v1688_v44  ;;  %v1686_v46 = vadd.f32 %v1685_v39, %v4613_v49 }
 0x50c   : > { %2892 = vpow2.f32 %v2766_v41  ;;  %v2767_v47 = vmul.f32 -1.442695, %v1939_v51  ;;  %v2768_v54 = vmul.f32 -1.442695, %v1941_v59  ;;  %v1940_v41 = vadd.f32 %v1933_v55, %v1686_v46  ;;  %v5280_v46 = vld [vmem:[#allocation12_spill] sm:$0xff] }
 0x50e   : > { %2894 = vpow2.f32 %v2767_v47 }
 0x50f   : > { %2896 = vpow2.f32 %v2768_v54  ;;  %v5281_v54 = vld [vmem:[#allocation13_spill] sm:$0xff] }
 0x519   : > { %v2893_v42 = vpop.eup %2892 }
 0x51a   : > { %v1945_v52 = vadd.f32 1.0, %v2893_v42  ;;  %v5282_v42 = vld [vmem:[#allocation14_spill] sm:$0xff] }
 0x51b   : > { %v2895_v51 = vpop.eup %2894 }
 0x51c   : > { %2898 = vrcp.f32 %v1945_v52  ;;  %v1951_v40 = vadd.f32 1.0, %v2895_v51  ;;  %v2897_v47 = vpop.eup %2896  ;;  %v5284_v52 = vld [vmem:[#allocation7_spill] sm:$0xff] }
 0x51d   : > { %2900 = vtanh.f32 %v1940_v41  ;;  %v1958_v57 = vadd.f32 1.0, %v2897_v47  ;;  %v5283_v41 = vld [vmem:[#allocation6_spill] sm:$0xff]  ;;  %v5285_v51 = vld [vmem:[#allocation35_spill] sm:$0xff] }
 0x51e   : > { %2902 = vrcp.f32 %v1951_v40  ;;  %v5286_v40 = vld [vmem:[#allocation36_spill] sm:$0xff]  ;;  %v5287_v47 = vld [vmem:[#allocation39_spill] sm:$0xff] }
 0x51f   : > { %2904 = vrcp.f32 %v1958_v57  ;;  %v5291_v57 = vld [vmem:[#allocation17_spill] sm:$0xff] }
 0x529   : > { %v2899_v22 = vpop.eup %2898 }
 0x52a   : > { %v2901_v38 = vpop.eup %2900 }
 0x52b   : > { %v2903_v43 = vpop.eup %2902  ;;  %v1962_v58 = vmul.f32 %v2901_v38, %v2899_v22  ;;  %v5279_v38 = vld [vmem:[#allocation11_spill] sm:$0xff]  ;;  %v5288_v22 = vld [vmem:[#allocation37_spill] sm:$0xff] }
 0x52c   : > { %v1961_v60 = vmul.f32 %v2903_v43, %v1727_v53  ;;  %v2905_v39 = vpop.eup %2904  ;;  %v5289_v53 = vld [vmem:[#allocation15_spill] sm:$0xff]  ;;  %v5290_v43 = vld [vmem:[#allocation16_spill] sm:$0xff] }
 0x52e   : > { %v4616_v44 = vadd.f32 %v1962_v58, %v1961_v60  ;;  %v5292_v58 = vld [vmem:[#allocation18_spill] sm:$0xff]  ;;  %v5293_v60 = vld [vmem:[#allocation19_spill] sm:$0xff] }
 0x530   : > { %2906 = vtanh.f32 %v4616_v44 }
 0x53d   : > { %v2907_v55 = vpop.eup %2906 }
 0x53e   : > { %v1965_v59 = vmul.f32 %v2907_v55, %v2905_v39  ;;  %v5294_v39 = vld [vmem:[#allocation20_spill] sm:$0xff]  ;;  %v5295_v55 = vld [vmem:[#allocation21_spill] sm:$0xff] }
 0x540   : > { %2035 = vmatmul.mubr.f32.vlgmr.msra.gmra.mxu0 %v1965_v59  ;;  %2106 = vmatmul.mubr.f32.vlgmr.msra.gmra.mxu1 %v1965_v59  ;;  %v5296_v59 = vld [vmem:[#allocation22_spill] sm:$0xff] }
 0x541   : > { %2145 = vmatpush1.msra.mxu0 %v4127_v0  ;;  %2216 = vmatpush1.msra.mxu1 %v4132_v45 }
 0x542   : > { %2146 = vmatprep.subr.mxu0 %v4139_v2  ;;  %2217 = vmatprep.subr.mxu1 %v4144_v63 }
 0x543   : > { %2147 = vmatpush1.msra.mxu0 %v4151_v50  ;;  %2218 = vmatpush1.msra.mxu1 %v4156_v1 }
 0x544   : > { %2148 = vmatprep.subr.mxu0 %v4163_v56  ;;  %2219 = vmatprep.subr.mxu1 %v4168_v3 }
 0x545   : > { %2149 = vmatpush1.msra.mxu0 %v4175_v48  ;;  %2220 = vmatpush1.msra.mxu1 %v4180_v4 }
 0x546   : > { %2150 = vmatprep.subr.mxu0 %v4187_v5  ;;  %2221 = vmatprep.subr.mxu1 %v4192_v6 }
 0x547   : > { %2151 = vmatpush1.msra.mxu0 %v4199_v7  ;;  %2222 = vmatpush1.msra.mxu1 %v4204_v8 }
 0x548   : > { %2152 = vmatprep.subr.mxu0 %v4211_v9  ;;  %2223 = vmatprep.subr.mxu1 %v4216_v10 }
 0x549   : > { %2153 = vmatpush1.msra.mxu0 %v4223_v11  ;;  %2224 = vmatpush1.msra.mxu1 %v4228_v12 }
 0x54a   : > { %2154 = vmatprep.subr.mxu0 %v4235_v13  ;;  %2225 = vmatprep.subr.mxu1 %v4240_v14 }
 0x54b   : > { %2155 = vmatpush1.msra.mxu0 %v4247_v15  ;;  %2226 = vmatpush1.msra.mxu1 %v4252_v16 }
 0x54c   : > { %2156 = vmatprep.subr.mxu0 %v4259_v17  ;;  %2227 = vmatprep.subr.mxu1 %v4264_v18 }
 0x54d   : > { %2157 = vmatpush1.msra.mxu0 %v4271_v19  ;;  %2228 = vmatpush1.msra.mxu1 %v4276_v20 }
 0x54e   : > { %2158 = vmatprep.subr.mxu0 %v4283_v21  ;;  %2229 = vmatprep.subr.mxu1 %v4288_v23 }
 0x54f   : > { %2159 = vmatpush1.msra.mxu0 %v4293_v24  ;;  %2230 = vmatpush1.msra.mxu1 %v4300_v25 }
 0x550   : > { %2160 = vmatprep.subr.mxu0 %v4305_v26  ;;  %2231 = vmatprep.subr.mxu1 %v4310_v27 }
 0x551   : > { %2161 = vmatpush1.msra.mxu0 %v4317_v28  ;;  %2232 = vmatpush1.msra.mxu1 %v4322_v29 }
 0x552   : > { %2162 = vmatprep.subr.mxu0 %v4327_v30  ;;  %2233 = vmatprep.subr.mxu1 %v4334_v31 }
 0x553   : > { %2163 = vmatpush1.msra.mxu0 %v4339_v32  ;;  %2234 = vmatpush1.msra.mxu1 %v4344_v33 }
 0x554   : > { %2164 = vmatprep.subr.mxu0 %v4351_v34  ;;  %2235 = vmatprep.subr.mxu1 %v4356_v35 }
 0x555   : > { %2165 = vmatpush1.msra.mxu0 %v4363_v36  ;;  %2236 = vmatpush1.msra.mxu1 %v4368_v37 }
 0x556   : > { %2166 = vmatprep.subr.mxu0 %v5279_v38  ;;  %2237 = vmatprep.subr.mxu1 %v5280_v46  ;;  %v5306_v46 = vld [vmem:[#allocation26_spill] sm:$0xff] }
 0x557   : > { %2167 = vmatpush1.msra.mxu0 %v5281_v54  ;;  %2238 = vmatpush1.msra.mxu1 %v5282_v42  ;;  %v5304_v42 = vld [vmem:[#allocation44_spill] sm:$0xff] }
 0x558   : > { %2168 = vmatprep.subr.mxu0 %v5283_v41  ;;  %2239 = vmatprep.subr.mxu1 %v5284_v52 }
 0x559   : > { %2169 = vmatpush1.msra.mxu0 %v5285_v51  ;;  %2240 = vmatpush1.msra.mxu1 %v5286_v40  ;;  %v5297_v40 = vld [vmem:[#allocation23_spill] sm:$0xff] }
 0x55a   : > { %2170 = vmatprep.subr.mxu0 %v5287_v47  ;;  %2241 = vmatprep.subr.mxu1 %v5288_v22  ;;  %v5298_v47 = vmov 0.0   ;;  %v5299_v22 = vld [vmem:[#allocation24_spill] sm:$0xff] }
 0x55b   : > { %2171 = vmatpush1.msra.mxu0 %v5289_v53  ;;  %2242 = vmatpush1.msra.mxu1 %v5290_v43  ;;  %v5300_v43 = vld [vmem:[#allocation8_spill] sm:$0xff] }
 0x55c   : > { %2172 = vmatprep.subr.mxu0 %v5291_v57  ;;  %2243 = vmatprep.subr.mxu1 %v5292_v58  ;;  %v5301_v57 = vld [vmem:[#allocation9_spill] sm:$0xff] }
 0x55d   : > { %2173 = vmatpush1.msra.mxu0 %v5293_v60  ;;  %2244 = vmatpush1.msra.mxu1 %v5294_v39  ;;  %v5302_v60 = vld [vmem:[#allocation25_spill] sm:$0xff] }
 0x55e   : > { %2174 = vmatprep.subr.mxu0 %v5295_v55  ;;  %2245 = vmatprep.subr.mxu1 %v5296_v59  ;;  %v1603_v58 = vadd.f32 %v5302_v60, %v4589_v62  ;;  %v5303_v55 = vld [vmem:[#allocation27_spill] sm:$0xff]  ;;  %v1692_v60 = vadd.f32 %v5306_v46, %v4613_v49 }
 0x55f   : > { %2175 = vmatpush1.msra.mxu0 %v5297_v40  ;;  %2208 = vmatprep.mubr.f32.mxu0 %v5298_v47  ;;  %v1605_v53 = vadd.f32 %v5303_v55, %v4596_v61 }
 0x560   : > { %2246 = vmatpush1.msra.mxu1 %v5299_v22  ;;  %2279 = vmatprep.mubr.f32.mxu1 %v5298_v47 }
 0x561   : > { %2318 = vmatprep.subr.mxu0 %v5300_v43  ;;  %2389 = vmatprep.subr.mxu1 %v5301_v57  ;;  %v5305_v43 = vld [vmem:[#allocation28_spill] sm:$0xff] }
 0x562   : > { %v1694_v54 = vadd.f32 %v5305_v43, %v5304_v42 }
 0x600   : > { %v2036_v39 = vpop.f32.mrf.mxu0  ;;  %v2107_v41 = vpop.f32.mrf.mxu1 }
 0x601   : > { %v2112_v59 = vadd.f32 %v2036_v39, %v1603_v58  ;;  %v2114_v62 = vadd.f32 %v2107_v41, %v1692_v60 }
 0x602   : > { %v2038_v51 = vpop.f32.mrf.mxu0  ;;  %v2109_v47 = vpop.f32.mrf.mxu1 }
 0x603   : > { %v2769_v40 = vmul.f32 -1.442695, %v2112_v59  ;;  %v2113_v52 = vadd.f32 %v2038_v51, %v1605_v53  ;;  %v2115_v57 = vadd.f32 %v2109_v47, %v1694_v54 }
 0x605   : > { %2908 = vpow2.f32 %v2769_v40  ;;  %v2770_v22 = vmul.f32 -1.442695, %v2113_v52  ;;  %v2771_v38 = vmul.f32 -1.442695, %v2115_v57 }
 0x607   : > { %2910 = vpow2.f32 %v2770_v22 }
 0x608   : > { %2912 = vtanh.f32 %v2114_v62 }
 0x609   : > { %2914 = vpow2.f32 %v2771_v38 }
 0x612   : > { %v2909_v37 = vpop.eup %2908 }
 0x613   : > { %v2119_v55 = vadd.f32 1.0, %v2909_v37 }
 0x614   : > { %v2911_v58 = vpop.eup %2910 }
 0x615   : > { %2916 = vrcp.f32 %v2119_v55  ;;  %v2125_v51 = vadd.f32 1.0, %v2911_v58  ;;  %v2913_v52 = vpop.eup %2912 }
 0x616   : > { %v2915_v40 = vpop.eup %2914 }
 0x617   : > { %2918 = vrcp.f32 %v2125_v51  ;;  %v2132_v59 = vadd.f32 1.0, %v2915_v40 }
 0x619   : > { %2920 = vrcp.f32 %v2132_v59 }
 0x622   : > { %v2917_v22 = vpop.eup %2916 }
 0x623   : > { %v2136_v53 = vmul.f32 %v2917_v22, %v2913_v52 }
 0x624   : > { %v2919_v39 = vpop.eup %2918 }
 0x625   : > { %v2135_v54 = vmul.f32 %v2919_v39, %v4616_v44 }
 0x626   : > { %v2921_v37 = vpop.eup %2920 }
 0x627   : > { %v4694_v47 = vadd.f32 %v2136_v53, %v2135_v54 }
 0x629   : > { %2922 = vtanh.f32 %v4694_v47 }
 0x636   : > { %v2923_v62 = vpop.eup %2922 }
 0x637   : > { %v2139_v46 = vmul.f32 %v2923_v62, %v2921_v37  ;;  %v5334_v37 = vld [vmem:[#allocation43_spill] sm:$0xff] }
 0x639   : > { %2209 = vmatmul.mubr.f32.vlgmr.msra.gmra.mxu0 %v2139_v46  ;;  %2280 = vmatmul.mubr.f32.vlgmr.msra.gmra.mxu1 %v2139_v46 }
 0x63a   : > { %2319 = vmatpush1.msra.mxu0 %v4127_v0  ;;  %2390 = vmatpush1.msra.mxu1 %v4132_v45  ;;  %v5307_v0 = vld [vmem:[#allocation10_spill] sm:$0xff]  ;;  %v5308_v45 = vld [vmem:[#allocation11_spill] sm:$0xff] }
 0x63b   : > { %2320 = vmatprep.subr.mxu0 %v4139_v2  ;;  %2391 = vmatprep.subr.mxu1 %v4144_v63  ;;  %v5309_v2 = vld [vmem:[#allocation12_spill] sm:$0xff]  ;;  %v5310_v63 = vld [vmem:[#allocation13_spill] sm:$0xff] }
 0x63c   : > { %2321 = vmatpush1.msra.mxu0 %v4151_v50  ;;  %2392 = vmatpush1.msra.mxu1 %v4156_v1  ;;  %v5311_v50 = vld [vmem:[#allocation14_spill] sm:$0xff] }
 0x63d   : > { %2322 = vmatprep.subr.mxu0 %v4163_v56  ;;  %2393 = vmatprep.subr.mxu1 %v4168_v3  ;;  %v5312_v1 = vld [vmem:[#allocation6_spill] sm:$0xff]  ;;  %v5313_v56 = vld [vmem:[#allocation7_spill] sm:$0xff] }
 0x63e   : > { %2323 = vmatpush1.msra.mxu0 %v4175_v48  ;;  %2394 = vmatpush1.msra.mxu1 %v4180_v4  ;;  %v5314_v3 = vld [vmem:[#allocation35_spill] sm:$0xff]  ;;  %v5315_v48 = vld [vmem:[#allocation36_spill] sm:$0xff] }
 0x63f   : > { %2324 = vmatprep.subr.mxu0 %v4187_v5  ;;  %2395 = vmatprep.subr.mxu1 %v4192_v6  ;;  %v5316_v4 = vld [vmem:[#allocation39_spill] sm:$0xff]  ;;  %v5317_v5 = vld [vmem:[#allocation37_spill] sm:$0xff] }
 0x640   : > { %2325 = vmatpush1.msra.mxu0 %v4199_v7  ;;  %2396 = vmatpush1.msra.mxu1 %v4204_v8  ;;  %v5318_v6 = vld [vmem:[#allocation15_spill] sm:$0xff]  ;;  %v5319_v7 = vld [vmem:[#allocation16_spill] sm:$0xff]  ;;  %v5320_v8 = vld [vmem:[#allocation17_spill] sm:$0xff] }
 0x641   : > { %2326 = vmatprep.subr.mxu0 %v4211_v9  ;;  %2397 = vmatprep.subr.mxu1 %v4216_v10  ;;  %v5321_v9 = vld [vmem:[#allocation18_spill] sm:$0xff]  ;;  %v5322_v10 = vld [vmem:[#allocation19_spill] sm:$0xff] }
 0x642   : > { %2327 = vmatpush1.msra.mxu0 %v4223_v11  ;;  %2398 = vmatpush1.msra.mxu1 %v4228_v12  ;;  %v5323_v11 = vld [vmem:[#allocation20_spill] sm:$0xff]  ;;  %v5324_v12 = vld [vmem:[#allocation21_spill] sm:$0xff] }
 0x643   : > { %2328 = vmatprep.subr.mxu0 %v4235_v13  ;;  %2399 = vmatprep.subr.mxu1 %v4240_v14  ;;  %v5325_v13 = vld [vmem:[#allocation22_spill] sm:$0xff]  ;;  %v5326_v14 = vld [vmem:[#allocation23_spill] sm:$0xff] }
 0x644   : > { %2329 = vmatpush1.msra.mxu0 %v4247_v15  ;;  %2400 = vmatpush1.msra.mxu1 %v4252_v16  ;;  %v5327_v15 = vmov 0.0   ;;  %v5328_v16 = vld [vmem:[#allocation24_spill] sm:$0xff] }
 0x645   : > { %2330 = vmatprep.subr.mxu0 %v4259_v17  ;;  %2401 = vmatprep.subr.mxu1 %v4264_v18  ;;  %v5329_v17 = vld [vmem:[#allocation38_spill] sm:$0xff]  ;;  %v5330_v18 = vld [vmem:[#allocation29_spill] sm:$0xff] }
 0x646   : > { %2331 = vmatpush1.msra.mxu0 %v4271_v19  ;;  %2402 = vmatpush1.msra.mxu1 %v4276_v20  ;;  %v1609_v19 = vadd.f32 %v5330_v18, %v5329_v17  ;;  %v1615_v62 = vadd.f32 %v5334_v37, %v5329_v17 }
 0x647   : > { %2332 = vmatprep.subr.mxu0 %v4283_v21  ;;  %2403 = vmatprep.subr.mxu1 %v4288_v23  ;;  %v5331_v21 = vld [vmem:[#allocation31_spill] sm:$0xff] }
 0x648   : > { %2333 = vmatpush1.msra.mxu0 %v4293_v24  ;;  %2404 = vmatpush1.msra.mxu1 %v4300_v25  ;;  %v1611_v23 = vadd.f32 %v5331_v21, %v4596_v61 }
 0x649   : > { %2334 = vmatprep.subr.mxu0 %v4305_v26  ;;  %2405 = vmatprep.subr.mxu1 %v4310_v27 }
 0x64a   : > { %2335 = vmatpush1.msra.mxu0 %v4317_v28  ;;  %2406 = vmatpush1.msra.mxu1 %v4322_v29 }
 0x64b   : > { %2336 = vmatprep.subr.mxu0 %v4327_v30  ;;  %2407 = vmatprep.subr.mxu1 %v4334_v31  ;;  %v5332_v31 = vld [vmem:[#allocation40_spill] sm:$0xff] }
 0x64c   : > { %2337 = vmatpush1.msra.mxu0 %v4339_v32  ;;  %2408 = vmatpush1.msra.mxu1 %v4344_v33  ;;  %v1700_v32 = vadd.f32 %v5332_v31, %v5304_v42 }
 0x64d   : > { %2338 = vmatprep.subr.mxu0 %v4351_v34  ;;  %2409 = vmatprep.subr.mxu1 %v4356_v35  ;;  %v5333_v34 = vld [vmem:[#allocation30_spill] sm:$0xff] }
 0x64e   : > { %2339 = vmatpush1.msra.mxu0 %v4363_v36  ;;  %2410 = vmatpush1.msra.mxu1 %v5307_v0  ;;  %v1698_v35 = vadd.f32 %v5333_v34, %v4613_v49  ;;  %v5335_v0 = vld [vmem:[#allocation47_spill] sm:$0xff] }
 0x64f   : > { %2340 = vmatprep.subr.mxu0 %v5308_v45  ;;  %2411 = vmatprep.subr.mxu1 %v5309_v2  ;;  %v1617_v45 = vadd.f32 %v5335_v0, %v4596_v61 }
 0x650   : > { %2341 = vmatpush1.msra.mxu0 %v5310_v63  ;;  %2412 = vmatpush1.msra.mxu1 %v5311_v50 }
 0x651   : > { %2342 = vmatprep.subr.mxu0 %v5312_v1  ;;  %2413 = vmatprep.subr.mxu1 %v5313_v56 }
 0x652   : > { %2343 = vmatpush1.msra.mxu0 %v5314_v3  ;;  %2414 = vmatpush1.msra.mxu1 %v5315_v48  ;;  %v5336_v48 = vld [vmem:[#allocation42_spill] sm:$0xff] }
 0x653   : > { %2344 = vmatprep.subr.mxu0 %v5316_v4  ;;  %2415 = vmatprep.subr.mxu1 %v5317_v5  ;;  %v1706_v4 = vadd.f32 %v5336_v48, %v5304_v42 }
 0x654   : > { %2345 = vmatpush1.msra.mxu0 %v5318_v6  ;;  %2416 = vmatpush1.msra.mxu1 %v5319_v7  ;;  %v5337_v6 = vld [vmem:[#allocation41_spill] sm:$0xff] }
 0x655   : > { %2346 = vmatprep.subr.mxu0 %v5320_v8  ;;  %2417 = vmatprep.subr.mxu1 %v5321_v9  ;;  %v1704_v7 = vadd.f32 %v5337_v6, %v4613_v49 }
 0x656   : > { %2347 = vmatpush1.msra.mxu0 %v5322_v10  ;;  %2418 = vmatpush1.msra.mxu1 %v5323_v11 }
 0x657   : > { %2348 = vmatprep.subr.mxu0 %v5324_v12  ;;  %2419 = vmatprep.subr.mxu1 %v5325_v13 }
 0x658   : > { %2349 = vmatpush1.msra.mxu0 %v5326_v14  ;;  %2382 = vmatprep.mubr.f32.mxu0 %v5327_v15 }
 0x659   : > { %2420 = vmatpush1.msra.mxu1 %v5328_v16  ;;  %2453 = vmatprep.mubr.f32.mxu1 %v5327_v15 }
 0x6f9   : > { %v2210_v20 = vpop.f32.mrf.mxu0  ;;  %v2281_v28 = vpop.f32.mrf.mxu1 }
 0x6fa   : > { %v2286_v24 = vadd.f32 %v2210_v20, %v1609_v19  ;;  %v2288_v36 = vadd.f32 %v2281_v28, %v1698_v35 }
 0x6fb   : > { %v2212_v25 = vpop.f32.mrf.mxu0  ;;  %v2283_v30 = vpop.f32.mrf.mxu1 }
 0x6fc   : > { %v2772_v26 = vmul.f32 -1.442695, %v2286_v24  ;;  %v2287_v27 = vadd.f32 %v2212_v25, %v1611_v23  ;;  %v2289_v33 = vadd.f32 %v2283_v30, %v1700_v32 }
 0x6fe   : > { %2924 = vpow2.f32 %v2772_v26  ;;  %v2773_v29 = vmul.f32 -1.442695, %v2287_v27  ;;  %v2774_v44 = vmul.f32 -1.442695, %v2289_v33 }
 0x700   : > { %2926 = vpow2.f32 %v2773_v29 }
 0x701   : > { %2928 = vtanh.f32 %v2288_v36 }
 0x702   : > { %2930 = vpow2.f32 %v2774_v44 }
 0x70b   : > { %v2925_v38 = vpop.eup %2924 }
 0x70c   : > { %v2293_v41 = vadd.f32 1.0, %v2925_v38 }
 0x70d   : > { %v2927_v43 = vpop.eup %2926 }
 0x70e   : > { %2932 = vrcp.f32 %v2293_v41  ;;  %v2299_v57 = vadd.f32 1.0, %v2927_v43  ;;  %v2929_v60 = vpop.eup %2928 }
 0x70f   : > { %v2931_v55 = vpop.eup %2930 }
 0x710   : > { %2934 = vrcp.f32 %v2299_v57  ;;  %v2306_v40 = vadd.f32 1.0, %v2931_v55 }
 0x712   : > { %2936 = vrcp.f32 %v2306_v40 }
 0x71b   : > { %v2933_v58 = vpop.eup %2932 }
 0x71c   : > { %v2310_v51 = vmul.f32 %v2933_v58, %v2929_v60 }
 0x71d   : > { %v2935_v52 = vpop.eup %2934 }
 0x71e   : > { %v2309_v22 = vmul.f32 %v2935_v52, %v4694_v47 }
 0x71f   : > { %v2937_v39 = vpop.eup %2936 }
 0x720   : > { %v2311_v53 = vadd.f32 %v2310_v51, %v2309_v22 }
 0x722   : > { %2938 = vtanh.f32 %v2311_v53 }
 0x72f   : > { %v2939_v59 = vpop.eup %2938 }
 0x730   : > { %v2313_v54 = vmul.f32 %v2939_v59, %v2937_v39 }
 0x732   : > { %2383 = vmatmul.mubr.f32.vlgmr.msra.gmra.mxu0 %v2313_v54  ;;  %2454 = vmatmul.mubr.f32.vlgmr.msra.gmra.mxu1 %v2313_v54 }
 0x7f2   : > { %v2384_v46 = vpop.f32.mrf.mxu0  ;;  %v2455_v47 = vpop.f32.mrf.mxu1 }
 0x7f3   : > { %v2460_v2 = vadd.f32 %v2384_v46, %v1615_v62  ;;  %v2462_v8 = vadd.f32 %v2455_v47, %v1704_v7 }
 0x7f4   : > { %v2386_v63 = vpop.f32.mrf.mxu0  ;;  %v2457_v3 = vpop.f32.mrf.mxu1 }
 0x7f5   : > { %v2775_v50 = vmul.f32 -1.442695, %v2460_v2  ;;  %v2461_v1 = vadd.f32 %v2386_v63, %v1617_v45  ;;  %v2463_v5 = vadd.f32 %v2457_v3, %v1706_v4 }
 0x7f7   : > { %2940 = vpow2.f32 %v2775_v50  ;;  %v2776_v56 = vmul.f32 -1.442695, %v2461_v1  ;;  %v2777_v9 = vmul.f32 -1.442695, %v2463_v5 }
 0x7f9   : > { %2942 = vpow2.f32 %v2776_v56 }
 0x7fa   : > { %2944 = vtanh.f32 %v2462_v8 }
 0x7fb   : > { %2946 = vpow2.f32 %v2777_v9 }
 0x804   : > { %v2941_v10 = vpop.eup %2940 }
 0x805   : > { %v2467_v61 = vadd.f32 1.0, %v2941_v10 }
 0x806   : > { %v2943_v11 = vpop.eup %2942 }
 0x807   : > { %2948 = vrcp.f32 %v2467_v61  ;;  %v2473_v12 = vadd.f32 1.0, %v2943_v11  ;;  %v2945_v13 = vpop.eup %2944 }
 0x808   : > { %v2947_v14 = vpop.eup %2946 }
 0x809   : > { %2950 = vrcp.f32 %v2473_v12  ;;  %v2480_v42 = vadd.f32 1.0, %v2947_v14 }
 0x80b   : > { %2952 = vrcp.f32 %v2480_v42 }
 0x814   : > { %v2949_v15 = vpop.eup %2948 }
 0x815   : > { %v2484_v16 = vmul.f32 %v2949_v15, %v2945_v13 }
 0x816   : > { %v2951_v17 = vpop.eup %2950 }
 0x817   : > { %v2483_v18 = vmul.f32 %v2951_v17, %v2311_v53 }
 0x818   : > { %v2953_v49 = vpop.eup %2952 }
 0x819   : > { %v2485_v19 = vadd.f32 %v2484_v16, %v2483_v18 }
 0x81b   : > { %2954 = vtanh.f32 %v2485_v19  ;;  %2489 = vst [vmem:[#allocation5] sm:$0xff] %v2485_v19 }
 0x827   : > { %2493 = sbr.rel (%p2778_p5) target bundleno = 2523 (0x9db), region = 72 }
 0x828   : > { %v2955_v20 = vpop.eup %2954 }
 0x829   : > { %v4778_v21 = vmul.f32 %v2955_v20, %v2953_v49 }
 0x82b   : > { %2488 = vst [vmem:[#allocation4 + $0x8] sm:$0xff] %v4778_v21 }
 0x82c   : > { %v2525_v23 = vld [vmem:[%s4996_s7 + $0xf8] sm:$0xff]  ;;  %v2524_v24 = vld [vmem:[%s4996_s7 + $0xf0] sm:$0xff]  ;;  %v2523_v25 = vld [vmem:[%s4996_s7 + $0xe8] sm:$0xff]  ;;  %v2966_v27 = vmov 0.0  }
 0x82d   : > { %2538 = vmatprep.subr.mxu0 %v2525_v23  ;;  %v2522_v26 = vld [vmem:[%s4996_s7 + $0xe0] sm:$0xff]  ;;  %2602 = vmatprep.mubr.f32.mxu0 %v2966_v27  ;;  %v2521_v28 = vld [vmem:[%s4996_s7 + $0xd8] sm:$0xff]  ;;  %v2520_v29 = vld [vmem:[%s4996_s7 + $0xd0] sm:$0xff] }
 0x82e   : > { %2539 = vmatpush1.msra.mxu0 %v2524_v24  ;;  %v2519_v30 = vld [vmem:[%s4996_s7 + $0xc8] sm:$0xff]  ;;  %v2518_v31 = vld [vmem:[%s4996_s7 + $0xc0] sm:$0xff]  ;;  %v2517_v32 = vld [vmem:[%s4996_s7 + $0xb8] sm:$0xff] }
 0x82f   : > { %2540 = vmatprep.subr.mxu0 %v2523_v25  ;;  %v2516_v33 = vld [vmem:[%s4996_s7 + $0xb0] sm:$0xff]  ;;  %v2515_v34 = vld [vmem:[%s4996_s7 + $0xa8] sm:$0xff]  ;;  %v2514_v35 = vld [vmem:[%s4996_s7 + $0xa0] sm:$0xff] }
 0x830   : > { %2541 = vmatpush1.msra.mxu0 %v2522_v26  ;;  %v2513_v36 = vld [vmem:[%s4996_s7 + $0x98] sm:$0xff]  ;;  %v2512_v44 = vld [vmem:[%s4996_s7 + $0x90] sm:$0xff]  ;;  %v2511_v60 = vld [vmem:[%s4996_s7 + $0x88] sm:$0xff] }
 0x831   : > { %2542 = vmatprep.subr.mxu0 %v2521_v28  ;;  %v2640_v38 = vld [vmem:[%s4998_s9 + $0xf8] sm:$0xff]  ;;  %v2639_v43 = vld [vmem:[%s4998_s9 + $0xf0] sm:$0xff]  ;;  %v2638_v55 = vld [vmem:[%s4998_s9 + $0xe8] sm:$0xff] }
 0x832   : > { %2543 = vmatpush1.msra.mxu0 %v2520_v29  ;;  %2782 = vmatprep.subr.mxu1 %v2640_v38  ;;  %v2624_v41 = vld [vmem:[%s4998_s9 + $0x78] sm:$0xff]  ;;  %v2623_v57 = vld [vmem:[%s4998_s9 + $0x70] sm:$0xff]  ;;  %v2510_v58 = vld [vmem:[%s4996_s7 + $0x80] sm:$0xff] }
 0x833   : > { %2544 = vmatprep.subr.mxu0 %v2519_v30  ;;  %2783 = vmatpush3.msra.mxu1 %v2624_v41  ;;  %v2622_v51 = vld [vmem:[%s4998_s9 + $0x68] sm:$0xff]  ;;  %v2509_v52 = vld [vmem:[%s4996_s7 + $0x78] sm:$0xff]  ;;  %v2637_v40 = vld [vmem:[%s4998_s9 + $0xe0] sm:$0xff] }
 0x834   : > { %2545 = vmatpush1.msra.mxu0 %v2518_v31  ;;  %2784 = vmatprep.subr.mxu1 %v2639_v43  ;;  %v2508_v22 = vld [vmem:[%s4996_s7 + $0x70] sm:$0xff]  ;;  %v2621_v53 = vld [vmem:[%s4998_s9 + $0x60] sm:$0xff]  ;;  %v2507_v39 = vld [vmem:[%s4996_s7 + $0x68] sm:$0xff] }
 0x835   : > { %2546 = vmatprep.subr.mxu0 %v2517_v32  ;;  %2785 = vmatpush3.msra.mxu1 %v2623_v57  ;;  %v2636_v59 = vld [vmem:[%s4998_s9 + $0xd8] sm:$0xff]  ;;  %v2506_v54 = vld [vmem:[%s4996_s7 + $0x60] sm:$0xff]  ;;  %v2635_v46 = vld [vmem:[%s4998_s9 + $0xd0] sm:$0xff] }
 0x836   : > { %2547 = vmatpush1.msra.mxu0 %v2516_v33  ;;  %2786 = vmatprep.subr.mxu1 %v2638_v55  ;;  %v2620_v37 = vld [vmem:[%s4998_s9 + $0x58] sm:$0xff]  ;;  %v2504_v0 = vld [vmem:[%s4996_s7 + $0x50] sm:$0xff]  ;;  %v2503_v2 = vld [vmem:[%s4996_s7 + $0x48] sm:$0xff] }
 0x837   : > { %2548 = vmatprep.subr.mxu0 %v2515_v34  ;;  %2787 = vmatpush3.msra.mxu1 %v2622_v51  ;;  %v2505_v62 = vld [vmem:[%s4996_s7 + $0x58] sm:$0xff]  ;;  %v2619_v45 = vld [vmem:[%s4998_s9 + $0x50] sm:$0xff]  ;;  %v2634_v63 = vld [vmem:[%s4998_s9 + $0xc8] sm:$0xff] }
 0x838   : > { %2549 = vmatpush1.msra.mxu0 %v2514_v35  ;;  %2788 = vmatprep.subr.mxu1 %v2637_v40  ;;  %v2502_v50 = vld [vmem:[%s4996_s7 + $0x40] sm:$0xff]  ;;  %v2618_v1 = vld [vmem:[%s4998_s9 + $0x48] sm:$0xff]  ;;  %v2501_v47 = vld [vmem:[%s4996_s7 + $0x38] sm:$0xff] }
 0x839   : > { %2550 = vmatprep.subr.mxu0 %v2513_v36  ;;  %2789 = vmatpush3.msra.mxu1 %v2621_v53  ;;  %v2633_v56 = vld [vmem:[%s4998_s9 + $0xc0] sm:$0xff]  ;;  %v2500_v3 = vld [vmem:[%s4996_s7 + $0x30] sm:$0xff]  ;;  %v2499_v4 = vld [vmem:[%s4996_s7 + $0x28] sm:$0xff] }
 0x83a   : > { %2551 = vmatpush1.msra.mxu0 %v2512_v44  ;;  %2790 = vmatprep.subr.mxu1 %v2636_v59  ;;  %v2617_v48 = vld [vmem:[%s4998_s9 + $0x40] sm:$0xff]  ;;  %v2632_v5 = vld [vmem:[%s4998_s9 + $0xb8] sm:$0xff]  ;;  %v2631_v9 = vld [vmem:[%s4998_s9 + $0xb0] sm:$0xff] }
 0x83b   : > { %2552 = vmatprep.subr.mxu0 %v2511_v60  ;;  %2791 = vmatpush3.msra.mxu1 %v2620_v37  ;;  %v2498_v6 = vld [vmem:[%s4996_s7 + $0x20] sm:$0xff]  ;;  %v2616_v7 = vld [vmem:[%s4998_s9 + $0x38] sm:$0xff]  ;;  %v2496_v10 = vld [vmem:[%s4996_s7 + $0x10] sm:$0xff] }
 0x83c   : > { %2553 = vmatpush1.msra.mxu0 %v2510_v58  ;;  %2792 = vmatprep.subr.mxu1 %v2635_v46  ;;  %v2497_v8 = vld [vmem:[%s4996_s7 + $0x18] sm:$0xff]  ;;  %v2615_v61 = vld [vmem:[%s4998_s9 + $0x30] sm:$0xff]  ;;  %v2495_v11 = vld [vmem:[%s4996_s7 + $0x8] sm:$0xff] }
 0x83d   : > { %2554 = vmatprep.subr.mxu0 %v2509_v52  ;;  %2793 = vmatpush3.msra.mxu1 %v2619_v45  ;;  %v2630_v12 = vld [vmem:[%s4998_s9 + $0xa8] sm:$0xff]  ;;  %v2494_v13 = vld [vmem:[%s4996_s7] sm:$0xff]  ;;  %v2628_v17 = vld [vmem:[%s4998_s9 + $0x98] sm:$0xff] }
 0x83e   : > { %2555 = vmatpush1.msra.mxu0 %v2508_v22  ;;  %2794 = vmatprep.subr.mxu1 %v2634_v63  ;;  %v2614_v14 = vld [vmem:[%s4998_s9 + $0x28] sm:$0xff]  ;;  %v2629_v15 = vld [vmem:[%s4998_s9 + $0xa0] sm:$0xff]  ;;  %v2612_v42 = vld [vmem:[%s4998_s9 + $0x18] sm:$0xff] }
 0x83f   : > { %2556 = vmatprep.subr.mxu0 %v2507_v39  ;;  %2795 = vmatpush3.msra.mxu1 %v2618_v1  ;;  %v2613_v16 = vld [vmem:[%s4998_s9 + $0x20] sm:$0xff]  ;;  %v2627_v18 = vld [vmem:[%s4998_s9 + $0x90] sm:$0xff]  ;;  %v2626_v49 = vld [vmem:[%s4998_s9 + $0x88] sm:$0xff] }
 0x840   : > { %2557 = vmatpush1.msra.mxu0 %v2506_v54  ;;  %2796 = vmatprep.subr.mxu1 %v2633_v56  ;;  %v2611_v19 = vld [vmem:[%s4998_s9 + $0x10] sm:$0xff]  ;;  %v2610_v20 = vld [vmem:[%s4998_s9 + $0x8] sm:$0xff]  ;;  %v2609_v23 = vld [vmem:[%s4998_s9] sm:$0xff] }
 0x841   : > { %2558 = vmatprep.subr.mxu0 %v2505_v62  ;;  %2797 = vmatpush3.msra.mxu1 %v2617_v48  ;;  %v2526_v24 = vld [vmem:[%s4997_s8] sm:$0x3]  ;;  %v5339_v27 = vld [vmem:[#allocation33_spill] sm:$0xff] }
 0x842   : > { %2559 = vmatpush1.msra.mxu0 %v2504_v0  ;;  %2798 = vmatprep.subr.mxu1 %v2632_v5  ;;  %v5338_v25 = vld [vmem:[#allocation34_spill] sm:$0xff]  ;;  %v2531_v28 = vrot.slane %v2526_v24, %v5339_v27 }
 0x843   : > { %2560 = vmatprep.subr.mxu0 %v2503_v2  ;;  %2799 = vmatpush3.msra.mxu1 %v2616_v7  ;;  %v2535_v26 = vrot.slane %v2526_v24, %v5338_v25  ;;  %v2779_v34 = vld [vmem:[%s4999_s10] ss:$0 sm:$0xff] }
 0x844   : > { %2561 = vmatpush1.msra.mxu0 %v2502_v50  ;;  %2800 = vmatprep.subr.mxu1 %v2631_v9 }
 0x845   : > { %2562 = vmatprep.subr.mxu0 %v2501_v47  ;;  %2801 = vmatpush3.msra.mxu1 %v2615_v61 }
 0x846   : > { %2563 = vmatpush1.msra.mxu0 %v2500_v3  ;;  %2802 = vmatprep.subr.mxu1 %v2630_v12 }
 0x847   : > { %2564 = vmatprep.subr.mxu0 %v2499_v4  ;;  %2803 = vmatpush3.msra.mxu1 %v2614_v14 }
 0x848   : > { %2565 = vmatpush1.msra.mxu0 %v2498_v6  ;;  %2804 = vmatprep.subr.mxu1 %v2629_v15 }
 0x849   : > { %2566 = vmatprep.subr.mxu0 %v2497_v8  ;;  %2805 = vmatpush3.msra.mxu1 %v2613_v16 }
 0x84a   : > { %2567 = vmatpush1.msra.mxu0 %v2496_v10  ;;  %2806 = vmatprep.subr.mxu1 %v2628_v17 }
 0x84b   : > { %2568 = vmatprep.subr.mxu0 %v2495_v11  ;;  %2807 = vmatpush3.msra.mxu1 %v2612_v42 }
 0x84c   : > { %2569 = vmatpush1.msra.mxu0 %v2494_v13  ;;  %2808 = vmatprep.subr.mxu1 %v2627_v18 }
 0x84d   : > { %2603 = vmatmul.mubr.f32.vlgmr.msra.gmra.mxu0 %v4778_v21  ;;  %2809 = vmatpush3.msra.mxu1 %v2611_v19  ;;  %v2625_v21 = vld [vmem:[%s4998_s9 + $0x80] sm:$0xff] }
 0x84e   : > { %2810 = vmatprep.subr.mxu1 %v2626_v49 }
 0x84f   : > { %2811 = vmatpush3.msra.mxu1 %v2610_v20 }
 0x850   : > { %2812 = vmatprep.subr.mxu1 %v2625_v21 }
 0x851   : > { %2813 = vmatpush3.msra.mxu1 %v2609_v23 }
 0x90d   : > { %v2604_v29 = vpop.f32.mrf.mxu0 }
 0x90e   : > { %v2605_v32 = vadd.f32 %v2604_v29, %v2531_v28 }
 0x90f   : > { %v2606_v30 = vpop.f32.mrf.mxu0 }
 0x910   : > { %v2607_v31 = vadd.f32 %v2606_v30, %v2535_v26 }
 0x912   : > { %2712 = vmatprep.mubr.f32.mxu1 %v2607_v31 }
 0x913   : > { %2713 = vmatmul.mubr.f32.vlgmr.msra.gmra.mxu1 %v2605_v32 }
 0x9d3   : > { %v2814_v33 = vpop.f32.mrf.mxu1 }
 0x9d5   : > { %v2815_v35 = vpop.f32.mrf.mxu1 }
 0x9d6   : > { %v2816_v36 = vadd.f32 %v2815_v35, %v2814_v33 }
 0x9d8   : > { %v2715_v44 = vadd.f32 %v2816_v36, %v2779_v34 }
 0x9da   : > { %2718 = vst [vmem:[%s5000_s11] sm:$0xff] %v2715_v44 }
 0x9db PF: > { %s21_s17 = sadd.s32 1, %s2962_s17  }
 0x9dc   : > { %p18_p6 = scmp.ge.s32.totalorder %s21_s17, 4  }
 0x9de   :  { %20 = sbr.rel (!%p18_p6) target bundleno = 1 (0x1), region = 106 }

</bundles_post_ra>
